<compile_context>
chip_gen: v6e
topology: v6e:2x2x1
jax: 0.10.0
libtpu: 0.0.40
codegen_flags: <defaults>
</compile_context>

<pallas_src>
import functools

import jax
import jax.numpy as jnp
import numpy as np
from jax.experimental import pallas as pl
from jax.experimental.pallas import tpu as pltpu

LN_EPS = 1e-5  # torch.nn.LayerNorm default


def _layer_norm(x, g, b):
    mu = jnp.mean(x, axis=-1, keepdims=True)
    var = jnp.mean((x - mu) ** 2, axis=-1, keepdims=True)
    return (x - mu) * jax.lax.rsqrt(var + LN_EPS) * g + b


def _decoder_layer_kernel(
    hs_ref, qpos_ref, enc_ref, objq_ref,
    sa_qk_w_ref, sa_qk_b_ref, sa_v_w_ref, sa_v_b_ref, sa_out_w_ref, sa_out_b_ref,
    ca_q_w_ref, ca_q_b_ref, ca_k_w_ref, ca_k_b_ref, ca_v_w_ref, ca_v_b_ref,
    ca_out_w_ref, ca_out_b_ref,
    ln_g_ref, ln_b_ref,
    fc1_w_ref, fc1_b_ref, fc2_w_ref, fc2_b_ref,
    out_ref,
    *, num_heads, head_dim, block_b,
):
    _, T, D = hs_ref.shape
    S = enc_ref.shape[1]
    bf16 = jnp.bfloat16

    if block_b == 1:
        hs, qpos = hs_ref[0], qpos_ref[0]
        enc, objq = enc_ref[0], objq_ref[0]
    else:
        hs = hs_ref[...].reshape(block_b * T, D)
        qpos = qpos_ref[...].reshape(block_b * T, D)
        enc = enc_ref[...].reshape(block_b * S, D)
        objq = objq_ref[...].reshape(block_b * S, D)

    def mm(x, w_ref):
        # bf16 MXU matmul with f32 accumulation.
        return jnp.dot(x.astype(bf16), w_ref[...],
                       preferred_element_type=jnp.float32)

    def mha(q, k, v, out_w_ref, out_b_ref, t_len, s_len):
        """Multi-head attention on pre-projected q/k/v (q already scaled).

        q: (block_b*t_len, D); k, v: (block_b*s_len, D).  Heads are never
        concatenated: each head's context is accumulated directly into the
        output projection so the final matmul keeps N = D (no lane concat,
        no k transpose)."""
        per_batch = []
        for b in range(block_b):                     # static unroll, tiny
            qb = q[b * t_len:(b + 1) * t_len]
            kb = k[b * s_len:(b + 1) * s_len]
            vb = v[b * s_len:(b + 1) * s_len]
            acc = jnp.zeros((t_len, D), jnp.float32)
            for h in range(num_heads):               # static unroll, tiny
                sl = slice(h * head_dim, (h + 1) * head_dim)
                # scores: contract the last dims of both (no materialized k.T)
                s = jax.lax.dot_general(
                    qb[:, sl].astype(bf16), kb[:, sl].astype(bf16),
                    (((1,), (1,)), ((), ())),
                    preferred_element_type=jnp.float32)            # (t, s)
                s = s - jnp.max(s, axis=-1, keepdims=True)
                p = jnp.exp(s)
                p = p * pl.reciprocal(jnp.sum(p, axis=-1, keepdims=True),
                                      approx=True)
                ctx = jnp.dot(p.astype(bf16), vb[:, sl].astype(bf16),
                              preferred_element_type=jnp.float32)   # (t, hd)
                acc = acc + jnp.dot(ctx.astype(bf16), out_w_ref[sl, :],
                                    preferred_element_type=jnp.float32)
            per_batch.append(acc)
        o = per_batch[0] if block_b == 1 else jnp.concatenate(per_batch, axis=0)
        return o + out_b_ref[...]

    # ---- self attention (q/k get query pos embeds, v uses original hidden) ----
    q_in = hs + qpos
    qk = mm(q_in, sa_qk_w_ref) + sa_qk_b_ref[...]          # fused Q|K, (bT, 2D)
    v_sa = mm(hs, sa_v_w_ref) + sa_v_b_ref[...]
    sa_out = mha(qk[:, :D], qk[:, D:], v_sa, sa_out_w_ref, sa_out_b_ref, T, T)
    hs1 = _layer_norm(hs + sa_out, ln_g_ref[0], ln_b_ref[0])

    # ---- cross attention (k gets spatial pos embeds, v uses original encoder) ----
    q_ca = mm(hs1 + qpos, ca_q_w_ref) + ca_q_b_ref[...]
    k_ca = mm(enc + objq, ca_k_w_ref) + ca_k_b_ref[...]
    v_ca = mm(enc, ca_v_w_ref) + ca_v_b_ref[...]
    ca_out = mha(q_ca, k_ca, v_ca, ca_out_w_ref, ca_out_b_ref, T, S)
    hs2 = _layer_norm(hs1 + ca_out, ln_g_ref[1], ln_b_ref[1])

    # ---- feed-forward (relu activation, DETR default) ----
    ff = jnp.maximum(mm(hs2, fc1_w_ref) + fc1_b_ref[...], 0.0)
    ff = mm(ff, fc2_w_ref) + fc2_b_ref[...]
    hs3 = _layer_norm(hs2 + ff, ln_g_ref[2], ln_b_ref[2])

    if block_b == 1:
        out_ref[0] = hs3.astype(out_ref.dtype)
    else:
        out_ref[...] = hs3.reshape(block_b, T, D).astype(out_ref.dtype)


def detr_decoder_layer(hidden, qpos, enc, objq, p, *, num_heads, block_b=1):
    B, T, D = hidden.shape
    S = enc.shape[1]
    head_dim = D // num_heads
    assert B % block_b == 0, "batch must be divisible by block_b"
    # Matches the reference module: self.scaling = head_dim ** 0.5 (MULTIPLY).
    scaling = float(head_dim) ** 0.5
    bf16, f32 = jnp.bfloat16, jnp.float32

    # ---- wrapper-side weight prep: fold q scaling, fuse self-attn Q|K, bf16 cast ----
    sa_qk_w = jnp.concatenate([p["sa_q_w"] * scaling, p["sa_k_w"]], axis=1).astype(bf16)
    sa_qk_b = jnp.concatenate([p["sa_q_b"] * scaling, p["sa_k_b"]], axis=1).astype(f32)
    weights = dict(
        sa_qk_w=sa_qk_w, sa_qk_b=sa_qk_b,
        sa_v_w=p["sa_v_w"].astype(bf16), sa_v_b=p["sa_v_b"].astype(f32),
        sa_out_w=p["sa_out_w"].astype(bf16), sa_out_b=p["sa_out_b"].astype(f32),
        ca_q_w=(p["ca_q_w"] * scaling).astype(bf16),
        ca_q_b=(p["ca_q_b"] * scaling).astype(f32),
        ca_k_w=p["ca_k_w"].astype(bf16), ca_k_b=p["ca_k_b"].astype(f32),
        ca_v_w=p["ca_v_w"].astype(bf16), ca_v_b=p["ca_v_b"].astype(f32),
        ca_out_w=p["ca_out_w"].astype(bf16), ca_out_b=p["ca_out_b"].astype(f32),
        ln_g=p["ln_g"].astype(f32), ln_b=p["ln_b"].astype(f32),
        fc1_w=p["fc1_w"].astype(bf16), fc1_b=p["fc1_b"].astype(f32),
        fc2_w=p["fc2_w"].astype(bf16), fc2_b=p["fc2_b"].astype(f32),
    )
    w_order = ["sa_qk_w", "sa_qk_b", "sa_v_w", "sa_v_b", "sa_out_w", "sa_out_b",
               "ca_q_w", "ca_q_b", "ca_k_w", "ca_k_b", "ca_v_w", "ca_v_b",
               "ca_out_w", "ca_out_b", "ln_g", "ln_b",
               "fc1_w", "fc1_b", "fc2_w", "fc2_b"]
    w_args = [weights[k] for k in w_order]

    act_spec_T = pl.BlockSpec((block_b, T, D), lambda b: (b, 0, 0))
    act_spec_S = pl.BlockSpec((block_b, S, D), lambda b: (b, 0, 0))

    # Explicit VMEM budget: single-buffered weights + double-buffered activations
    # + headroom for kernel intermediates (capped under v7x's 64 MiB per TC).
    weight_bytes = sum(int(w.size) * w.dtype.itemsize for w in w_args)
    act_bytes = (3 * block_b * T * D + 2 * block_b * S * D) * hidden.dtype.itemsize
    vmem_limit = int(min(64 * 2 ** 20, weight_bytes + 2 * act_bytes + (16 << 20)))

    kernel = functools.partial(_decoder_layer_kernel, num_heads=num_heads,
                               head_dim=head_dim, block_b=block_b)

    def build(single_buffer_weights):
        def wspec(arr):
            rank = arr.ndim
            idx = lambda b, _r=rank: (0,) * _r     # constant: block never changes
            if single_buffer_weights:
                return pl.BlockSpec(arr.shape, idx, pipeline_mode=pl.Buffered(1))
            return pl.BlockSpec(arr.shape, idx)
        return pl.pallas_call(
            kernel,
            grid=(B // block_b,),
            in_specs=[act_spec_T, act_spec_T, act_spec_S, act_spec_S]
                     + [wspec(w) for w in w_args],
            out_specs=pl.BlockSpec((block_b, T, D), lambda b: (b, 0, 0)),
            out_shape=jax.ShapeDtypeStruct((B, T, D), hidden.dtype),
            compiler_params=pltpu.CompilerParams(
                dimension_semantics=("parallel",),
                vmem_limit_bytes=vmem_limit),
        )

    args = (hidden, qpos, enc, objq, *w_args)
    try:
        return build(True)(*args)
    except Exception:
        # Fallback: identical kernel without the single-buffered-weights hint.
        return build(False)(*args)


# ---------------- plain-JAX f32 reference (mirrors the PyTorch module) ----------------
def _reference(hidden, qpos, enc, objq, p, *, num_heads):
    B, T, D = hidden.shape
    hd = D // num_heads
    scaling = float(hd) ** 0.5   # spec module multiplies by sqrt(head_dim)

    def ln(x, g, b):
        mu = x.mean(-1, keepdims=True)
        var = ((x - mu) ** 2).mean(-1, keepdims=True)
        return (x - mu) / jnp.sqrt(var + LN_EPS) * g + b

    def attn(q_in, k_in, v_in, pre):
        q = (q_in @ p[pre + "_q_w"] + p[pre + "_q_b"][0]) * scaling
        k = k_in @ p[pre + "_k_w"] + p[pre + "_k_b"][0]
        v = v_in @ p[pre + "_v_w"] + p[pre + "_v_b"][0]
        Lq, Lk = q.shape[1], k.shape[1]
        q = q.reshape(B, Lq, num_heads, hd).transpose(0, 2, 1, 3)
        k = k.reshape(B, Lk, num_heads, hd).transpose(0, 2, 1, 3)
        v = v.reshape(B, Lk, num_heads, hd).transpose(0, 2, 1, 3)
        w = jax.nn.softmax(jnp.einsum("bhtd,bhsd->bhts", q, k), axis=-1)
        o = jnp.einsum("bhts,bhsd->bhtd", w, v)
        o = o.transpose(0, 2, 1, 3).reshape(B, Lq, D)
        return o @ p[pre + "_out_w"] + p[pre + "_out_b"][0]

    x = hidden
    x = ln(x + attn(x + qpos, x + qpos, x, "sa"),
           p["ln_g"][0, 0], p["ln_b"][0, 0])
    x = ln(x + attn(x + qpos, enc + objq, enc, "ca"),
           p["ln_g"][1, 0], p["ln_b"][1, 0])
    ff = jnp.maximum(x @ p["fc1_w"] + p["fc1_b"][0], 0.0) @ p["fc2_w"] + p["fc2_b"][0]
    return ln(x + ff, p["ln_g"][2, 0], p["ln_b"][2, 0])


if __name__ == "__main__":
    # Small config: d_model=32, heads=4, ffn=64, batch=2, queries=8, enc seq=16.
    B, T, S, D, H, F = 2, 8, 16, 32, 4, 64
    key = jax.random.PRNGKey(0)
    ks = jax.random.split(key, 32)

    def rnd(k, shape, scale=0.05):
        return (scale * jax.random.normal(k, shape)).astype(jnp.float32)

    hidden = rnd(ks[0], (B, T, D), 1.0)
    qpos = rnd(ks[1], (B, T, D), 1.0)     # query_position_embeddings
    enc = rnd(ks[2], (B, S, D), 1.0)      # encoder_hidden_states
    objq = rnd(ks[3], (B, S, D), 1.0)     # object_queries (spatial pos embeds)

    params = {
        "sa_q_w": rnd(ks[4], (D, D)), "sa_q_b": rnd(ks[5], (1, D)),
        "sa_k_w": rnd(ks[6], (D, D)), "sa_k_b": rnd(ks[7], (1, D)),
        "sa_v_w": rnd(ks[8], (D, D)), "sa_v_b": rnd(ks[9], (1, D)),
        "sa_out_w": rnd(ks[10], (D, D)), "sa_out_b": rnd(ks[11], (1, D)),
        "ca_q_w": rnd(ks[12], (D, D)), "ca_q_b": rnd(ks[13], (1, D)),
        "ca_k_w": rnd(ks[14], (D, D)), "ca_k_b": rnd(ks[15], (1, D)),
        "ca_v_w": rnd(ks[16], (D, D)), "ca_v_b": rnd(ks[17], (1, D)),
        "ca_out_w": rnd(ks[18], (D, D)), "ca_out_b": rnd(ks[19], (1, D)),
        "ln_g": (1.0 + rnd(ks[20], (3, 1, D), 0.02)).astype(jnp.float32),
        "ln_b": rnd(ks[21], (3, 1, D), 0.02),
        "fc1_w": rnd(ks[22], (D, F)), "fc1_b": rnd(ks[23], (1, F)),
        "fc2_w": rnd(ks[24], (F, D)), "fc2_b": rnd(ks[25], (1, D)),
    }

    out = detr_decoder_layer(hidden, qpos, enc, objq, params,
                             num_heads=H, block_b=1)
    out = jax.block_until_ready(out)

    ref = _reference(hidden, qpos, enc, objq, params, num_heads=H)
    # Kernel uses bf16 MXU matmuls (f32 accumulation) + approx reciprocal, so
    # compare against the f32 reference with a bf16-appropriate tolerance.
    np.testing.assert_allclose(np.asarray(out), np.asarray(ref),
                               rtol=3e-2, atol=3e-2)

    print("KERNEL_OK")
</pallas_src>

<mosaic_0001>
module attributes {stable_mosaic.version = 11 : i64} {
  func.func @_decoder_layer_kernel(%arg0: i32, %arg1: memref<1x8x32xf32, #tpu.memory_space<vmem>>, %arg2: memref<1x8x32xf32, #tpu.memory_space<vmem>>, %arg3: memref<1x16x32xf32, #tpu.memory_space<vmem>>, %arg4: memref<1x16x32xf32, #tpu.memory_space<vmem>>, %arg5: memref<32x64xbf16, #tpu.memory_space<vmem>>, %arg6: memref<1x64xf32, #tpu.memory_space<vmem>>, %arg7: memref<32x32xbf16, #tpu.memory_space<vmem>>, %arg8: memref<1x32xf32, #tpu.memory_space<vmem>>, %arg9: memref<32x32xbf16, #tpu.memory_space<vmem>>, %arg10: memref<1x32xf32, #tpu.memory_space<vmem>>, %arg11: memref<32x32xbf16, #tpu.memory_space<vmem>>, %arg12: memref<1x32xf32, #tpu.memory_space<vmem>>, %arg13: memref<32x32xbf16, #tpu.memory_space<vmem>>, %arg14: memref<1x32xf32, #tpu.memory_space<vmem>>, %arg15: memref<32x32xbf16, #tpu.memory_space<vmem>>, %arg16: memref<1x32xf32, #tpu.memory_space<vmem>>, %arg17: memref<32x32xbf16, #tpu.memory_space<vmem>>, %arg18: memref<1x32xf32, #tpu.memory_space<vmem>>, %arg19: memref<3x1x32xf32, #tpu.memory_space<vmem>>, %arg20: memref<3x1x32xf32, #tpu.memory_space<vmem>>, %arg21: memref<32x64xbf16, #tpu.memory_space<vmem>>, %arg22: memref<1x64xf32, #tpu.memory_space<vmem>>, %arg23: memref<64x32xbf16, #tpu.memory_space<vmem>>, %arg24: memref<1x32xf32, #tpu.memory_space<vmem>>, %arg25: memref<1x8x32xf32, #tpu.memory_space<vmem>>) attributes {dimension_semantics = [#tpu.dimension_semantics<parallel>], iteration_bounds = array<i64: 2>, scalar_prefetch = 0 : i64, scratch_operands = 0 : i64, tpu.core_type = #tpu.core_type<tc>, window_params = [{transform_indices = @transform_0, window_bounds = array<i64: 1, 8, 32>}, {transform_indices = @transform_1, window_bounds = array<i64: 1, 8, 32>}, {transform_indices = @transform_2, window_bounds = array<i64: 1, 16, 32>}, {transform_indices = @transform_3, window_bounds = array<i64: 1, 16, 32>}, {pipeline_mode = #tpu.pipeline_mode<synchronous>, transform_indices = @transform_4, window_bounds = array<i64: 32, 64>}, {pipeline_mode = #tpu.pipeline_mode<synchronous>, transform_indices = @transform_5, window_bounds = array<i64: 1, 64>}, {pipeline_mode = #tpu.pipeline_mode<synchronous>, transform_indices = @transform_6, window_bounds = array<i64: 32, 32>}, {pipeline_mode = #tpu.pipeline_mode<synchronous>, transform_indices = @transform_7, window_bounds = array<i64: 1, 32>}, {pipeline_mode = #tpu.pipeline_mode<synchronous>, transform_indices = @transform_8, window_bounds = array<i64: 32, 32>}, {pipeline_mode = #tpu.pipeline_mode<synchronous>, transform_indices = @transform_9, window_bounds = array<i64: 1, 32>}, {pipeline_mode = #tpu.pipeline_mode<synchronous>, transform_indices = @transform_10, window_bounds = array<i64: 32, 32>}, {pipeline_mode = #tpu.pipeline_mode<synchronous>, transform_indices = @transform_11, window_bounds = array<i64: 1, 32>}, {pipeline_mode = #tpu.pipeline_mode<synchronous>, transform_indices = @transform_12, window_bounds = array<i64: 32, 32>}, {pipeline_mode = #tpu.pipeline_mode<synchronous>, transform_indices = @transform_13, window_bounds = array<i64: 1, 32>}, {pipeline_mode = #tpu.pipeline_mode<synchronous>, transform_indices = @transform_14, window_bounds = array<i64: 32, 32>}, {pipeline_mode = #tpu.pipeline_mode<synchronous>, transform_indices = @transform_15, window_bounds = array<i64: 1, 32>}, {pipeline_mode = #tpu.pipeline_mode<synchronous>, transform_indices = @transform_16, window_bounds = array<i64: 32, 32>}, {pipeline_mode = #tpu.pipeline_mode<synchronous>, transform_indices = @transform_17, window_bounds = array<i64: 1, 32>}, {pipeline_mode = #tpu.pipeline_mode<synchronous>, transform_indices = @transform_18, window_bounds = array<i64: 3, 1, 32>}, {pipeline_mode = #tpu.pipeline_mode<synchronous>, transform_indices = @transform_19, window_bounds = array<i64: 3, 1, 32>}, {pipeline_mode = #tpu.pipeline_mode<synchronous>, transform_indices = @transform_20, window_bounds = array<i64: 32, 64>}, {pipeline_mode = #tpu.pipeline_mode<synchronous>, transform_indices = @transform_21, window_bounds = array<i64: 1, 64>}, {pipeline_mode = #tpu.pipeline_mode<synchronous>, transform_indices = @transform_22, window_bounds = array<i64: 64, 32>}, {pipeline_mode = #tpu.pipeline_mode<synchronous>, transform_indices = @transform_23, window_bounds = array<i64: 1, 32>}, {transform_indices = @transform_24, window_bounds = array<i64: 1, 8, 32>}]} {
    %c0 = arith.constant 0 : index
    %c0_0 = arith.constant 0 : index
    %c0_1 = arith.constant 0 : index
    %0 = vector.load %arg1[%c0, %c0_0, %c0_1] : memref<1x8x32xf32, #tpu.memory_space<vmem>>, vector<1x8x32xf32>
    %1 = vector.shape_cast %0 : vector<1x8x32xf32> to vector<8x32xf32>
    %c0_2 = arith.constant 0 : index
    %c0_3 = arith.constant 0 : index
    %c0_4 = arith.constant 0 : index
    %2 = vector.load %arg2[%c0_2, %c0_3, %c0_4] : memref<1x8x32xf32, #tpu.memory_space<vmem>>, vector<1x8x32xf32>
    %3 = vector.shape_cast %2 : vector<1x8x32xf32> to vector<8x32xf32>
    %c0_5 = arith.constant 0 : index
    %c0_6 = arith.constant 0 : index
    %c0_7 = arith.constant 0 : index
    %4 = vector.load %arg3[%c0_5, %c0_6, %c0_7] : memref<1x16x32xf32, #tpu.memory_space<vmem>>, vector<1x16x32xf32>
    %5 = vector.shape_cast %4 : vector<1x16x32xf32> to vector<16x32xf32>
    %c0_8 = arith.constant 0 : index
    %c0_9 = arith.constant 0 : index
    %c0_10 = arith.constant 0 : index
    %6 = vector.load %arg4[%c0_8, %c0_9, %c0_10] : memref<1x16x32xf32, #tpu.memory_space<vmem>>, vector<1x16x32xf32>
    %7 = vector.shape_cast %6 : vector<1x16x32xf32> to vector<16x32xf32>
    %8 = arith.addf %1, %3 : vector<8x32xf32>
    %9 = arith.truncf %8 : vector<8x32xf32> to vector<8x32xbf16>
    %c0_11 = arith.constant 0 : index
    %c0_12 = arith.constant 0 : index
    %10 = vector.load %arg5[%c0_11, %c0_12] : memref<32x64xbf16, #tpu.memory_space<vmem>>, vector<32x64xbf16>
    %cst = arith.constant dense<0.000000e+00> : vector<8x64xf32>
    %11 = tpu.matmul %9, %10, %cst {dimension_numbers = #tpu.dot_dimension_numbers<[1], [0], [0], [1], [0, 0, 1, 1], [], []>} : vector<8x32xbf16>, vector<32x64xbf16>, vector<8x64xf32> -> vector<8x64xf32>
    %c0_13 = arith.constant 0 : index
    %c0_14 = arith.constant 0 : index
    %12 = vector.load %arg6[%c0_13, %c0_14] : memref<1x64xf32, #tpu.memory_space<vmem>>, vector<1x64xf32>
    %13 = vector.broadcast %12 : vector<1x64xf32> to vector<8x64xf32>
    %14 = arith.addf %11, %13 : vector<8x64xf32>
    %15 = arith.truncf %1 : vector<8x32xf32> to vector<8x32xbf16>
    %c0_15 = arith.constant 0 : index
    %c0_16 = arith.constant 0 : index
    %16 = vector.load %arg7[%c0_15, %c0_16] : memref<32x32xbf16, #tpu.memory_space<vmem>>, vector<32x32xbf16>
    %cst_17 = arith.constant dense<0.000000e+00> : vector<8x32xf32>
    %17 = tpu.matmul %15, %16, %cst_17 {dimension_numbers = #tpu.dot_dimension_numbers<[1], [0], [0], [1], [0, 0, 1, 1], [], []>} : vector<8x32xbf16>, vector<32x32xbf16>, vector<8x32xf32> -> vector<8x32xf32>
    %c0_18 = arith.constant 0 : index
    %c0_19 = arith.constant 0 : index
    %18 = vector.load %arg8[%c0_18, %c0_19] : memref<1x32xf32, #tpu.memory_space<vmem>>, vector<1x32xf32>
    %19 = vector.broadcast %18 : vector<1x32xf32> to vector<8x32xf32>
    %20 = arith.addf %17, %19 : vector<8x32xf32>
    %21 = vector.extract_strided_slice %14 {offsets = [0, 0], sizes = [8, 32], strides = [1, 1]} : vector<8x64xf32> to vector<8x32xf32>
    %22 = vector.extract_strided_slice %14 {offsets = [0, 32], sizes = [8, 32], strides = [1, 1]} : vector<8x64xf32> to vector<8x32xf32>
    %cst_20 = arith.constant 0.000000e+00 : f32
    %23 = vector.broadcast %cst_20 : f32 to vector<8x32xf32>
    %24 = vector.extract_strided_slice %21 {offsets = [0, 0], sizes = [8, 8], strides = [1, 1]} : vector<8x32xf32> to vector<8x8xf32>
    %25 = arith.truncf %24 : vector<8x8xf32> to vector<8x8xbf16>
    %26 = vector.extract_strided_slice %22 {offsets = [0, 0], sizes = [8, 8], strides = [1, 1]} : vector<8x32xf32> to vector<8x8xf32>
    %27 = arith.truncf %26 : vector<8x8xf32> to vector<8x8xbf16>
    %cst_21 = arith.constant dense<0.000000e+00> : vector<8x8xf32>
    %28 = tpu.matmul %25, %27, %cst_21 {dimension_numbers = #tpu.dot_dimension_numbers<[1], [1], [0], [0], [0, 0, 1, 0], [], []>} : vector<8x8xbf16>, vector<8x8xbf16>, vector<8x8xf32> -> vector<8x8xf32>
    %cst_22 = arith.constant dense<0xFF800000> : vector<8xf32>
    %29 = vector.multi_reduction <maximumf>, %28, %cst_22 [1] : vector<8x8xf32> to vector<8xf32>
    %30 = vector.shape_cast %29 : vector<8xf32> to vector<8x1xf32>
    %31 = vector.broadcast %30 : vector<8x1xf32> to vector<8x8xf32>
    %32 = arith.subf %28, %31 : vector<8x8xf32>
    %33 = math.exp %32 : vector<8x8xf32>
    %cst_23 = arith.constant dense<0.000000e+00> : vector<8xf32>
    %34 = vector.multi_reduction <add>, %33, %cst_23 [1] : vector<8x8xf32> to vector<8xf32>
    %35 = vector.shape_cast %34 : vector<8xf32> to vector<8x1xf32>
    %36 = tpu.reciprocal %35 {approx = true} : vector<8x1xf32> -> vector<8x1xf32>
    %37 = vector.broadcast %36 : vector<8x1xf32> to vector<8x8xf32>
    %38 = arith.mulf %33, %37 : vector<8x8xf32>
    %39 = arith.truncf %38 : vector<8x8xf32> to vector<8x8xbf16>
    %40 = vector.extract_strided_slice %20 {offsets = [0, 0], sizes = [8, 8], strides = [1, 1]} : vector<8x32xf32> to vector<8x8xf32>
    %41 = arith.truncf %40 : vector<8x8xf32> to vector<8x8xbf16>
    %cst_24 = arith.constant dense<0.000000e+00> : vector<8x8xf32>
    %42 = tpu.matmul %39, %41, %cst_24 {dimension_numbers = #tpu.dot_dimension_numbers<[1], [0], [0], [1], [0, 0, 1, 1], [], []>} : vector<8x8xbf16>, vector<8x8xbf16>, vector<8x8xf32> -> vector<8x8xf32>
    %43 = arith.truncf %42 : vector<8x8xf32> to vector<8x8xbf16>
    %c0_25 = arith.constant 0 : index
    %c0_26 = arith.constant 0 : index
    %44 = vector.load %arg9[%c0_25, %c0_26] : memref<32x32xbf16, #tpu.memory_space<vmem>>, vector<8x32xbf16>
    %cst_27 = arith.constant dense<0.000000e+00> : vector<8x32xf32>
    %45 = tpu.matmul %43, %44, %cst_27 {dimension_numbers = #tpu.dot_dimension_numbers<[1], [0], [0], [1], [0, 0, 1, 1], [], []>} : vector<8x8xbf16>, vector<8x32xbf16>, vector<8x32xf32> -> vector<8x32xf32>
    %46 = arith.addf %23, %45 : vector<8x32xf32>
    %47 = vector.extract_strided_slice %21 {offsets = [0, 8], sizes = [8, 8], strides = [1, 1]} : vector<8x32xf32> to vector<8x8xf32>
    %48 = arith.truncf %47 : vector<8x8xf32> to vector<8x8xbf16>
    %49 = vector.extract_strided_slice %22 {offsets = [0, 8], sizes = [8, 8], strides = [1, 1]} : vector<8x32xf32> to vector<8x8xf32>
    %50 = arith.truncf %49 : vector<8x8xf32> to vector<8x8xbf16>
    %cst_28 = arith.constant dense<0.000000e+00> : vector<8x8xf32>
    %51 = tpu.matmul %48, %50, %cst_28 {dimension_numbers = #tpu.dot_dimension_numbers<[1], [1], [0], [0], [0, 0, 1, 0], [], []>} : vector<8x8xbf16>, vector<8x8xbf16>, vector<8x8xf32> -> vector<8x8xf32>
    %cst_29 = arith.constant dense<0xFF800000> : vector<8xf32>
    %52 = vector.multi_reduction <maximumf>, %51, %cst_29 [1] : vector<8x8xf32> to vector<8xf32>
    %53 = vector.shape_cast %52 : vector<8xf32> to vector<8x1xf32>
    %54 = vector.broadcast %53 : vector<8x1xf32> to vector<8x8xf32>
    %55 = arith.subf %51, %54 : vector<8x8xf32>
    %56 = math.exp %55 : vector<8x8xf32>
    %cst_30 = arith.constant dense<0.000000e+00> : vector<8xf32>
    %57 = vector.multi_reduction <add>, %56, %cst_30 [1] : vector<8x8xf32> to vector<8xf32>
    %58 = vector.shape_cast %57 : vector<8xf32> to vector<8x1xf32>
    %59 = tpu.reciprocal %58 {approx = true} : vector<8x1xf32> -> vector<8x1xf32>
    %60 = vector.broadcast %59 : vector<8x1xf32> to vector<8x8xf32>
    %61 = arith.mulf %56, %60 : vector<8x8xf32>
    %62 = arith.truncf %61 : vector<8x8xf32> to vector<8x8xbf16>
    %63 = vector.extract_strided_slice %20 {offsets = [0, 8], sizes = [8, 8], strides = [1, 1]} : vector<8x32xf32> to vector<8x8xf32>
    %64 = arith.truncf %63 : vector<8x8xf32> to vector<8x8xbf16>
    %cst_31 = arith.constant dense<0.000000e+00> : vector<8x8xf32>
    %65 = tpu.matmul %62, %64, %cst_31 {dimension_numbers = #tpu.dot_dimension_numbers<[1], [0], [0], [1], [0, 0, 1, 1], [], []>} : vector<8x8xbf16>, vector<8x8xbf16>, vector<8x8xf32> -> vector<8x8xf32>
    %66 = arith.truncf %65 : vector<8x8xf32> to vector<8x8xbf16>
    %c8 = arith.constant 8 : index
    %c0_32 = arith.constant 0 : index
    %67 = vector.load %arg9[%c8, %c0_32] : memref<32x32xbf16, #tpu.memory_space<vmem>>, vector<8x32xbf16>
    %cst_33 = arith.constant dense<0.000000e+00> : vector<8x32xf32>
    %68 = tpu.matmul %66, %67, %cst_33 {dimension_numbers = #tpu.dot_dimension_numbers<[1], [0], [0], [1], [0, 0, 1, 1], [], []>} : vector<8x8xbf16>, vector<8x32xbf16>, vector<8x32xf32> -> vector<8x32xf32>
    %69 = arith.addf %46, %68 : vector<8x32xf32>
    %70 = vector.extract_strided_slice %21 {offsets = [0, 16], sizes = [8, 8], strides = [1, 1]} : vector<8x32xf32> to vector<8x8xf32>
    %71 = arith.truncf %70 : vector<8x8xf32> to vector<8x8xbf16>
    %72 = vector.extract_strided_slice %22 {offsets = [0, 16], sizes = [8, 8], strides = [1, 1]} : vector<8x32xf32> to vector<8x8xf32>
    %73 = arith.truncf %72 : vector<8x8xf32> to vector<8x8xbf16>
    %cst_34 = arith.constant dense<0.000000e+00> : vector<8x8xf32>
    %74 = tpu.matmul %71, %73, %cst_34 {dimension_numbers = #tpu.dot_dimension_numbers<[1], [1], [0], [0], [0, 0, 1, 0], [], []>} : vector<8x8xbf16>, vector<8x8xbf16>, vector<8x8xf32> -> vector<8x8xf32>
    %cst_35 = arith.constant dense<0xFF800000> : vector<8xf32>
    %75 = vector.multi_reduction <maximumf>, %74, %cst_35 [1] : vector<8x8xf32> to vector<8xf32>
    %76 = vector.shape_cast %75 : vector<8xf32> to vector<8x1xf32>
    %77 = vector.broadcast %76 : vector<8x1xf32> to vector<8x8xf32>
    %78 = arith.subf %74, %77 : vector<8x8xf32>
    %79 = math.exp %78 : vector<8x8xf32>
    %cst_36 = arith.constant dense<0.000000e+00> : vector<8xf32>
    %80 = vector.multi_reduction <add>, %79, %cst_36 [1] : vector<8x8xf32> to vector<8xf32>
    %81 = vector.shape_cast %80 : vector<8xf32> to vector<8x1xf32>
    %82 = tpu.reciprocal %81 {approx = true} : vector<8x1xf32> -> vector<8x1xf32>
    %83 = vector.broadcast %82 : vector<8x1xf32> to vector<8x8xf32>
    %84 = arith.mulf %79, %83 : vector<8x8xf32>
    %85 = arith.truncf %84 : vector<8x8xf32> to vector<8x8xbf16>
    %86 = vector.extract_strided_slice %20 {offsets = [0, 16], sizes = [8, 8], strides = [1, 1]} : vector<8x32xf32> to vector<8x8xf32>
    %87 = arith.truncf %86 : vector<8x8xf32> to vector<8x8xbf16>
    %cst_37 = arith.constant dense<0.000000e+00> : vector<8x8xf32>
    %88 = tpu.matmul %85, %87, %cst_37 {dimension_numbers = #tpu.dot_dimension_numbers<[1], [0], [0], [1], [0, 0, 1, 1], [], []>} : vector<8x8xbf16>, vector<8x8xbf16>, vector<8x8xf32> -> vector<8x8xf32>
    %89 = arith.truncf %88 : vector<8x8xf32> to vector<8x8xbf16>
    %c16 = arith.constant 16 : index
    %c0_38 = arith.constant 0 : index
    %90 = vector.load %arg9[%c16, %c0_38] : memref<32x32xbf16, #tpu.memory_space<vmem>>, vector<8x32xbf16>
    %cst_39 = arith.constant dense<0.000000e+00> : vector<8x32xf32>
    %91 = tpu.matmul %89, %90, %cst_39 {dimension_numbers = #tpu.dot_dimension_numbers<[1], [0], [0], [1], [0, 0, 1, 1], [], []>} : vector<8x8xbf16>, vector<8x32xbf16>, vector<8x32xf32> -> vector<8x32xf32>
    %92 = arith.addf %69, %91 : vector<8x32xf32>
    %93 = vector.extract_strided_slice %21 {offsets = [0, 24], sizes = [8, 8], strides = [1, 1]} : vector<8x32xf32> to vector<8x8xf32>
    %94 = arith.truncf %93 : vector<8x8xf32> to vector<8x8xbf16>
    %95 = vector.extract_strided_slice %22 {offsets = [0, 24], sizes = [8, 8], strides = [1, 1]} : vector<8x32xf32> to vector<8x8xf32>
    %96 = arith.truncf %95 : vector<8x8xf32> to vector<8x8xbf16>
    %cst_40 = arith.constant dense<0.000000e+00> : vector<8x8xf32>
    %97 = tpu.matmul %94, %96, %cst_40 {dimension_numbers = #tpu.dot_dimension_numbers<[1], [1], [0], [0], [0, 0, 1, 0], [], []>} : vector<8x8xbf16>, vector<8x8xbf16>, vector<8x8xf32> -> vector<8x8xf32>
    %cst_41 = arith.constant dense<0xFF800000> : vector<8xf32>
    %98 = vector.multi_reduction <maximumf>, %97, %cst_41 [1] : vector<8x8xf32> to vector<8xf32>
    %99 = vector.shape_cast %98 : vector<8xf32> to vector<8x1xf32>
    %100 = vector.broadcast %99 : vector<8x1xf32> to vector<8x8xf32>
    %101 = arith.subf %97, %100 : vector<8x8xf32>
    %102 = math.exp %101 : vector<8x8xf32>
    %cst_42 = arith.constant dense<0.000000e+00> : vector<8xf32>
    %103 = vector.multi_reduction <add>, %102, %cst_42 [1] : vector<8x8xf32> to vector<8xf32>
    %104 = vector.shape_cast %103 : vector<8xf32> to vector<8x1xf32>
    %105 = tpu.reciprocal %104 {approx = true} : vector<8x1xf32> -> vector<8x1xf32>
    %106 = vector.broadcast %105 : vector<8x1xf32> to vector<8x8xf32>
    %107 = arith.mulf %102, %106 : vector<8x8xf32>
    %108 = arith.truncf %107 : vector<8x8xf32> to vector<8x8xbf16>
    %109 = vector.extract_strided_slice %20 {offsets = [0, 24], sizes = [8, 8], strides = [1, 1]} : vector<8x32xf32> to vector<8x8xf32>
    %110 = arith.truncf %109 : vector<8x8xf32> to vector<8x8xbf16>
    %cst_43 = arith.constant dense<0.000000e+00> : vector<8x8xf32>
    %111 = tpu.matmul %108, %110, %cst_43 {dimension_numbers = #tpu.dot_dimension_numbers<[1], [0], [0], [1], [0, 0, 1, 1], [], []>} : vector<8x8xbf16>, vector<8x8xbf16>, vector<8x8xf32> -> vector<8x8xf32>
    %112 = arith.truncf %111 : vector<8x8xf32> to vector<8x8xbf16>
    %c24 = arith.constant 24 : index
    %c0_44 = arith.constant 0 : index
    %113 = vector.load %arg9[%c24, %c0_44] : memref<32x32xbf16, #tpu.memory_space<vmem>>, vector<8x32xbf16>
    %cst_45 = arith.constant dense<0.000000e+00> : vector<8x32xf32>
    %114 = tpu.matmul %112, %113, %cst_45 {dimension_numbers = #tpu.dot_dimension_numbers<[1], [0], [0], [1], [0, 0, 1, 1], [], []>} : vector<8x8xbf16>, vector<8x32xbf16>, vector<8x32xf32> -> vector<8x32xf32>
    %115 = arith.addf %92, %114 : vector<8x32xf32>
    %c0_46 = arith.constant 0 : index
    %c0_47 = arith.constant 0 : index
    %116 = vector.load %arg10[%c0_46, %c0_47] : memref<1x32xf32, #tpu.memory_space<vmem>>, vector<1x32xf32>
    %117 = vector.broadcast %116 : vector<1x32xf32> to vector<8x32xf32>
    %118 = arith.addf %115, %117 : vector<8x32xf32>
    %119 = arith.addf %1, %118 : vector<8x32xf32>
    %c0_48 = arith.constant 0 : index
    %c0_49 = arith.constant 0 : index
    %c0_50 = arith.constant 0 : index
    %120 = vector.load %arg19[%c0_48, %c0_49, %c0_50] : memref<3x1x32xf32, #tpu.memory_space<vmem>>, vector<1x1x32xf32>
    %121 = vector.shape_cast %120 : vector<1x1x32xf32> to vector<1x32xf32>
    %c0_51 = arith.constant 0 : index
    %c0_52 = arith.constant 0 : index
    %c0_53 = arith.constant 0 : index
    %122 = vector.load %arg20[%c0_51, %c0_52, %c0_53] : memref<3x1x32xf32, #tpu.memory_space<vmem>>, vector<1x1x32xf32>
    %123 = vector.shape_cast %122 : vector<1x1x32xf32> to vector<1x32xf32>
    %cst_54 = arith.constant dense<0.000000e+00> : vector<8xf32>
    %124 = vector.multi_reduction <add>, %119, %cst_54 [1] : vector<8x32xf32> to vector<8xf32>
    %125 = vector.shape_cast %124 : vector<8xf32> to vector<8x1xf32>
    %cst_55 = arith.constant 3.200000e+01 : f32
    %126 = vector.broadcast %cst_55 : f32 to vector<8x1xf32>
    %127 = arith.divf %125, %126 : vector<8x1xf32>
    %128 = vector.broadcast %127 : vector<8x1xf32> to vector<8x32xf32>
    %129 = arith.subf %119, %128 : vector<8x32xf32>
    %130 = arith.mulf %129, %129 : vector<8x32xf32>
    %cst_56 = arith.constant dense<0.000000e+00> : vector<8xf32>
    %131 = vector.multi_reduction <add>, %130, %cst_56 [1] : vector<8x32xf32> to vector<8xf32>
    %132 = vector.shape_cast %131 : vector<8xf32> to vector<8x1xf32>
    %cst_57 = arith.constant 3.200000e+01 : f32
    %133 = vector.broadcast %cst_57 : f32 to vector<8x1xf32>
    %134 = arith.divf %132, %133 : vector<8x1xf32>
    %135 = vector.broadcast %127 : vector<8x1xf32> to vector<8x32xf32>
    %136 = arith.subf %119, %135 : vector<8x32xf32>
    %cst_58 = arith.constant 9.99999974E-6 : f32
    %137 = vector.broadcast %cst_58 : f32 to vector<8x1xf32>
    %138 = arith.addf %134, %137 : vector<8x1xf32>
    %139 = math.rsqrt %138 : vector<8x1xf32>
    %140 = vector.broadcast %139 : vector<8x1xf32> to vector<8x32xf32>
    %141 = arith.mulf %136, %140 : vector<8x32xf32>
    %142 = vector.broadcast %121 : vector<1x32xf32> to vector<8x32xf32>
    %143 = arith.mulf %141, %142 : vector<8x32xf32>
    %144 = vector.broadcast %123 : vector<1x32xf32> to vector<8x32xf32>
    %145 = arith.addf %143, %144 : vector<8x32xf32>
    %146 = arith.addf %145, %3 : vector<8x32xf32>
    %147 = arith.truncf %146 : vector<8x32xf32> to vector<8x32xbf16>
    %c0_59 = arith.constant 0 : index
    %c0_60 = arith.constant 0 : index
    %148 = vector.load %arg11[%c0_59, %c0_60] : memref<32x32xbf16, #tpu.memory_space<vmem>>, vector<32x32xbf16>
    %cst_61 = arith.constant dense<0.000000e+00> : vector<8x32xf32>
    %149 = tpu.matmul %147, %148, %cst_61 {dimension_numbers = #tpu.dot_dimension_numbers<[1], [0], [0], [1], [0, 0, 1, 1], [], []>} : vector<8x32xbf16>, vector<32x32xbf16>, vector<8x32xf32> -> vector<8x32xf32>
    %c0_62 = arith.constant 0 : index
    %c0_63 = arith.constant 0 : index
    %150 = vector.load %arg12[%c0_62, %c0_63] : memref<1x32xf32, #tpu.memory_space<vmem>>, vector<1x32xf32>
    %151 = vector.broadcast %150 : vector<1x32xf32> to vector<8x32xf32>
    %152 = arith.addf %149, %151 : vector<8x32xf32>
    %153 = arith.addf %5, %7 : vector<16x32xf32>
    %154 = arith.truncf %153 : vector<16x32xf32> to vector<16x32xbf16>
    %c0_64 = arith.constant 0 : index
    %c0_65 = arith.constant 0 : index
    %155 = vector.load %arg13[%c0_64, %c0_65] : memref<32x32xbf16, #tpu.memory_space<vmem>>, vector<32x32xbf16>
    %cst_66 = arith.constant dense<0.000000e+00> : vector<16x32xf32>
    %156 = tpu.matmul %154, %155, %cst_66 {dimension_numbers = #tpu.dot_dimension_numbers<[1], [0], [0], [1], [0, 0, 1, 1], [], []>} : vector<16x32xbf16>, vector<32x32xbf16>, vector<16x32xf32> -> vector<16x32xf32>
    %c0_67 = arith.constant 0 : index
    %c0_68 = arith.constant 0 : index
    %157 = vector.load %arg14[%c0_67, %c0_68] : memref<1x32xf32, #tpu.memory_space<vmem>>, vector<1x32xf32>
    %158 = vector.broadcast %157 : vector<1x32xf32> to vector<16x32xf32>
    %159 = arith.addf %156, %158 : vector<16x32xf32>
    %160 = arith.truncf %5 : vector<16x32xf32> to vector<16x32xbf16>
    %c0_69 = arith.constant 0 : index
    %c0_70 = arith.constant 0 : index
    %161 = vector.load %arg15[%c0_69, %c0_70] : memref<32x32xbf16, #tpu.memory_space<vmem>>, vector<32x32xbf16>
    %cst_71 = arith.constant dense<0.000000e+00> : vector<16x32xf32>
    %162 = tpu.matmul %160, %161, %cst_71 {dimension_numbers = #tpu.dot_dimension_numbers<[1], [0], [0], [1], [0, 0, 1, 1], [], []>} : vector<16x32xbf16>, vector<32x32xbf16>, vector<16x32xf32> -> vector<16x32xf32>
    %c0_72 = arith.constant 0 : index
    %c0_73 = arith.constant 0 : index
    %163 = vector.load %arg16[%c0_72, %c0_73] : memref<1x32xf32, #tpu.memory_space<vmem>>, vector<1x32xf32>
    %164 = vector.broadcast %163 : vector<1x32xf32> to vector<16x32xf32>
    %165 = arith.addf %162, %164 : vector<16x32xf32>
    %cst_74 = arith.constant 0.000000e+00 : f32
    %166 = vector.broadcast %cst_74 : f32 to vector<8x32xf32>
    %167 = vector.extract_strided_slice %152 {offsets = [0, 0], sizes = [8, 8], strides = [1, 1]} : vector<8x32xf32> to vector<8x8xf32>
    %168 = arith.truncf %167 : vector<8x8xf32> to vector<8x8xbf16>
    %169 = vector.extract_strided_slice %159 {offsets = [0, 0], sizes = [16, 8], strides = [1, 1]} : vector<16x32xf32> to vector<16x8xf32>
    %170 = arith.truncf %169 : vector<16x8xf32> to vector<16x8xbf16>
    %cst_75 = arith.constant dense<0.000000e+00> : vector<8x16xf32>
    %171 = tpu.matmul %168, %170, %cst_75 {dimension_numbers = #tpu.dot_dimension_numbers<[1], [1], [0], [0], [0, 0, 1, 0], [], []>} : vector<8x8xbf16>, vector<16x8xbf16>, vector<8x16xf32> -> vector<8x16xf32>
    %cst_76 = arith.constant dense<0xFF800000> : vector<8xf32>
    %172 = vector.multi_reduction <maximumf>, %171, %cst_76 [1] : vector<8x16xf32> to vector<8xf32>
    %173 = vector.shape_cast %172 : vector<8xf32> to vector<8x1xf32>
    %174 = vector.broadcast %173 : vector<8x1xf32> to vector<8x16xf32>
    %175 = arith.subf %171, %174 : vector<8x16xf32>
    %176 = math.exp %175 : vector<8x16xf32>
    %cst_77 = arith.constant dense<0.000000e+00> : vector<8xf32>
    %177 = vector.multi_reduction <add>, %176, %cst_77 [1] : vector<8x16xf32> to vector<8xf32>
    %178 = vector.shape_cast %177 : vector<8xf32> to vector<8x1xf32>
    %179 = tpu.reciprocal %178 {approx = true} : vector<8x1xf32> -> vector<8x1xf32>
    %180 = vector.broadcast %179 : vector<8x1xf32> to vector<8x16xf32>
    %181 = arith.mulf %176, %180 : vector<8x16xf32>
    %182 = arith.truncf %181 : vector<8x16xf32> to vector<8x16xbf16>
    %183 = vector.extract_strided_slice %165 {offsets = [0, 0], sizes = [16, 8], strides = [1, 1]} : vector<16x32xf32> to vector<16x8xf32>
    %184 = arith.truncf %183 : vector<16x8xf32> to vector<16x8xbf16>
    %cst_78 = arith.constant dense<0.000000e+00> : vector<8x8xf32>
    %185 = tpu.matmul %182, %184, %cst_78 {dimension_numbers = #tpu.dot_dimension_numbers<[1], [0], [0], [1], [0, 0, 1, 1], [], []>} : vector<8x16xbf16>, vector<16x8xbf16>, vector<8x8xf32> -> vector<8x8xf32>
    %186 = arith.truncf %185 : vector<8x8xf32> to vector<8x8xbf16>
    %c0_79 = arith.constant 0 : index
    %c0_80 = arith.constant 0 : index
    %187 = vector.load %arg17[%c0_79, %c0_80] : memref<32x32xbf16, #tpu.memory_space<vmem>>, vector<8x32xbf16>
    %cst_81 = arith.constant dense<0.000000e+00> : vector<8x32xf32>
    %188 = tpu.matmul %186, %187, %cst_81 {dimension_numbers = #tpu.dot_dimension_numbers<[1], [0], [0], [1], [0, 0, 1, 1], [], []>} : vector<8x8xbf16>, vector<8x32xbf16>, vector<8x32xf32> -> vector<8x32xf32>
    %189 = arith.addf %166, %188 : vector<8x32xf32>
    %190 = vector.extract_strided_slice %152 {offsets = [0, 8], sizes = [8, 8], strides = [1, 1]} : vector<8x32xf32> to vector<8x8xf32>
    %191 = arith.truncf %190 : vector<8x8xf32> to vector<8x8xbf16>
    %192 = vector.extract_strided_slice %159 {offsets = [0, 8], sizes = [16, 8], strides = [1, 1]} : vector<16x32xf32> to vector<16x8xf32>
    %193 = arith.truncf %192 : vector<16x8xf32> to vector<16x8xbf16>
    %cst_82 = arith.constant dense<0.000000e+00> : vector<8x16xf32>
    %194 = tpu.matmul %191, %193, %cst_82 {dimension_numbers = #tpu.dot_dimension_numbers<[1], [1], [0], [0], [0, 0, 1, 0], [], []>} : vector<8x8xbf16>, vector<16x8xbf16>, vector<8x16xf32> -> vector<8x16xf32>
    %cst_83 = arith.constant dense<0xFF800000> : vector<8xf32>
    %195 = vector.multi_reduction <maximumf>, %194, %cst_83 [1] : vector<8x16xf32> to vector<8xf32>
    %196 = vector.shape_cast %195 : vector<8xf32> to vector<8x1xf32>
    %197 = vector.broadcast %196 : vector<8x1xf32> to vector<8x16xf32>
    %198 = arith.subf %194, %197 : vector<8x16xf32>
    %199 = math.exp %198 : vector<8x16xf32>
    %cst_84 = arith.constant dense<0.000000e+00> : vector<8xf32>
    %200 = vector.multi_reduction <add>, %199, %cst_84 [1] : vector<8x16xf32> to vector<8xf32>
    %201 = vector.shape_cast %200 : vector<8xf32> to vector<8x1xf32>
    %202 = tpu.reciprocal %201 {approx = true} : vector<8x1xf32> -> vector<8x1xf32>
    %203 = vector.broadcast %202 : vector<8x1xf32> to vector<8x16xf32>
    %204 = arith.mulf %199, %203 : vector<8x16xf32>
    %205 = arith.truncf %204 : vector<8x16xf32> to vector<8x16xbf16>
    %206 = vector.extract_strided_slice %165 {offsets = [0, 8], sizes = [16, 8], strides = [1, 1]} : vector<16x32xf32> to vector<16x8xf32>
    %207 = arith.truncf %206 : vector<16x8xf32> to vector<16x8xbf16>
    %cst_85 = arith.constant dense<0.000000e+00> : vector<8x8xf32>
    %208 = tpu.matmul %205, %207, %cst_85 {dimension_numbers = #tpu.dot_dimension_numbers<[1], [0], [0], [1], [0, 0, 1, 1], [], []>} : vector<8x16xbf16>, vector<16x8xbf16>, vector<8x8xf32> -> vector<8x8xf32>
    %209 = arith.truncf %208 : vector<8x8xf32> to vector<8x8xbf16>
    %c8_86 = arith.constant 8 : index
    %c0_87 = arith.constant 0 : index
    %210 = vector.load %arg17[%c8_86, %c0_87] : memref<32x32xbf16, #tpu.memory_space<vmem>>, vector<8x32xbf16>
    %cst_88 = arith.constant dense<0.000000e+00> : vector<8x32xf32>
    %211 = tpu.matmul %209, %210, %cst_88 {dimension_numbers = #tpu.dot_dimension_numbers<[1], [0], [0], [1], [0, 0, 1, 1], [], []>} : vector<8x8xbf16>, vector<8x32xbf16>, vector<8x32xf32> -> vector<8x32xf32>
    %212 = arith.addf %189, %211 : vector<8x32xf32>
    %213 = vector.extract_strided_slice %152 {offsets = [0, 16], sizes = [8, 8], strides = [1, 1]} : vector<8x32xf32> to vector<8x8xf32>
    %214 = arith.truncf %213 : vector<8x8xf32> to vector<8x8xbf16>
    %215 = vector.extract_strided_slice %159 {offsets = [0, 16], sizes = [16, 8], strides = [1, 1]} : vector<16x32xf32> to vector<16x8xf32>
    %216 = arith.truncf %215 : vector<16x8xf32> to vector<16x8xbf16>
    %cst_89 = arith.constant dense<0.000000e+00> : vector<8x16xf32>
    %217 = tpu.matmul %214, %216, %cst_89 {dimension_numbers = #tpu.dot_dimension_numbers<[1], [1], [0], [0], [0, 0, 1, 0], [], []>} : vector<8x8xbf16>, vector<16x8xbf16>, vector<8x16xf32> -> vector<8x16xf32>
    %cst_90 = arith.constant dense<0xFF800000> : vector<8xf32>
    %218 = vector.multi_reduction <maximumf>, %217, %cst_90 [1] : vector<8x16xf32> to vector<8xf32>
    %219 = vector.shape_cast %218 : vector<8xf32> to vector<8x1xf32>
    %220 = vector.broadcast %219 : vector<8x1xf32> to vector<8x16xf32>
    %221 = arith.subf %217, %220 : vector<8x16xf32>
    %222 = math.exp %221 : vector<8x16xf32>
    %cst_91 = arith.constant dense<0.000000e+00> : vector<8xf32>
    %223 = vector.multi_reduction <add>, %222, %cst_91 [1] : vector<8x16xf32> to vector<8xf32>
    %224 = vector.shape_cast %223 : vector<8xf32> to vector<8x1xf32>
    %225 = tpu.reciprocal %224 {approx = true} : vector<8x1xf32> -> vector<8x1xf32>
    %226 = vector.broadcast %225 : vector<8x1xf32> to vector<8x16xf32>
    %227 = arith.mulf %222, %226 : vector<8x16xf32>
    %228 = arith.truncf %227 : vector<8x16xf32> to vector<8x16xbf16>
    %229 = vector.extract_strided_slice %165 {offsets = [0, 16], sizes = [16, 8], strides = [1, 1]} : vector<16x32xf32> to vector<16x8xf32>
    %230 = arith.truncf %229 : vector<16x8xf32> to vector<16x8xbf16>
    %cst_92 = arith.constant dense<0.000000e+00> : vector<8x8xf32>
    %231 = tpu.matmul %228, %230, %cst_92 {dimension_numbers = #tpu.dot_dimension_numbers<[1], [0], [0], [1], [0, 0, 1, 1], [], []>} : vector<8x16xbf16>, vector<16x8xbf16>, vector<8x8xf32> -> vector<8x8xf32>
    %232 = arith.truncf %231 : vector<8x8xf32> to vector<8x8xbf16>
    %c16_93 = arith.constant 16 : index
    %c0_94 = arith.constant 0 : index
    %233 = vector.load %arg17[%c16_93, %c0_94] : memref<32x32xbf16, #tpu.memory_space<vmem>>, vector<8x32xbf16>
    %cst_95 = arith.constant dense<0.000000e+00> : vector<8x32xf32>
    %234 = tpu.matmul %232, %233, %cst_95 {dimension_numbers = #tpu.dot_dimension_numbers<[1], [0], [0], [1], [0, 0, 1, 1], [], []>} : vector<8x8xbf16>, vector<8x32xbf16>, vector<8x32xf32> -> vector<8x32xf32>
    %235 = arith.addf %212, %234 : vector<8x32xf32>
    %236 = vector.extract_strided_slice %152 {offsets = [0, 24], sizes = [8, 8], strides = [1, 1]} : vector<8x32xf32> to vector<8x8xf32>
    %237 = arith.truncf %236 : vector<8x8xf32> to vector<8x8xbf16>
    %238 = vector.extract_strided_slice %159 {offsets = [0, 24], sizes = [16, 8], strides = [1, 1]} : vector<16x32xf32> to vector<16x8xf32>
    %239 = arith.truncf %238 : vector<16x8xf32> to vector<16x8xbf16>
    %cst_96 = arith.constant dense<0.000000e+00> : vector<8x16xf32>
    %240 = tpu.matmul %237, %239, %cst_96 {dimension_numbers = #tpu.dot_dimension_numbers<[1], [1], [0], [0], [0, 0, 1, 0], [], []>} : vector<8x8xbf16>, vector<16x8xbf16>, vector<8x16xf32> -> vector<8x16xf32>
    %cst_97 = arith.constant dense<0xFF800000> : vector<8xf32>
    %241 = vector.multi_reduction <maximumf>, %240, %cst_97 [1] : vector<8x16xf32> to vector<8xf32>
    %242 = vector.shape_cast %241 : vector<8xf32> to vector<8x1xf32>
    %243 = vector.broadcast %242 : vector<8x1xf32> to vector<8x16xf32>
    %244 = arith.subf %240, %243 : vector<8x16xf32>
    %245 = math.exp %244 : vector<8x16xf32>
    %cst_98 = arith.constant dense<0.000000e+00> : vector<8xf32>
    %246 = vector.multi_reduction <add>, %245, %cst_98 [1] : vector<8x16xf32> to vector<8xf32>
    %247 = vector.shape_cast %246 : vector<8xf32> to vector<8x1xf32>
    %248 = tpu.reciprocal %247 {approx = true} : vector<8x1xf32> -> vector<8x1xf32>
    %249 = vector.broadcast %248 : vector<8x1xf32> to vector<8x16xf32>
    %250 = arith.mulf %245, %249 : vector<8x16xf32>
    %251 = arith.truncf %250 : vector<8x16xf32> to vector<8x16xbf16>
    %252 = vector.extract_strided_slice %165 {offsets = [0, 24], sizes = [16, 8], strides = [1, 1]} : vector<16x32xf32> to vector<16x8xf32>
    %253 = arith.truncf %252 : vector<16x8xf32> to vector<16x8xbf16>
    %cst_99 = arith.constant dense<0.000000e+00> : vector<8x8xf32>
    %254 = tpu.matmul %251, %253, %cst_99 {dimension_numbers = #tpu.dot_dimension_numbers<[1], [0], [0], [1], [0, 0, 1, 1], [], []>} : vector<8x16xbf16>, vector<16x8xbf16>, vector<8x8xf32> -> vector<8x8xf32>
    %255 = arith.truncf %254 : vector<8x8xf32> to vector<8x8xbf16>
    %c24_100 = arith.constant 24 : index
    %c0_101 = arith.constant 0 : index
    %256 = vector.load %arg17[%c24_100, %c0_101] : memref<32x32xbf16, #tpu.memory_space<vmem>>, vector<8x32xbf16>
    %cst_102 = arith.constant dense<0.000000e+00> : vector<8x32xf32>
    %257 = tpu.matmul %255, %256, %cst_102 {dimension_numbers = #tpu.dot_dimension_numbers<[1], [0], [0], [1], [0, 0, 1, 1], [], []>} : vector<8x8xbf16>, vector<8x32xbf16>, vector<8x32xf32> -> vector<8x32xf32>
    %258 = arith.addf %235, %257 : vector<8x32xf32>
    %c0_103 = arith.constant 0 : index
    %c0_104 = arith.constant 0 : index
    %259 = vector.load %arg18[%c0_103, %c0_104] : memref<1x32xf32, #tpu.memory_space<vmem>>, vector<1x32xf32>
    %260 = vector.broadcast %259 : vector<1x32xf32> to vector<8x32xf32>
    %261 = arith.addf %258, %260 : vector<8x32xf32>
    %262 = arith.addf %145, %261 : vector<8x32xf32>
    %c1 = arith.constant 1 : index
    %c0_105 = arith.constant 0 : index
    %c0_106 = arith.constant 0 : index
    %263 = vector.load %arg19[%c1, %c0_105, %c0_106] : memref<3x1x32xf32, #tpu.memory_space<vmem>>, vector<1x1x32xf32>
    %264 = vector.shape_cast %263 : vector<1x1x32xf32> to vector<1x32xf32>
    %c1_107 = arith.constant 1 : index
    %c0_108 = arith.constant 0 : index
    %c0_109 = arith.constant 0 : index
    %265 = vector.load %arg20[%c1_107, %c0_108, %c0_109] : memref<3x1x32xf32, #tpu.memory_space<vmem>>, vector<1x1x32xf32>
    %266 = vector.shape_cast %265 : vector<1x1x32xf32> to vector<1x32xf32>
    %cst_110 = arith.constant dense<0.000000e+00> : vector<8xf32>
    %267 = vector.multi_reduction <add>, %262, %cst_110 [1] : vector<8x32xf32> to vector<8xf32>
    %268 = vector.shape_cast %267 : vector<8xf32> to vector<8x1xf32>
    %cst_111 = arith.constant 3.200000e+01 : f32
    %269 = vector.broadcast %cst_111 : f32 to vector<8x1xf32>
    %270 = arith.divf %268, %269 : vector<8x1xf32>
    %271 = vector.broadcast %270 : vector<8x1xf32> to vector<8x32xf32>
    %272 = arith.subf %262, %271 : vector<8x32xf32>
    %273 = arith.mulf %272, %272 : vector<8x32xf32>
    %cst_112 = arith.constant dense<0.000000e+00> : vector<8xf32>
    %274 = vector.multi_reduction <add>, %273, %cst_112 [1] : vector<8x32xf32> to vector<8xf32>
    %275 = vector.shape_cast %274 : vector<8xf32> to vector<8x1xf32>
    %cst_113 = arith.constant 3.200000e+01 : f32
    %276 = vector.broadcast %cst_113 : f32 to vector<8x1xf32>
    %277 = arith.divf %275, %276 : vector<8x1xf32>
    %278 = vector.broadcast %270 : vector<8x1xf32> to vector<8x32xf32>
    %279 = arith.subf %262, %278 : vector<8x32xf32>
    %cst_114 = arith.constant 9.99999974E-6 : f32
    %280 = vector.broadcast %cst_114 : f32 to vector<8x1xf32>
    %281 = arith.addf %277, %280 : vector<8x1xf32>
    %282 = math.rsqrt %281 : vector<8x1xf32>
    %283 = vector.broadcast %282 : vector<8x1xf32> to vector<8x32xf32>
    %284 = arith.mulf %279, %283 : vector<8x32xf32>
    %285 = vector.broadcast %264 : vector<1x32xf32> to vector<8x32xf32>
    %286 = arith.mulf %284, %285 : vector<8x32xf32>
    %287 = vector.broadcast %266 : vector<1x32xf32> to vector<8x32xf32>
    %288 = arith.addf %286, %287 : vector<8x32xf32>
    %289 = arith.truncf %288 : vector<8x32xf32> to vector<8x32xbf16>
    %c0_115 = arith.constant 0 : index
    %c0_116 = arith.constant 0 : index
    %290 = vector.load %arg21[%c0_115, %c0_116] : memref<32x64xbf16, #tpu.memory_space<vmem>>, vector<32x64xbf16>
    %cst_117 = arith.constant dense<0.000000e+00> : vector<8x64xf32>
    %291 = tpu.matmul %289, %290, %cst_117 {dimension_numbers = #tpu.dot_dimension_numbers<[1], [0], [0], [1], [0, 0, 1, 1], [], []>} : vector<8x32xbf16>, vector<32x64xbf16>, vector<8x64xf32> -> vector<8x64xf32>
    %c0_118 = arith.constant 0 : index
    %c0_119 = arith.constant 0 : index
    %292 = vector.load %arg22[%c0_118, %c0_119] : memref<1x64xf32, #tpu.memory_space<vmem>>, vector<1x64xf32>
    %293 = vector.broadcast %292 : vector<1x64xf32> to vector<8x64xf32>
    %294 = arith.addf %291, %293 : vector<8x64xf32>
    %cst_120 = arith.constant 0.000000e+00 : f32
    %295 = vector.broadcast %cst_120 : f32 to vector<8x64xf32>
    %296 = arith.maximumf %294, %295 : vector<8x64xf32>
    %297 = arith.truncf %296 : vector<8x64xf32> to vector<8x64xbf16>
    %c0_121 = arith.constant 0 : index
    %c0_122 = arith.constant 0 : index
    %298 = vector.load %arg23[%c0_121, %c0_122] : memref<64x32xbf16, #tpu.memory_space<vmem>>, vector<64x32xbf16>
    %cst_123 = arith.constant dense<0.000000e+00> : vector<8x32xf32>
    %299 = tpu.matmul %297, %298, %cst_123 {dimension_numbers = #tpu.dot_dimension_numbers<[1], [0], [0], [1], [0, 0, 1, 1], [], []>} : vector<8x64xbf16>, vector<64x32xbf16>, vector<8x32xf32> -> vector<8x32xf32>
    %c0_124 = arith.constant 0 : index
    %c0_125 = arith.constant 0 : index
    %300 = vector.load %arg24[%c0_124, %c0_125] : memref<1x32xf32, #tpu.memory_space<vmem>>, vector<1x32xf32>
    %301 = vector.broadcast %300 : vector<1x32xf32> to vector<8x32xf32>
    %302 = arith.addf %299, %301 : vector<8x32xf32>
    %303 = arith.addf %288, %302 : vector<8x32xf32>
    %c2 = arith.constant 2 : index
    %c0_126 = arith.constant 0 : index
    %c0_127 = arith.constant 0 : index
    %304 = vector.load %arg19[%c2, %c0_126, %c0_127] : memref<3x1x32xf32, #tpu.memory_space<vmem>>, vector<1x1x32xf32>
    %305 = vector.shape_cast %304 : vector<1x1x32xf32> to vector<1x32xf32>
    %c2_128 = arith.constant 2 : index
    %c0_129 = arith.constant 0 : index
    %c0_130 = arith.constant 0 : index
    %306 = vector.load %arg20[%c2_128, %c0_129, %c0_130] : memref<3x1x32xf32, #tpu.memory_space<vmem>>, vector<1x1x32xf32>
    %307 = vector.shape_cast %306 : vector<1x1x32xf32> to vector<1x32xf32>
    %cst_131 = arith.constant dense<0.000000e+00> : vector<8xf32>
    %308 = vector.multi_reduction <add>, %303, %cst_131 [1] : vector<8x32xf32> to vector<8xf32>
    %309 = vector.shape_cast %308 : vector<8xf32> to vector<8x1xf32>
    %cst_132 = arith.constant 3.200000e+01 : f32
    %310 = vector.broadcast %cst_132 : f32 to vector<8x1xf32>
    %311 = arith.divf %309, %310 : vector<8x1xf32>
    %312 = vector.broadcast %311 : vector<8x1xf32> to vector<8x32xf32>
    %313 = arith.subf %303, %312 : vector<8x32xf32>
    %314 = arith.mulf %313, %313 : vector<8x32xf32>
    %cst_133 = arith.constant dense<0.000000e+00> : vector<8xf32>
    %315 = vector.multi_reduction <add>, %314, %cst_133 [1] : vector<8x32xf32> to vector<8xf32>
    %316 = vector.shape_cast %315 : vector<8xf32> to vector<8x1xf32>
    %cst_134 = arith.constant 3.200000e+01 : f32
    %317 = vector.broadcast %cst_134 : f32 to vector<8x1xf32>
    %318 = arith.divf %316, %317 : vector<8x1xf32>
    %319 = vector.broadcast %311 : vector<8x1xf32> to vector<8x32xf32>
    %320 = arith.subf %303, %319 : vector<8x32xf32>
    %cst_135 = arith.constant 9.99999974E-6 : f32
    %321 = vector.broadcast %cst_135 : f32 to vector<8x1xf32>
    %322 = arith.addf %318, %321 : vector<8x1xf32>
    %323 = math.rsqrt %322 : vector<8x1xf32>
    %324 = vector.broadcast %323 : vector<8x1xf32> to vector<8x32xf32>
    %325 = arith.mulf %320, %324 : vector<8x32xf32>
    %326 = vector.broadcast %305 : vector<1x32xf32> to vector<8x32xf32>
    %327 = arith.mulf %325, %326 : vector<8x32xf32>
    %328 = vector.broadcast %307 : vector<1x32xf32> to vector<8x32xf32>
    %329 = arith.addf %327, %328 : vector<8x32xf32>
    %c0_136 = arith.constant 0 : index
    %c0_137 = arith.constant 0 : index
    %c0_138 = arith.constant 0 : index
    %330 = vector.load %arg25[%c0_136, %c0_137, %c0_138] : memref<1x8x32xf32, #tpu.memory_space<vmem>>, vector<1x8x32xf32>
    %331 = vector.shape_cast %330 : vector<1x8x32xf32> to vector<8x32xf32>
    %332 = vector.shape_cast %329 : vector<8x32xf32> to vector<1x8x32xf32>
    tpu.vector_store %arg25[%c0_136, %c0_137, %c0_138], %332 {strides = array<i32>} : memref<1x8x32xf32, #tpu.memory_space<vmem>>, vector<1x8x32xf32>,
    return
  }
  func.func @transform_0(%arg0: i32) -> (i32, i32, i32) {
    %c0_i32 = arith.constant 0 : i32
    %c0_i32_0 = arith.constant 0 : i32
    %c0_i32_1 = arith.constant 0 : i32
    return %arg0, %c0_i32, %c0_i32_0 : i32, i32, i32
  }
  func.func @transform_1(%arg0: i32) -> (i32, i32, i32) {
    %c0_i32 = arith.constant 0 : i32
    %c0_i32_0 = arith.constant 0 : i32
    %c0_i32_1 = arith.constant 0 : i32
    return %arg0, %c0_i32, %c0_i32_0 : i32, i32, i32
  }
  func.func @transform_2(%arg0: i32) -> (i32, i32, i32) {
    %c0_i32 = arith.constant 0 : i32
    %c0_i32_0 = arith.constant 0 : i32
    %c0_i32_1 = arith.constant 0 : i32
    return %arg0, %c0_i32, %c0_i32_0 : i32, i32, i32
  }
  func.func @transform_3(%arg0: i32) -> (i32, i32, i32) {
    %c0_i32 = arith.constant 0 : i32
    %c0_i32_0 = arith.constant 0 : i32
    %c0_i32_1 = arith.constant 0 : i32
    return %arg0, %c0_i32, %c0_i32_0 : i32, i32, i32
  }
  func.func @transform_4(%arg0: i32) -> (i32, i32) {
    %c0_i32 = arith.constant 0 : i32
    %c0_i32_0 = arith.constant 0 : i32
    %c0_i32_1 = arith.constant 0 : i32
    return %c0_i32, %c0_i32_0 : i32, i32
  }
  func.func @transform_5(%arg0: i32) -> (i32, i32) {
    %c0_i32 = arith.constant 0 : i32
    %c0_i32_0 = arith.constant 0 : i32
    %c0_i32_1 = arith.constant 0 : i32
    return %c0_i32, %c0_i32_0 : i32, i32
  }
  func.func @transform_6(%arg0: i32) -> (i32, i32) {
    %c0_i32 = arith.constant 0 : i32
    %c0_i32_0 = arith.constant 0 : i32
    %c0_i32_1 = arith.constant 0 : i32
    return %c0_i32, %c0_i32_0 : i32, i32
  }
  func.func @transform_7(%arg0: i32) -> (i32, i32) {
    %c0_i32 = arith.constant 0 : i32
    %c0_i32_0 = arith.constant 0 : i32
    %c0_i32_1 = arith.constant 0 : i32
    return %c0_i32, %c0_i32_0 : i32, i32
  }
  func.func @transform_8(%arg0: i32) -> (i32, i32) {
    %c0_i32 = arith.constant 0 : i32
    %c0_i32_0 = arith.constant 0 : i32
    %c0_i32_1 = arith.constant 0 : i32
    return %c0_i32, %c0_i32_0 : i32, i32
  }
  func.func @transform_9(%arg0: i32) -> (i32, i32) {
    %c0_i32 = arith.constant 0 : i32
    %c0_i32_0 = arith.constant 0 : i32
    %c0_i32_1 = arith.constant 0 : i32
    return %c0_i32, %c0_i32_0 : i32, i32
  }
  func.func @transform_10(%arg0: i32) -> (i32, i32) {
    %c0_i32 = arith.constant 0 : i32
    %c0_i32_0 = arith.constant 0 : i32
    %c0_i32_1 = arith.constant 0 : i32
    return %c0_i32, %c0_i32_0 : i32, i32
  }
  func.func @transform_11(%arg0: i32) -> (i32, i32) {
    %c0_i32 = arith.constant 0 : i32
    %c0_i32_0 = arith.constant 0 : i32
    %c0_i32_1 = arith.constant 0 : i32
    return %c0_i32, %c0_i32_0 : i32, i32
  }
  func.func @transform_12(%arg0: i32) -> (i32, i32) {
    %c0_i32 = arith.constant 0 : i32
    %c0_i32_0 = arith.constant 0 : i32
    %c0_i32_1 = arith.constant 0 : i32
    return %c0_i32, %c0_i32_0 : i32, i32
  }
  func.func @transform_13(%arg0: i32) -> (i32, i32) {
    %c0_i32 = arith.constant 0 : i32
    %c0_i32_0 = arith.constant 0 : i32
    %c0_i32_1 = arith.constant 0 : i32
    return %c0_i32, %c0_i32_0 : i32, i32
  }
  func.func @transform_14(%arg0: i32) -> (i32, i32) {
    %c0_i32 = arith.constant 0 : i32
    %c0_i32_0 = arith.constant 0 : i32
    %c0_i32_1 = arith.constant 0 : i32
    return %c0_i32, %c0_i32_0 : i32, i32
  }
  func.func @transform_15(%arg0: i32) -> (i32, i32) {
    %c0_i32 = arith.constant 0 : i32
    %c0_i32_0 = arith.constant 0 : i32
    %c0_i32_1 = arith.constant 0 : i32
    return %c0_i32, %c0_i32_0 : i32, i32
  }
  func.func @transform_16(%arg0: i32) -> (i32, i32) {
    %c0_i32 = arith.constant 0 : i32
    %c0_i32_0 = arith.constant 0 : i32
    %c0_i32_1 = arith.constant 0 : i32
    return %c0_i32, %c0_i32_0 : i32, i32
  }
  func.func @transform_17(%arg0: i32) -> (i32, i32) {
    %c0_i32 = arith.constant 0 : i32
    %c0_i32_0 = arith.constant 0 : i32
    %c0_i32_1 = arith.constant 0 : i32
    return %c0_i32, %c0_i32_0 : i32, i32
  }
  func.func @transform_18(%arg0: i32) -> (i32, i32, i32) {
    %c0_i32 = arith.constant 0 : i32
    %c0_i32_0 = arith.constant 0 : i32
    %c0_i32_1 = arith.constant 0 : i32
    %c0_i32_2 = arith.constant 0 : i32
    return %c0_i32, %c0_i32_0, %c0_i32_1 : i32, i32, i32
  }
  func.func @transform_19(%arg0: i32) -> (i32, i32, i32) {
    %c0_i32 = arith.constant 0 : i32
    %c0_i32_0 = arith.constant 0 : i32
    %c0_i32_1 = arith.constant 0 : i32
    %c0_i32_2 = arith.constant 0 : i32
    return %c0_i32, %c0_i32_0, %c0_i32_1 : i32, i32, i32
  }
  func.func @transform_20(%arg0: i32) -> (i32, i32) {
    %c0_i32 = arith.constant 0 : i32
    %c0_i32_0 = arith.constant 0 : i32
    %c0_i32_1 = arith.constant 0 : i32
    return %c0_i32, %c0_i32_0 : i32, i32
  }
  func.func @transform_21(%arg0: i32) -> (i32, i32) {
    %c0_i32 = arith.constant 0 : i32
    %c0_i32_0 = arith.constant 0 : i32
    %c0_i32_1 = arith.constant 0 : i32
    return %c0_i32, %c0_i32_0 : i32, i32
  }
  func.func @transform_22(%arg0: i32) -> (i32, i32) {
    %c0_i32 = arith.constant 0 : i32
    %c0_i32_0 = arith.constant 0 : i32
    %c0_i32_1 = arith.constant 0 : i32
    return %c0_i32, %c0_i32_0 : i32, i32
  }
  func.func @transform_23(%arg0: i32) -> (i32, i32) {
    %c0_i32 = arith.constant 0 : i32
    %c0_i32_0 = arith.constant 0 : i32
    %c0_i32_1 = arith.constant 0 : i32
    return %c0_i32, %c0_i32_0 : i32, i32
  }
  func.func @transform_24(%arg0: i32) -> (i32, i32, i32) {
    %c0_i32 = arith.constant 0 : i32
    %c0_i32_0 = arith.constant 0 : i32
    %c0_i32_1 = arith.constant 0 : i32
    return %arg0, %c0_i32, %c0_i32_0 : i32, i32, i32
  }
}

module attributes {stable_mosaic.version = 11 : i64} {
  func.func @_decoder_layer_kernel(%arg0: i32, %arg1: memref<1x8x32xf32, #tpu.memory_space<vmem>>, %arg2: memref<1x8x32xf32, #tpu.memory_space<vmem>>, %arg3: memref<1x16x32xf32, #tpu.memory_space<vmem>>, %arg4: memref<1x16x32xf32, #tpu.memory_space<vmem>>, %arg5: memref<32x64xbf16, #tpu.memory_space<vmem>>, %arg6: memref<1x64xf32, #tpu.memory_space<vmem>>, %arg7: memref<32x32xbf16, #tpu.memory_space<vmem>>, %arg8: memref<1x32xf32, #tpu.memory_space<vmem>>, %arg9: memref<32x32xbf16, #tpu.memory_space<vmem>>, %arg10: memref<1x32xf32, #tpu.memory_space<vmem>>, %arg11: memref<32x32xbf16, #tpu.memory_space<vmem>>, %arg12: memref<1x32xf32, #tpu.memory_space<vmem>>, %arg13: memref<32x32xbf16, #tpu.memory_space<vmem>>, %arg14: memref<1x32xf32, #tpu.memory_space<vmem>>, %arg15: memref<32x32xbf16, #tpu.memory_space<vmem>>, %arg16: memref<1x32xf32, #tpu.memory_space<vmem>>, %arg17: memref<32x32xbf16, #tpu.memory_space<vmem>>, %arg18: memref<1x32xf32, #tpu.memory_space<vmem>>, %arg19: memref<3x1x32xf32, #tpu.memory_space<vmem>>, %arg20: memref<3x1x32xf32, #tpu.memory_space<vmem>>, %arg21: memref<32x64xbf16, #tpu.memory_space<vmem>>, %arg22: memref<1x64xf32, #tpu.memory_space<vmem>>, %arg23: memref<64x32xbf16, #tpu.memory_space<vmem>>, %arg24: memref<1x32xf32, #tpu.memory_space<vmem>>, %arg25: memref<1x8x32xf32, #tpu.memory_space<vmem>>) attributes {dimension_semantics = [#tpu.dimension_semantics<parallel>], iteration_bounds = array<i64: 2>, scalar_prefetch = 0 : i64, scratch_operands = 0 : i64, tpu.core_type = #tpu.core_type<tc>, window_params = [{transform_indices = @transform_0, window_bounds = array<i64: 1, 8, 32>}, {transform_indices = @transform_1, window_bounds = array<i64: 1, 8, 32>}, {transform_indices = @transform_2, window_bounds = array<i64: 1, 16, 32>}, {transform_indices = @transform_3, window_bounds = array<i64: 1, 16, 32>}, {pipeline_mode = #tpu.pipeline_mode<synchronous>, transform_indices = @transform_4, window_bounds = array<i64: 32, 64>}, {pipeline_mode = #tpu.pipeline_mode<synchronous>, transform_indices = @transform_5, window_bounds = array<i64: 1, 64>}, {pipeline_mode = #tpu.pipeline_mode<synchronous>, transform_indices = @transform_6, window_bounds = array<i64: 32, 32>}, {pipeline_mode = #tpu.pipeline_mode<synchronous>, transform_indices = @transform_7, window_bounds = array<i64: 1, 32>}, {pipeline_mode = #tpu.pipeline_mode<synchronous>, transform_indices = @transform_8, window_bounds = array<i64: 32, 32>}, {pipeline_mode = #tpu.pipeline_mode<synchronous>, transform_indices = @transform_9, window_bounds = array<i64: 1, 32>}, {pipeline_mode = #tpu.pipeline_mode<synchronous>, transform_indices = @transform_10, window_bounds = array<i64: 32, 32>}, {pipeline_mode = #tpu.pipeline_mode<synchronous>, transform_indices = @transform_11, window_bounds = array<i64: 1, 32>}, {pipeline_mode = #tpu.pipeline_mode<synchronous>, transform_indices = @transform_12, window_bounds = array<i64: 32, 32>}, {pipeline_mode = #tpu.pipeline_mode<synchronous>, transform_indices = @transform_13, window_bounds = array<i64: 1, 32>}, {pipeline_mode = #tpu.pipeline_mode<synchronous>, transform_indices = @transform_14, window_bounds = array<i64: 32, 32>}, {pipeline_mode = #tpu.pipeline_mode<synchronous>, transform_indices = @transform_15, window_bounds = array<i64: 1, 32>}, {pipeline_mode = #tpu.pipeline_mode<synchronous>, transform_indices = @transform_16, window_bounds = array<i64: 32, 32>}, {pipeline_mode = #tpu.pipeline_mode<synchronous>, transform_indices = @transform_17, window_bounds = array<i64: 1, 32>}, {pipeline_mode = #tpu.pipeline_mode<synchronous>, transform_indices = @transform_18, window_bounds = array<i64: 3, 1, 32>}, {pipeline_mode = #tpu.pipeline_mode<synchronous>, transform_indices = @transform_19, window_bounds = array<i64: 3, 1, 32>}, {pipeline_mode = #tpu.pipeline_mode<synchronous>, transform_indices = @transform_20, window_bounds = array<i64: 32, 64>}, {pipeline_mode = #tpu.pipeline_mode<synchronous>, transform_indices = @transform_21, window_bounds = array<i64: 1, 64>}, {pipeline_mode = #tpu.pipeline_mode<synchronous>, transform_indices = @transform_22, window_bounds = array<i64: 64, 32>}, {pipeline_mode = #tpu.pipeline_mode<synchronous>, transform_indices = @transform_23, window_bounds = array<i64: 1, 32>}, {transform_indices = @transform_24, window_bounds = array<i64: 1, 8, 32>}]} {
    %c0 = arith.constant 0 : index
    %c0_0 = arith.constant 0 : index
    %c0_1 = arith.constant 0 : index
    %0 = vector.load %arg1[%c0, %c0_0, %c0_1] : memref<1x8x32xf32, #tpu.memory_space<vmem>>, vector<1x8x32xf32>
    %1 = vector.shape_cast %0 : vector<1x8x32xf32> to vector<8x32xf32>
    %c0_2 = arith.constant 0 : index
    %c0_3 = arith.constant 0 : index
    %c0_4 = arith.constant 0 : index
    %2 = vector.load %arg2[%c0_2, %c0_3, %c0_4] : memref<1x8x32xf32, #tpu.memory_space<vmem>>, vector<1x8x32xf32>
    %3 = vector.shape_cast %2 : vector<1x8x32xf32> to vector<8x32xf32>
    %c0_5 = arith.constant 0 : index
    %c0_6 = arith.constant 0 : index
    %c0_7 = arith.constant 0 : index
    %4 = vector.load %arg3[%c0_5, %c0_6, %c0_7] : memref<1x16x32xf32, #tpu.memory_space<vmem>>, vector<1x16x32xf32>
    %5 = vector.shape_cast %4 : vector<1x16x32xf32> to vector<16x32xf32>
    %c0_8 = arith.constant 0 : index
    %c0_9 = arith.constant 0 : index
    %c0_10 = arith.constant 0 : index
    %6 = vector.load %arg4[%c0_8, %c0_9, %c0_10] : memref<1x16x32xf32, #tpu.memory_space<vmem>>, vector<1x16x32xf32>
    %7 = vector.shape_cast %6 : vector<1x16x32xf32> to vector<16x32xf32>
    %8 = arith.addf %1, %3 : vector<8x32xf32>
    %9 = arith.truncf %8 : vector<8x32xf32> to vector<8x32xbf16>
    %c0_11 = arith.constant 0 : index
    %c0_12 = arith.constant 0 : index
    %10 = vector.load %arg5[%c0_11, %c0_12] : memref<32x64xbf16, #tpu.memory_space<vmem>>, vector<32x64xbf16>
    %cst = arith.constant dense<0.000000e+00> : vector<8x64xf32>
    %11 = tpu.matmul %9, %10, %cst {dimension_numbers = #tpu.dot_dimension_numbers<[1], [0], [0], [1], [0, 0, 1, 1], [], []>} : vector<8x32xbf16>, vector<32x64xbf16>, vector<8x64xf32> -> vector<8x64xf32>
    %c0_13 = arith.constant 0 : index
    %c0_14 = arith.constant 0 : index
    %12 = vector.load %arg6[%c0_13, %c0_14] : memref<1x64xf32, #tpu.memory_space<vmem>>, vector<1x64xf32>
    %13 = vector.broadcast %12 : vector<1x64xf32> to vector<8x64xf32>
    %14 = arith.addf %11, %13 : vector<8x64xf32>
    %15 = arith.truncf %1 : vector<8x32xf32> to vector<8x32xbf16>
    %c0_15 = arith.constant 0 : index
    %c0_16 = arith.constant 0 : index
    %16 = vector.load %arg7[%c0_15, %c0_16] : memref<32x32xbf16, #tpu.memory_space<vmem>>, vector<32x32xbf16>
    %cst_17 = arith.constant dense<0.000000e+00> : vector<8x32xf32>
    %17 = tpu.matmul %15, %16, %cst_17 {dimension_numbers = #tpu.dot_dimension_numbers<[1], [0], [0], [1], [0, 0, 1, 1], [], []>} : vector<8x32xbf16>, vector<32x32xbf16>, vector<8x32xf32> -> vector<8x32xf32>
    %c0_18 = arith.constant 0 : index
    %c0_19 = arith.constant 0 : index
    %18 = vector.load %arg8[%c0_18, %c0_19] : memref<1x32xf32, #tpu.memory_space<vmem>>, vector<1x32xf32>
    %19 = vector.broadcast %18 : vector<1x32xf32> to vector<8x32xf32>
    %20 = arith.addf %17, %19 : vector<8x32xf32>
    %21 = vector.extract_strided_slice %14 {offsets = [0, 0], sizes = [8, 32], strides = [1, 1]} : vector<8x64xf32> to vector<8x32xf32>
    %22 = vector.extract_strided_slice %14 {offsets = [0, 32], sizes = [8, 32], strides = [1, 1]} : vector<8x64xf32> to vector<8x32xf32>
    %cst_20 = arith.constant 0.000000e+00 : f32
    %23 = vector.broadcast %cst_20 : f32 to vector<8x32xf32>
    %24 = vector.extract_strided_slice %21 {offsets = [0, 0], sizes = [8, 8], strides = [1, 1]} : vector<8x32xf32> to vector<8x8xf32>
    %25 = arith.truncf %24 : vector<8x8xf32> to vector<8x8xbf16>
    %26 = vector.extract_strided_slice %22 {offsets = [0, 0], sizes = [8, 8], strides = [1, 1]} : vector<8x32xf32> to vector<8x8xf32>
    %27 = arith.truncf %26 : vector<8x8xf32> to vector<8x8xbf16>
    %cst_21 = arith.constant dense<0.000000e+00> : vector<8x8xf32>
    %28 = tpu.matmul %25, %27, %cst_21 {dimension_numbers = #tpu.dot_dimension_numbers<[1], [1], [0], [0], [0, 0, 1, 0], [], []>} : vector<8x8xbf16>, vector<8x8xbf16>, vector<8x8xf32> -> vector<8x8xf32>
    %cst_22 = arith.constant dense<0xFF800000> : vector<8xf32>
    %29 = vector.multi_reduction <maximumf>, %28, %cst_22 [1] : vector<8x8xf32> to vector<8xf32>
    %30 = vector.shape_cast %29 : vector<8xf32> to vector<8x1xf32>
    %31 = vector.broadcast %30 : vector<8x1xf32> to vector<8x8xf32>
    %32 = arith.subf %28, %31 : vector<8x8xf32>
    %33 = math.exp %32 : vector<8x8xf32>
    %cst_23 = arith.constant dense<0.000000e+00> : vector<8xf32>
    %34 = vector.multi_reduction <add>, %33, %cst_23 [1] : vector<8x8xf32> to vector<8xf32>
    %35 = vector.shape_cast %34 : vector<8xf32> to vector<8x1xf32>
    %36 = tpu.reciprocal %35 {approx = true} : vector<8x1xf32> -> vector<8x1xf32>
    %37 = vector.broadcast %36 : vector<8x1xf32> to vector<8x8xf32>
    %38 = arith.mulf %33, %37 : vector<8x8xf32>
    %39 = arith.truncf %38 : vector<8x8xf32> to vector<8x8xbf16>
    %40 = vector.extract_strided_slice %20 {offsets = [0, 0], sizes = [8, 8], strides = [1, 1]} : vector<8x32xf32> to vector<8x8xf32>
    %41 = arith.truncf %40 : vector<8x8xf32> to vector<8x8xbf16>
    %cst_24 = arith.constant dense<0.000000e+00> : vector<8x8xf32>
    %42 = tpu.matmul %39, %41, %cst_24 {dimension_numbers = #tpu.dot_dimension_numbers<[1], [0], [0], [1], [0, 0, 1, 1], [], []>} : vector<8x8xbf16>, vector<8x8xbf16>, vector<8x8xf32> -> vector<8x8xf32>
    %43 = arith.truncf %42 : vector<8x8xf32> to vector<8x8xbf16>
    %c0_25 = arith.constant 0 : index
    %c0_26 = arith.constant 0 : index
    %44 = vector.load %arg9[%c0_25, %c0_26] : memref<32x32xbf16, #tpu.memory_space<vmem>>, vector<8x32xbf16>
    %cst_27 = arith.constant dense<0.000000e+00> : vector<8x32xf32>
    %45 = tpu.matmul %43, %44, %cst_27 {dimension_numbers = #tpu.dot_dimension_numbers<[1], [0], [0], [1], [0, 0, 1, 1], [], []>} : vector<8x8xbf16>, vector<8x32xbf16>, vector<8x32xf32> -> vector<8x32xf32>
    %46 = arith.addf %23, %45 : vector<8x32xf32>
    %47 = vector.extract_strided_slice %21 {offsets = [0, 8], sizes = [8, 8], strides = [1, 1]} : vector<8x32xf32> to vector<8x8xf32>
    %48 = arith.truncf %47 : vector<8x8xf32> to vector<8x8xbf16>
    %49 = vector.extract_strided_slice %22 {offsets = [0, 8], sizes = [8, 8], strides = [1, 1]} : vector<8x32xf32> to vector<8x8xf32>
    %50 = arith.truncf %49 : vector<8x8xf32> to vector<8x8xbf16>
    %cst_28 = arith.constant dense<0.000000e+00> : vector<8x8xf32>
    %51 = tpu.matmul %48, %50, %cst_28 {dimension_numbers = #tpu.dot_dimension_numbers<[1], [1], [0], [0], [0, 0, 1, 0], [], []>} : vector<8x8xbf16>, vector<8x8xbf16>, vector<8x8xf32> -> vector<8x8xf32>
    %cst_29 = arith.constant dense<0xFF800000> : vector<8xf32>
    %52 = vector.multi_reduction <maximumf>, %51, %cst_29 [1] : vector<8x8xf32> to vector<8xf32>
    %53 = vector.shape_cast %52 : vector<8xf32> to vector<8x1xf32>
    %54 = vector.broadcast %53 : vector<8x1xf32> to vector<8x8xf32>
    %55 = arith.subf %51, %54 : vector<8x8xf32>
    %56 = math.exp %55 : vector<8x8xf32>
    %cst_30 = arith.constant dense<0.000000e+00> : vector<8xf32>
    %57 = vector.multi_reduction <add>, %56, %cst_30 [1] : vector<8x8xf32> to vector<8xf32>
    %58 = vector.shape_cast %57 : vector<8xf32> to vector<8x1xf32>
    %59 = tpu.reciprocal %58 {approx = true} : vector<8x1xf32> -> vector<8x1xf32>
    %60 = vector.broadcast %59 : vector<8x1xf32> to vector<8x8xf32>
    %61 = arith.mulf %56, %60 : vector<8x8xf32>
    %62 = arith.truncf %61 : vector<8x8xf32> to vector<8x8xbf16>
    %63 = vector.extract_strided_slice %20 {offsets = [0, 8], sizes = [8, 8], strides = [1, 1]} : vector<8x32xf32> to vector<8x8xf32>
    %64 = arith.truncf %63 : vector<8x8xf32> to vector<8x8xbf16>
    %cst_31 = arith.constant dense<0.000000e+00> : vector<8x8xf32>
    %65 = tpu.matmul %62, %64, %cst_31 {dimension_numbers = #tpu.dot_dimension_numbers<[1], [0], [0], [1], [0, 0, 1, 1], [], []>} : vector<8x8xbf16>, vector<8x8xbf16>, vector<8x8xf32> -> vector<8x8xf32>
    %66 = arith.truncf %65 : vector<8x8xf32> to vector<8x8xbf16>
    %c8 = arith.constant 8 : index
    %c0_32 = arith.constant 0 : index
    %67 = vector.load %arg9[%c8, %c0_32] : memref<32x32xbf16, #tpu.memory_space<vmem>>, vector<8x32xbf16>
    %cst_33 = arith.constant dense<0.000000e+00> : vector<8x32xf32>
    %68 = tpu.matmul %66, %67, %cst_33 {dimension_numbers = #tpu.dot_dimension_numbers<[1], [0], [0], [1], [0, 0, 1, 1], [], []>} : vector<8x8xbf16>, vector<8x32xbf16>, vector<8x32xf32> -> vector<8x32xf32>
    %69 = arith.addf %46, %68 : vector<8x32xf32>
    %70 = vector.extract_strided_slice %21 {offsets = [0, 16], sizes = [8, 8], strides = [1, 1]} : vector<8x32xf32> to vector<8x8xf32>
    %71 = arith.truncf %70 : vector<8x8xf32> to vector<8x8xbf16>
    %72 = vector.extract_strided_slice %22 {offsets = [0, 16], sizes = [8, 8], strides = [1, 1]} : vector<8x32xf32> to vector<8x8xf32>
    %73 = arith.truncf %72 : vector<8x8xf32> to vector<8x8xbf16>
    %cst_34 = arith.constant dense<0.000000e+00> : vector<8x8xf32>
    %74 = tpu.matmul %71, %73, %cst_34 {dimension_numbers = #tpu.dot_dimension_numbers<[1], [1], [0], [0], [0, 0, 1, 0], [], []>} : vector<8x8xbf16>, vector<8x8xbf16>, vector<8x8xf32> -> vector<8x8xf32>
    %cst_35 = arith.constant dense<0xFF800000> : vector<8xf32>
    %75 = vector.multi_reduction <maximumf>, %74, %cst_35 [1] : vector<8x8xf32> to vector<8xf32>
    %76 = vector.shape_cast %75 : vector<8xf32> to vector<8x1xf32>
    %77 = vector.broadcast %76 : vector<8x1xf32> to vector<8x8xf32>
    %78 = arith.subf %74, %77 : vector<8x8xf32>
    %79 = math.exp %78 : vector<8x8xf32>
    %cst_36 = arith.constant dense<0.000000e+00> : vector<8xf32>
    %80 = vector.multi_reduction <add>, %79, %cst_36 [1] : vector<8x8xf32> to vector<8xf32>
    %81 = vector.shape_cast %80 : vector<8xf32> to vector<8x1xf32>
    %82 = tpu.reciprocal %81 {approx = true} : vector<8x1xf32> -> vector<8x1xf32>
    %83 = vector.broadcast %82 : vector<8x1xf32> to vector<8x8xf32>
    %84 = arith.mulf %79, %83 : vector<8x8xf32>
    %85 = arith.truncf %84 : vector<8x8xf32> to vector<8x8xbf16>
    %86 = vector.extract_strided_slice %20 {offsets = [0, 16], sizes = [8, 8], strides = [1, 1]} : vector<8x32xf32> to vector<8x8xf32>
    %87 = arith.truncf %86 : vector<8x8xf32> to vector<8x8xbf16>
    %cst_37 = arith.constant dense<0.000000e+00> : vector<8x8xf32>
    %88 = tpu.matmul %85, %87, %cst_37 {dimension_numbers = #tpu.dot_dimension_numbers<[1], [0], [0], [1], [0, 0, 1, 1], [], []>} : vector<8x8xbf16>, vector<8x8xbf16>, vector<8x8xf32> -> vector<8x8xf32>
    %89 = arith.truncf %88 : vector<8x8xf32> to vector<8x8xbf16>
    %c16 = arith.constant 16 : index
    %c0_38 = arith.constant 0 : index
    %90 = vector.load %arg9[%c16, %c0_38] : memref<32x32xbf16, #tpu.memory_space<vmem>>, vector<8x32xbf16>
    %cst_39 = arith.constant dense<0.000000e+00> : vector<8x32xf32>
    %91 = tpu.matmul %89, %90, %cst_39 {dimension_numbers = #tpu.dot_dimension_numbers<[1], [0], [0], [1], [0, 0, 1, 1], [], []>} : vector<8x8xbf16>, vector<8x32xbf16>, vector<8x32xf32> -> vector<8x32xf32>
    %92 = arith.addf %69, %91 : vector<8x32xf32>
    %93 = vector.extract_strided_slice %21 {offsets = [0, 24], sizes = [8, 8], strides = [1, 1]} : vector<8x32xf32> to vector<8x8xf32>
    %94 = arith.truncf %93 : vector<8x8xf32> to vector<8x8xbf16>
    %95 = vector.extract_strided_slice %22 {offsets = [0, 24], sizes = [8, 8], strides = [1, 1]} : vector<8x32xf32> to vector<8x8xf32>
    %96 = arith.truncf %95 : vector<8x8xf32> to vector<8x8xbf16>
    %cst_40 = arith.constant dense<0.000000e+00> : vector<8x8xf32>
    %97 = tpu.matmul %94, %96, %cst_40 {dimension_numbers = #tpu.dot_dimension_numbers<[1], [1], [0], [0], [0, 0, 1, 0], [], []>} : vector<8x8xbf16>, vector<8x8xbf16>, vector<8x8xf32> -> vector<8x8xf32>
    %cst_41 = arith.constant dense<0xFF800000> : vector<8xf32>
    %98 = vector.multi_reduction <maximumf>, %97, %cst_41 [1] : vector<8x8xf32> to vector<8xf32>
    %99 = vector.shape_cast %98 : vector<8xf32> to vector<8x1xf32>
    %100 = vector.broadcast %99 : vector<8x1xf32> to vector<8x8xf32>
    %101 = arith.subf %97, %100 : vector<8x8xf32>
    %102 = math.exp %101 : vector<8x8xf32>
    %cst_42 = arith.constant dense<0.000000e+00> : vector<8xf32>
    %103 = vector.multi_reduction <add>, %102, %cst_42 [1] : vector<8x8xf32> to vector<8xf32>
    %104 = vector.shape_cast %103 : vector<8xf32> to vector<8x1xf32>
    %105 = tpu.reciprocal %104 {approx = true} : vector<8x1xf32> -> vector<8x1xf32>
    %106 = vector.broadcast %105 : vector<8x1xf32> to vector<8x8xf32>
    %107 = arith.mulf %102, %106 : vector<8x8xf32>
    %108 = arith.truncf %107 : vector<8x8xf32> to vector<8x8xbf16>
    %109 = vector.extract_strided_slice %20 {offsets = [0, 24], sizes = [8, 8], strides = [1, 1]} : vector<8x32xf32> to vector<8x8xf32>
    %110 = arith.truncf %109 : vector<8x8xf32> to vector<8x8xbf16>
    %cst_43 = arith.constant dense<0.000000e+00> : vector<8x8xf32>
    %111 = tpu.matmul %108, %110, %cst_43 {dimension_numbers = #tpu.dot_dimension_numbers<[1], [0], [0], [1], [0, 0, 1, 1], [], []>} : vector<8x8xbf16>, vector<8x8xbf16>, vector<8x8xf32> -> vector<8x8xf32>
    %112 = arith.truncf %111 : vector<8x8xf32> to vector<8x8xbf16>
    %c24 = arith.constant 24 : index
    %c0_44 = arith.constant 0 : index
    %113 = vector.load %arg9[%c24, %c0_44] : memref<32x32xbf16, #tpu.memory_space<vmem>>, vector<8x32xbf16>
    %cst_45 = arith.constant dense<0.000000e+00> : vector<8x32xf32>
    %114 = tpu.matmul %112, %113, %cst_45 {dimension_numbers = #tpu.dot_dimension_numbers<[1], [0], [0], [1], [0, 0, 1, 1], [], []>} : vector<8x8xbf16>, vector<8x32xbf16>, vector<8x32xf32> -> vector<8x32xf32>
    %115 = arith.addf %92, %114 : vector<8x32xf32>
    %c0_46 = arith.constant 0 : index
    %c0_47 = arith.constant 0 : index
    %116 = vector.load %arg10[%c0_46, %c0_47] : memref<1x32xf32, #tpu.memory_space<vmem>>, vector<1x32xf32>
    %117 = vector.broadcast %116 : vector<1x32xf32> to vector<8x32xf32>
    %118 = arith.addf %115, %117 : vector<8x32xf32>
    %119 = arith.addf %1, %118 : vector<8x32xf32>
    %c0_48 = arith.constant 0 : index
    %c0_49 = arith.constant 0 : index
    %c0_50 = arith.constant 0 : index
    %120 = vector.load %arg19[%c0_48, %c0_49, %c0_50] : memref<3x1x32xf32, #tpu.memory_space<vmem>>, vector<1x1x32xf32>
    %121 = vector.shape_cast %120 : vector<1x1x32xf32> to vector<1x32xf32>
    %c0_51 = arith.constant 0 : index
    %c0_52 = arith.constant 0 : index
    %c0_53 = arith.constant 0 : index
    %122 = vector.load %arg20[%c0_51, %c0_52, %c0_53] : memref<3x1x32xf32, #tpu.memory_space<vmem>>, vector<1x1x32xf32>
    %123 = vector.shape_cast %122 : vector<1x1x32xf32> to vector<1x32xf32>
    %cst_54 = arith.constant dense<0.000000e+00> : vector<8xf32>
    %124 = vector.multi_reduction <add>, %119, %cst_54 [1] : vector<8x32xf32> to vector<8xf32>
    %125 = vector.shape_cast %124 : vector<8xf32> to vector<8x1xf32>
    %cst_55 = arith.constant 3.200000e+01 : f32
    %126 = vector.broadcast %cst_55 : f32 to vector<8x1xf32>
    %127 = arith.divf %125, %126 : vector<8x1xf32>
    %128 = vector.broadcast %127 : vector<8x1xf32> to vector<8x32xf32>
    %129 = arith.subf %119, %128 : vector<8x32xf32>
    %130 = arith.mulf %129, %129 : vector<8x32xf32>
    %cst_56 = arith.constant dense<0.000000e+00> : vector<8xf32>
    %131 = vector.multi_reduction <add>, %130, %cst_56 [1] : vector<8x32xf32> to vector<8xf32>
    %132 = vector.shape_cast %131 : vector<8xf32> to vector<8x1xf32>
    %cst_57 = arith.constant 3.200000e+01 : f32
    %133 = vector.broadcast %cst_57 : f32 to vector<8x1xf32>
    %134 = arith.divf %132, %133 : vector<8x1xf32>
    %135 = vector.broadcast %127 : vector<8x1xf32> to vector<8x32xf32>
    %136 = arith.subf %119, %135 : vector<8x32xf32>
    %cst_58 = arith.constant 9.99999974E-6 : f32
    %137 = vector.broadcast %cst_58 : f32 to vector<8x1xf32>
    %138 = arith.addf %134, %137 : vector<8x1xf32>
    %139 = math.rsqrt %138 : vector<8x1xf32>
    %140 = vector.broadcast %139 : vector<8x1xf32> to vector<8x32xf32>
    %141 = arith.mulf %136, %140 : vector<8x32xf32>
    %142 = vector.broadcast %121 : vector<1x32xf32> to vector<8x32xf32>
    %143 = arith.mulf %141, %142 : vector<8x32xf32>
    %144 = vector.broadcast %123 : vector<1x32xf32> to vector<8x32xf32>
    %145 = arith.addf %143, %144 : vector<8x32xf32>
    %146 = arith.addf %145, %3 : vector<8x32xf32>
    %147 = arith.truncf %146 : vector<8x32xf32> to vector<8x32xbf16>
    %c0_59 = arith.constant 0 : index
    %c0_60 = arith.constant 0 : index
    %148 = vector.load %arg11[%c0_59, %c0_60] : memref<32x32xbf16, #tpu.memory_space<vmem>>, vector<32x32xbf16>
    %cst_61 = arith.constant dense<0.000000e+00> : vector<8x32xf32>
    %149 = tpu.matmul %147, %148, %cst_61 {dimension_numbers = #tpu.dot_dimension_numbers<[1], [0], [0], [1], [0, 0, 1, 1], [], []>} : vector<8x32xbf16>, vector<32x32xbf16>, vector<8x32xf32> -> vector<8x32xf32>
    %c0_62 = arith.constant 0 : index
    %c0_63 = arith.constant 0 : index
    %150 = vector.load %arg12[%c0_62, %c0_63] : memref<1x32xf32, #tpu.memory_space<vmem>>, vector<1x32xf32>
    %151 = vector.broadcast %150 : vector<1x32xf32> to vector<8x32xf32>
    %152 = arith.addf %149, %151 : vector<8x32xf32>
    %153 = arith.addf %5, %7 : vector<16x32xf32>
    %154 = arith.truncf %153 : vector<16x32xf32> to vector<16x32xbf16>
    %c0_64 = arith.constant 0 : index
    %c0_65 = arith.constant 0 : index
    %155 = vector.load %arg13[%c0_64, %c0_65] : memref<32x32xbf16, #tpu.memory_space<vmem>>, vector<32x32xbf16>
    %cst_66 = arith.constant dense<0.000000e+00> : vector<16x32xf32>
    %156 = tpu.matmul %154, %155, %cst_66 {dimension_numbers = #tpu.dot_dimension_numbers<[1], [0], [0], [1], [0, 0, 1, 1], [], []>} : vector<16x32xbf16>, vector<32x32xbf16>, vector<16x32xf32> -> vector<16x32xf32>
    %c0_67 = arith.constant 0 : index
    %c0_68 = arith.constant 0 : index
    %157 = vector.load %arg14[%c0_67, %c0_68] : memref<1x32xf32, #tpu.memory_space<vmem>>, vector<1x32xf32>
    %158 = vector.broadcast %157 : vector<1x32xf32> to vector<16x32xf32>
    %159 = arith.addf %156, %158 : vector<16x32xf32>
    %160 = arith.truncf %5 : vector<16x32xf32> to vector<16x32xbf16>
    %c0_69 = arith.constant 0 : index
    %c0_70 = arith.constant 0 : index
    %161 = vector.load %arg15[%c0_69, %c0_70] : memref<32x32xbf16, #tpu.memory_space<vmem>>, vector<32x32xbf16>
    %cst_71 = arith.constant dense<0.000000e+00> : vector<16x32xf32>
    %162 = tpu.matmul %160, %161, %cst_71 {dimension_numbers = #tpu.dot_dimension_numbers<[1], [0], [0], [1], [0, 0, 1, 1], [], []>} : vector<16x32xbf16>, vector<32x32xbf16>, vector<16x32xf32> -> vector<16x32xf32>
    %c0_72 = arith.constant 0 : index
    %c0_73 = arith.constant 0 : index
    %163 = vector.load %arg16[%c0_72, %c0_73] : memref<1x32xf32, #tpu.memory_space<vmem>>, vector<1x32xf32>
    %164 = vector.broadcast %163 : vector<1x32xf32> to vector<16x32xf32>
    %165 = arith.addf %162, %164 : vector<16x32xf32>
    %cst_74 = arith.constant 0.000000e+00 : f32
    %166 = vector.broadcast %cst_74 : f32 to vector<8x32xf32>
    %167 = vector.extract_strided_slice %152 {offsets = [0, 0], sizes = [8, 8], strides = [1, 1]} : vector<8x32xf32> to vector<8x8xf32>
    %168 = arith.truncf %167 : vector<8x8xf32> to vector<8x8xbf16>
    %169 = vector.extract_strided_slice %159 {offsets = [0, 0], sizes = [16, 8], strides = [1, 1]} : vector<16x32xf32> to vector<16x8xf32>
    %170 = arith.truncf %169 : vector<16x8xf32> to vector<16x8xbf16>
    %cst_75 = arith.constant dense<0.000000e+00> : vector<8x16xf32>
    %171 = tpu.matmul %168, %170, %cst_75 {dimension_numbers = #tpu.dot_dimension_numbers<[1], [1], [0], [0], [0, 0, 1, 0], [], []>} : vector<8x8xbf16>, vector<16x8xbf16>, vector<8x16xf32> -> vector<8x16xf32>
    %cst_76 = arith.constant dense<0xFF800000> : vector<8xf32>
    %172 = vector.multi_reduction <maximumf>, %171, %cst_76 [1] : vector<8x16xf32> to vector<8xf32>
    %173 = vector.shape_cast %172 : vector<8xf32> to vector<8x1xf32>
    %174 = vector.broadcast %173 : vector<8x1xf32> to vector<8x16xf32>
    %175 = arith.subf %171, %174 : vector<8x16xf32>
    %176 = math.exp %175 : vector<8x16xf32>
    %cst_77 = arith.constant dense<0.000000e+00> : vector<8xf32>
    %177 = vector.multi_reduction <add>, %176, %cst_77 [1] : vector<8x16xf32> to vector<8xf32>
    %178 = vector.shape_cast %177 : vector<8xf32> to vector<8x1xf32>
    %179 = tpu.reciprocal %178 {approx = true} : vector<8x1xf32> -> vector<8x1xf32>
    %180 = vector.broadcast %179 : vector<8x1xf32> to vector<8x16xf32>
    %181 = arith.mulf %176, %180 : vector<8x16xf32>
    %182 = arith.truncf %181 : vector<8x16xf32> to vector<8x16xbf16>
    %183 = vector.extract_strided_slice %165 {offsets = [0, 0], sizes = [16, 8], strides = [1, 1]} : vector<16x32xf32> to vector<16x8xf32>
    %184 = arith.truncf %183 : vector<16x8xf32> to vector<16x8xbf16>
    %cst_78 = arith.constant dense<0.000000e+00> : vector<8x8xf32>
    %185 = tpu.matmul %182, %184, %cst_78 {dimension_numbers = #tpu.dot_dimension_numbers<[1], [0], [0], [1], [0, 0, 1, 1], [], []>} : vector<8x16xbf16>, vector<16x8xbf16>, vector<8x8xf32> -> vector<8x8xf32>
    %186 = arith.truncf %185 : vector<8x8xf32> to vector<8x8xbf16>
    %c0_79 = arith.constant 0 : index
    %c0_80 = arith.constant 0 : index
    %187 = vector.load %arg17[%c0_79, %c0_80] : memref<32x32xbf16, #tpu.memory_space<vmem>>, vector<8x32xbf16>
    %cst_81 = arith.constant dense<0.000000e+00> : vector<8x32xf32>
    %188 = tpu.matmul %186, %187, %cst_81 {dimension_numbers = #tpu.dot_dimension_numbers<[1], [0], [0], [1], [0, 0, 1, 1], [], []>} : vector<8x8xbf16>, vector<8x32xbf16>, vector<8x32xf32> -> vector<8x32xf32>
    %189 = arith.addf %166, %188 : vector<8x32xf32>
    %190 = vector.extract_strided_slice %152 {offsets = [0, 8], sizes = [8, 8], strides = [1, 1]} : vector<8x32xf32> to vector<8x8xf32>
    %191 = arith.truncf %190 : vector<8x8xf32> to vector<8x8xbf16>
    %192 = vector.extract_strided_slice %159 {offsets = [0, 8], sizes = [16, 8], strides = [1, 1]} : vector<16x32xf32> to vector<16x8xf32>
    %193 = arith.truncf %192 : vector<16x8xf32> to vector<16x8xbf16>
    %cst_82 = arith.constant dense<0.000000e+00> : vector<8x16xf32>
    %194 = tpu.matmul %191, %193, %cst_82 {dimension_numbers = #tpu.dot_dimension_numbers<[1], [1], [0], [0], [0, 0, 1, 0], [], []>} : vector<8x8xbf16>, vector<16x8xbf16>, vector<8x16xf32> -> vector<8x16xf32>
    %cst_83 = arith.constant dense<0xFF800000> : vector<8xf32>
    %195 = vector.multi_reduction <maximumf>, %194, %cst_83 [1] : vector<8x16xf32> to vector<8xf32>
    %196 = vector.shape_cast %195 : vector<8xf32> to vector<8x1xf32>
    %197 = vector.broadcast %196 : vector<8x1xf32> to vector<8x16xf32>
    %198 = arith.subf %194, %197 : vector<8x16xf32>
    %199 = math.exp %198 : vector<8x16xf32>
    %cst_84 = arith.constant dense<0.000000e+00> : vector<8xf32>
    %200 = vector.multi_reduction <add>, %199, %cst_84 [1] : vector<8x16xf32> to vector<8xf32>
    %201 = vector.shape_cast %200 : vector<8xf32> to vector<8x1xf32>
    %202 = tpu.reciprocal %201 {approx = true} : vector<8x1xf32> -> vector<8x1xf32>
    %203 = vector.broadcast %202 : vector<8x1xf32> to vector<8x16xf32>
    %204 = arith.mulf %199, %203 : vector<8x16xf32>
    %205 = arith.truncf %204 : vector<8x16xf32> to vector<8x16xbf16>
    %206 = vector.extract_strided_slice %165 {offsets = [0, 8], sizes = [16, 8], strides = [1, 1]} : vector<16x32xf32> to vector<16x8xf32>
    %207 = arith.truncf %206 : vector<16x8xf32> to vector<16x8xbf16>
    %cst_85 = arith.constant dense<0.000000e+00> : vector<8x8xf32>
    %208 = tpu.matmul %205, %207, %cst_85 {dimension_numbers = #tpu.dot_dimension_numbers<[1], [0], [0], [1], [0, 0, 1, 1], [], []>} : vector<8x16xbf16>, vector<16x8xbf16>, vector<8x8xf32> -> vector<8x8xf32>
    %209 = arith.truncf %208 : vector<8x8xf32> to vector<8x8xbf16>
    %c8_86 = arith.constant 8 : index
    %c0_87 = arith.constant 0 : index
    %210 = vector.load %arg17[%c8_86, %c0_87] : memref<32x32xbf16, #tpu.memory_space<vmem>>, vector<8x32xbf16>
    %cst_88 = arith.constant dense<0.000000e+00> : vector<8x32xf32>
    %211 = tpu.matmul %209, %210, %cst_88 {dimension_numbers = #tpu.dot_dimension_numbers<[1], [0], [0], [1], [0, 0, 1, 1], [], []>} : vector<8x8xbf16>, vector<8x32xbf16>, vector<8x32xf32> -> vector<8x32xf32>
    %212 = arith.addf %189, %211 : vector<8x32xf32>
    %213 = vector.extract_strided_slice %152 {offsets = [0, 16], sizes = [8, 8], strides = [1, 1]} : vector<8x32xf32> to vector<8x8xf32>
    %214 = arith.truncf %213 : vector<8x8xf32> to vector<8x8xbf16>
    %215 = vector.extract_strided_slice %159 {offsets = [0, 16], sizes = [16, 8], strides = [1, 1]} : vector<16x32xf32> to vector<16x8xf32>
    %216 = arith.truncf %215 : vector<16x8xf32> to vector<16x8xbf16>
    %cst_89 = arith.constant dense<0.000000e+00> : vector<8x16xf32>
    %217 = tpu.matmul %214, %216, %cst_89 {dimension_numbers = #tpu.dot_dimension_numbers<[1], [1], [0], [0], [0, 0, 1, 0], [], []>} : vector<8x8xbf16>, vector<16x8xbf16>, vector<8x16xf32> -> vector<8x16xf32>
    %cst_90 = arith.constant dense<0xFF800000> : vector<8xf32>
    %218 = vector.multi_reduction <maximumf>, %217, %cst_90 [1] : vector<8x16xf32> to vector<8xf32>
    %219 = vector.shape_cast %218 : vector<8xf32> to vector<8x1xf32>
    %220 = vector.broadcast %219 : vector<8x1xf32> to vector<8x16xf32>
    %221 = arith.subf %217, %220 : vector<8x16xf32>
    %222 = math.exp %221 : vector<8x16xf32>
    %cst_91 = arith.constant dense<0.000000e+00> : vector<8xf32>
    %223 = vector.multi_reduction <add>, %222, %cst_91 [1] : vector<8x16xf32> to vector<8xf32>
    %224 = vector.shape_cast %223 : vector<8xf32> to vector<8x1xf32>
    %225 = tpu.reciprocal %224 {approx = true} : vector<8x1xf32> -> vector<8x1xf32>
    %226 = vector.broadcast %225 : vector<8x1xf32> to vector<8x16xf32>
    %227 = arith.mulf %222, %226 : vector<8x16xf32>
    %228 = arith.truncf %227 : vector<8x16xf32> to vector<8x16xbf16>
    %229 = vector.extract_strided_slice %165 {offsets = [0, 16], sizes = [16, 8], strides = [1, 1]} : vector<16x32xf32> to vector<16x8xf32>
    %230 = arith.truncf %229 : vector<16x8xf32> to vector<16x8xbf16>
    %cst_92 = arith.constant dense<0.000000e+00> : vector<8x8xf32>
    %231 = tpu.matmul %228, %230, %cst_92 {dimension_numbers = #tpu.dot_dimension_numbers<[1], [0], [0], [1], [0, 0, 1, 1], [], []>} : vector<8x16xbf16>, vector<16x8xbf16>, vector<8x8xf32> -> vector<8x8xf32>
    %232 = arith.truncf %231 : vector<8x8xf32> to vector<8x8xbf16>
    %c16_93 = arith.constant 16 : index
    %c0_94 = arith.constant 0 : index
    %233 = vector.load %arg17[%c16_93, %c0_94] : memref<32x32xbf16, #tpu.memory_space<vmem>>, vector<8x32xbf16>
    %cst_95 = arith.constant dense<0.000000e+00> : vector<8x32xf32>
    %234 = tpu.matmul %232, %233, %cst_95 {dimension_numbers = #tpu.dot_dimension_numbers<[1], [0], [0], [1], [0, 0, 1, 1], [], []>} : vector<8x8xbf16>, vector<8x32xbf16>, vector<8x32xf32> -> vector<8x32xf32>
    %235 = arith.addf %212, %234 : vector<8x32xf32>
    %236 = vector.extract_strided_slice %152 {offsets = [0, 24], sizes = [8, 8], strides = [1, 1]} : vector<8x32xf32> to vector<8x8xf32>
    %237 = arith.truncf %236 : vector<8x8xf32> to vector<8x8xbf16>
    %238 = vector.extract_strided_slice %159 {offsets = [0, 24], sizes = [16, 8], strides = [1, 1]} : vector<16x32xf32> to vector<16x8xf32>
    %239 = arith.truncf %238 : vector<16x8xf32> to vector<16x8xbf16>
    %cst_96 = arith.constant dense<0.000000e+00> : vector<8x16xf32>
    %240 = tpu.matmul %237, %239, %cst_96 {dimension_numbers = #tpu.dot_dimension_numbers<[1], [1], [0], [0], [0, 0, 1, 0], [], []>} : vector<8x8xbf16>, vector<16x8xbf16>, vector<8x16xf32> -> vector<8x16xf32>
    %cst_97 = arith.constant dense<0xFF800000> : vector<8xf32>
    %241 = vector.multi_reduction <maximumf>, %240, %cst_97 [1] : vector<8x16xf32> to vector<8xf32>
    %242 = vector.shape_cast %241 : vector<8xf32> to vector<8x1xf32>
    %243 = vector.broadcast %242 : vector<8x1xf32> to vector<8x16xf32>
    %244 = arith.subf %240, %243 : vector<8x16xf32>
    %245 = math.exp %244 : vector<8x16xf32>
    %cst_98 = arith.constant dense<0.000000e+00> : vector<8xf32>
    %246 = vector.multi_reduction <add>, %245, %cst_98 [1] : vector<8x16xf32> to vector<8xf32>
    %247 = vector.shape_cast %246 : vector<8xf32> to vector<8x1xf32>
    %248 = tpu.reciprocal %247 {approx = true} : vector<8x1xf32> -> vector<8x1xf32>
    %249 = vector.broadcast %248 : vector<8x1xf32> to vector<8x16xf32>
    %250 = arith.mulf %245, %249 : vector<8x16xf32>
    %251 = arith.truncf %250 : vector<8x16xf32> to vector<8x16xbf16>
    %252 = vector.extract_strided_slice %165 {offsets = [0, 24], sizes = [16, 8], strides = [1, 1]} : vector<16x32xf32> to vector<16x8xf32>
    %253 = arith.truncf %252 : vector<16x8xf32> to vector<16x8xbf16>
    %cst_99 = arith.constant dense<0.000000e+00> : vector<8x8xf32>
    %254 = tpu.matmul %251, %253, %cst_99 {dimension_numbers = #tpu.dot_dimension_numbers<[1], [0], [0], [1], [0, 0, 1, 1], [], []>} : vector<8x16xbf16>, vector<16x8xbf16>, vector<8x8xf32> -> vector<8x8xf32>
    %255 = arith.truncf %254 : vector<8x8xf32> to vector<8x8xbf16>
    %c24_100 = arith.constant 24 : index
    %c0_101 = arith.constant 0 : index
    %256 = vector.load %arg17[%c24_100, %c0_101] : memref<32x32xbf16, #tpu.memory_space<vmem>>, vector<8x32xbf16>
    %cst_102 = arith.constant dense<0.000000e+00> : vector<8x32xf32>
    %257 = tpu.matmul %255, %256, %cst_102 {dimension_numbers = #tpu.dot_dimension_numbers<[1], [0], [0], [1], [0, 0, 1, 1], [], []>} : vector<8x8xbf16>, vector<8x32xbf16>, vector<8x32xf32> -> vector<8x32xf32>
    %258 = arith.addf %235, %257 : vector<8x32xf32>
    %c0_103 = arith.constant 0 : index
    %c0_104 = arith.constant 0 : index
    %259 = vector.load %arg18[%c0_103, %c0_104] : memref<1x32xf32, #tpu.memory_space<vmem>>, vector<1x32xf32>
    %260 = vector.broadcast %259 : vector<1x32xf32> to vector<8x32xf32>
    %261 = arith.addf %258, %260 : vector<8x32xf32>
    %262 = arith.addf %145, %261 : vector<8x32xf32>
    %c1 = arith.constant 1 : index
    %c0_105 = arith.constant 0 : index
    %c0_106 = arith.constant 0 : index
    %263 = vector.load %arg19[%c1, %c0_105, %c0_106] : memref<3x1x32xf32, #tpu.memory_space<vmem>>, vector<1x1x32xf32>
    %264 = vector.shape_cast %263 : vector<1x1x32xf32> to vector<1x32xf32>
    %c1_107 = arith.constant 1 : index
    %c0_108 = arith.constant 0 : index
    %c0_109 = arith.constant 0 : index
    %265 = vector.load %arg20[%c1_107, %c0_108, %c0_109] : memref<3x1x32xf32, #tpu.memory_space<vmem>>, vector<1x1x32xf32>
    %266 = vector.shape_cast %265 : vector<1x1x32xf32> to vector<1x32xf32>
    %cst_110 = arith.constant dense<0.000000e+00> : vector<8xf32>
    %267 = vector.multi_reduction <add>, %262, %cst_110 [1] : vector<8x32xf32> to vector<8xf32>
    %268 = vector.shape_cast %267 : vector<8xf32> to vector<8x1xf32>
    %cst_111 = arith.constant 3.200000e+01 : f32
    %269 = vector.broadcast %cst_111 : f32 to vector<8x1xf32>
    %270 = arith.divf %268, %269 : vector<8x1xf32>
    %271 = vector.broadcast %270 : vector<8x1xf32> to vector<8x32xf32>
    %272 = arith.subf %262, %271 : vector<8x32xf32>
    %273 = arith.mulf %272, %272 : vector<8x32xf32>
    %cst_112 = arith.constant dense<0.000000e+00> : vector<8xf32>
    %274 = vector.multi_reduction <add>, %273, %cst_112 [1] : vector<8x32xf32> to vector<8xf32>
    %275 = vector.shape_cast %274 : vector<8xf32> to vector<8x1xf32>
    %cst_113 = arith.constant 3.200000e+01 : f32
    %276 = vector.broadcast %cst_113 : f32 to vector<8x1xf32>
    %277 = arith.divf %275, %276 : vector<8x1xf32>
    %278 = vector.broadcast %270 : vector<8x1xf32> to vector<8x32xf32>
    %279 = arith.subf %262, %278 : vector<8x32xf32>
    %cst_114 = arith.constant 9.99999974E-6 : f32
    %280 = vector.broadcast %cst_114 : f32 to vector<8x1xf32>
    %281 = arith.addf %277, %280 : vector<8x1xf32>
    %282 = math.rsqrt %281 : vector<8x1xf32>
    %283 = vector.broadcast %282 : vector<8x1xf32> to vector<8x32xf32>
    %284 = arith.mulf %279, %283 : vector<8x32xf32>
    %285 = vector.broadcast %264 : vector<1x32xf32> to vector<8x32xf32>
    %286 = arith.mulf %284, %285 : vector<8x32xf32>
    %287 = vector.broadcast %266 : vector<1x32xf32> to vector<8x32xf32>
    %288 = arith.addf %286, %287 : vector<8x32xf32>
    %289 = arith.truncf %288 : vector<8x32xf32> to vector<8x32xbf16>
    %c0_115 = arith.constant 0 : index
    %c0_116 = arith.constant 0 : index
    %290 = vector.load %arg21[%c0_115, %c0_116] : memref<32x64xbf16, #tpu.memory_space<vmem>>, vector<32x64xbf16>
    %cst_117 = arith.constant dense<0.000000e+00> : vector<8x64xf32>
    %291 = tpu.matmul %289, %290, %cst_117 {dimension_numbers = #tpu.dot_dimension_numbers<[1], [0], [0], [1], [0, 0, 1, 1], [], []>} : vector<8x32xbf16>, vector<32x64xbf16>, vector<8x64xf32> -> vector<8x64xf32>
    %c0_118 = arith.constant 0 : index
    %c0_119 = arith.constant 0 : index
    %292 = vector.load %arg22[%c0_118, %c0_119] : memref<1x64xf32, #tpu.memory_space<vmem>>, vector<1x64xf32>
    %293 = vector.broadcast %292 : vector<1x64xf32> to vector<8x64xf32>
    %294 = arith.addf %291, %293 : vector<8x64xf32>
    %cst_120 = arith.constant 0.000000e+00 : f32
    %295 = vector.broadcast %cst_120 : f32 to vector<8x64xf32>
    %296 = arith.maximumf %294, %295 : vector<8x64xf32>
    %297 = arith.truncf %296 : vector<8x64xf32> to vector<8x64xbf16>
    %c0_121 = arith.constant 0 : index
    %c0_122 = arith.constant 0 : index
    %298 = vector.load %arg23[%c0_121, %c0_122] : memref<64x32xbf16, #tpu.memory_space<vmem>>, vector<64x32xbf16>
    %cst_123 = arith.constant dense<0.000000e+00> : vector<8x32xf32>
    %299 = tpu.matmul %297, %298, %cst_123 {dimension_numbers = #tpu.dot_dimension_numbers<[1], [0], [0], [1], [0, 0, 1, 1], [], []>} : vector<8x64xbf16>, vector<64x32xbf16>, vector<8x32xf32> -> vector<8x32xf32>
    %c0_124 = arith.constant 0 : index
    %c0_125 = arith.constant 0 : index
    %300 = vector.load %arg24[%c0_124, %c0_125] : memref<1x32xf32, #tpu.memory_space<vmem>>, vector<1x32xf32>
    %301 = vector.broadcast %300 : vector<1x32xf32> to vector<8x32xf32>
    %302 = arith.addf %299, %301 : vector<8x32xf32>
    %303 = arith.addf %288, %302 : vector<8x32xf32>
    %c2 = arith.constant 2 : index
    %c0_126 = arith.constant 0 : index
    %c0_127 = arith.constant 0 : index
    %304 = vector.load %arg19[%c2, %c0_126, %c0_127] : memref<3x1x32xf32, #tpu.memory_space<vmem>>, vector<1x1x32xf32>
    %305 = vector.shape_cast %304 : vector<1x1x32xf32> to vector<1x32xf32>
    %c2_128 = arith.constant 2 : index
    %c0_129 = arith.constant 0 : index
    %c0_130 = arith.constant 0 : index
    %306 = vector.load %arg20[%c2_128, %c0_129, %c0_130] : memref<3x1x32xf32, #tpu.memory_space<vmem>>, vector<1x1x32xf32>
    %307 = vector.shape_cast %306 : vector<1x1x32xf32> to vector<1x32xf32>
    %cst_131 = arith.constant dense<0.000000e+00> : vector<8xf32>
    %308 = vector.multi_reduction <add>, %303, %cst_131 [1] : vector<8x32xf32> to vector<8xf32>
    %309 = vector.shape_cast %308 : vector<8xf32> to vector<8x1xf32>
    %cst_132 = arith.constant 3.200000e+01 : f32
    %310 = vector.broadcast %cst_132 : f32 to vector<8x1xf32>
    %311 = arith.divf %309, %310 : vector<8x1xf32>
    %312 = vector.broadcast %311 : vector<8x1xf32> to vector<8x32xf32>
    %313 = arith.subf %303, %312 : vector<8x32xf32>
    %314 = arith.mulf %313, %313 : vector<8x32xf32>
    %cst_133 = arith.constant dense<0.000000e+00> : vector<8xf32>
    %315 = vector.multi_reduction <add>, %314, %cst_133 [1] : vector<8x32xf32> to vector<8xf32>
    %316 = vector.shape_cast %315 : vector<8xf32> to vector<8x1xf32>
    %cst_134 = arith.constant 3.200000e+01 : f32
    %317 = vector.broadcast %cst_134 : f32 to vector<8x1xf32>
    %318 = arith.divf %316, %317 : vector<8x1xf32>
    %319 = vector.broadcast %311 : vector<8x1xf32> to vector<8x32xf32>
    %320 = arith.subf %303, %319 : vector<8x32xf32>
    %cst_135 = arith.constant 9.99999974E-6 : f32
    %321 = vector.broadcast %cst_135 : f32 to vector<8x1xf32>
    %322 = arith.addf %318, %321 : vector<8x1xf32>
    %323 = math.rsqrt %322 : vector<8x1xf32>
    %324 = vector.broadcast %323 : vector<8x1xf32> to vector<8x32xf32>
    %325 = arith.mulf %320, %324 : vector<8x32xf32>
    %326 = vector.broadcast %305 : vector<1x32xf32> to vector<8x32xf32>
    %327 = arith.mulf %325, %326 : vector<8x32xf32>
    %328 = vector.broadcast %307 : vector<1x32xf32> to vector<8x32xf32>
    %329 = arith.addf %327, %328 : vector<8x32xf32>
    %c0_136 = arith.constant 0 : index
    %c0_137 = arith.constant 0 : index
    %c0_138 = arith.constant 0 : index
    %330 = vector.load %arg25[%c0_136, %c0_137, %c0_138] : memref<1x8x32xf32, #tpu.memory_space<vmem>>, vector<1x8x32xf32>
    %331 = vector.shape_cast %330 : vector<1x8x32xf32> to vector<8x32xf32>
    %332 = vector.shape_cast %329 : vector<8x32xf32> to vector<1x8x32xf32>
    tpu.vector_store %arg25[%c0_136, %c0_137, %c0_138], %332 {strides = array<i32>} : memref<1x8x32xf32, #tpu.memory_space<vmem>>, vector<1x8x32xf32>,
    return
  }
  func.func @transform_0(%arg0: i32) -> (i32, i32, i32) {
    %c0_i32 = arith.constant 0 : i32
    %c0_i32_0 = arith.constant 0 : i32
    %c0_i32_1 = arith.constant 0 : i32
    return %arg0, %c0_i32, %c0_i32_0 : i32, i32, i32
  }
  func.func @transform_1(%arg0: i32) -> (i32, i32, i32) {
    %c0_i32 = arith.constant 0 : i32
    %c0_i32_0 = arith.constant 0 : i32
    %c0_i32_1 = arith.constant 0 : i32
    return %arg0, %c0_i32, %c0_i32_0 : i32, i32, i32
  }
  func.func @transform_2(%arg0: i32) -> (i32, i32, i32) {
    %c0_i32 = arith.constant 0 : i32
    %c0_i32_0 = arith.constant 0 : i32
    %c0_i32_1 = arith.constant 0 : i32
    return %arg0, %c0_i32, %c0_i32_0 : i32, i32, i32
  }
  func.func @transform_3(%arg0: i32) -> (i32, i32, i32) {
    %c0_i32 = arith.constant 0 : i32
    %c0_i32_0 = arith.constant 0 : i32
    %c0_i32_1 = arith.constant 0 : i32
    return %arg0, %c0_i32, %c0_i32_0 : i32, i32, i32
  }
  func.func @transform_4(%arg0: i32) -> (i32, i32) {
    %c0_i32 = arith.constant 0 : i32
    %c0_i32_0 = arith.constant 0 : i32
    %c0_i32_1 = arith.constant 0 : i32
    return %c0_i32, %c0_i32_0 : i32, i32
  }
  func.func @transform_5(%arg0: i32) -> (i32, i32) {
    %c0_i32 = arith.constant 0 : i32
    %c0_i32_0 = arith.constant 0 : i32
    %c0_i32_1 = arith.constant 0 : i32
    return %c0_i32, %c0_i32_0 : i32, i32
  }
  func.func @transform_6(%arg0: i32) -> (i32, i32) {
    %c0_i32 = arith.constant 0 : i32
    %c0_i32_0 = arith.constant 0 : i32
    %c0_i32_1 = arith.constant 0 : i32
    return %c0_i32, %c0_i32_0 : i32, i32
  }
  func.func @transform_7(%arg0: i32) -> (i32, i32) {
    %c0_i32 = arith.constant 0 : i32
    %c0_i32_0 = arith.constant 0 : i32
    %c0_i32_1 = arith.constant 0 : i32
    return %c0_i32, %c0_i32_0 : i32, i32
  }
  func.func @transform_8(%arg0: i32) -> (i32, i32) {
    %c0_i32 = arith.constant 0 : i32
    %c0_i32_0 = arith.constant 0 : i32
    %c0_i32_1 = arith.constant 0 : i32
    return %c0_i32, %c0_i32_0 : i32, i32
  }
  func.func @transform_9(%arg0: i32) -> (i32, i32) {
    %c0_i32 = arith.constant 0 : i32
    %c0_i32_0 = arith.constant 0 : i32
    %c0_i32_1 = arith.constant 0 : i32
    return %c0_i32, %c0_i32_0 : i32, i32
  }
  func.func @transform_10(%arg0: i32) -> (i32, i32) {
    %c0_i32 = arith.constant 0 : i32
    %c0_i32_0 = arith.constant 0 : i32
    %c0_i32_1 = arith.constant 0 : i32
    return %c0_i32, %c0_i32_0 : i32, i32
  }
  func.func @transform_11(%arg0: i32) -> (i32, i32) {
    %c0_i32 = arith.constant 0 : i32
    %c0_i32_0 = arith.constant 0 : i32
    %c0_i32_1 = arith.constant 0 : i32
    return %c0_i32, %c0_i32_0 : i32, i32
  }
  func.func @transform_12(%arg0: i32) -> (i32, i32) {
    %c0_i32 = arith.constant 0 : i32
    %c0_i32_0 = arith.constant 0 : i32
    %c0_i32_1 = arith.constant 0 : i32
    return %c0_i32, %c0_i32_0 : i32, i32
  }
  func.func @transform_13(%arg0: i32) -> (i32, i32) {
    %c0_i32 = arith.constant 0 : i32
    %c0_i32_0 = arith.constant 0 : i32
    %c0_i32_1 = arith.constant 0 : i32
    return %c0_i32, %c0_i32_0 : i32, i32
  }
  func.func @transform_14(%arg0: i32) -> (i32, i32) {
    %c0_i32 = arith.constant 0 : i32
    %c0_i32_0 = arith.constant 0 : i32
    %c0_i32_1 = arith.constant 0 : i32
    return %c0_i32, %c0_i32_0 : i32, i32
  }
  func.func @transform_15(%arg0: i32) -> (i32, i32) {
    %c0_i32 = arith.constant 0 : i32
    %c0_i32_0 = arith.constant 0 : i32
    %c0_i32_1 = arith.constant 0 : i32
    return %c0_i32, %c0_i32_0 : i32, i32
  }
  func.func @transform_16(%arg0: i32) -> (i32, i32) {
    %c0_i32 = arith.constant 0 : i32
    %c0_i32_0 = arith.constant 0 : i32
    %c0_i32_1 = arith.constant 0 : i32
    return %c0_i32, %c0_i32_0 : i32, i32
  }
  func.func @transform_17(%arg0: i32) -> (i32, i32) {
    %c0_i32 = arith.constant 0 : i32
    %c0_i32_0 = arith.constant 0 : i32
    %c0_i32_1 = arith.constant 0 : i32
    return %c0_i32, %c0_i32_0 : i32, i32
  }
  func.func @transform_18(%arg0: i32) -> (i32, i32, i32) {
    %c0_i32 = arith.constant 0 : i32
    %c0_i32_0 = arith.constant 0 : i32
    %c0_i32_1 = arith.constant 0 : i32
    %c0_i32_2 = arith.constant 0 : i32
    return %c0_i32, %c0_i32_0, %c0_i32_1 : i32, i32, i32
  }
  func.func @transform_19(%arg0: i32) -> (i32, i32, i32) {
    %c0_i32 = arith.constant 0 : i32
    %c0_i32_0 = arith.constant 0 : i32
    %c0_i32_1 = arith.constant 0 : i32
    %c0_i32_2 = arith.constant 0 : i32
    return %c0_i32, %c0_i32_0, %c0_i32_1 : i32, i32, i32
  }
  func.func @transform_20(%arg0: i32) -> (i32, i32) {
    %c0_i32 = arith.constant 0 : i32
    %c0_i32_0 = arith.constant 0 : i32
    %c0_i32_1 = arith.constant 0 : i32
    return %c0_i32, %c0_i32_0 : i32, i32
  }
  func.func @transform_21(%arg0: i32) -> (i32, i32) {
    %c0_i32 = arith.constant 0 : i32
    %c0_i32_0 = arith.constant 0 : i32
    %c0_i32_1 = arith.constant 0 : i32
    return %c0_i32, %c0_i32_0 : i32, i32
  }
  func.func @transform_22(%arg0: i32) -> (i32, i32) {
    %c0_i32 = arith.constant 0 : i32
    %c0_i32_0 = arith.constant 0 : i32
    %c0_i32_1 = arith.constant 0 : i32
    return %c0_i32, %c0_i32_0 : i32, i32
  }
  func.func @transform_23(%arg0: i32) -> (i32, i32) {
    %c0_i32 = arith.constant 0 : i32
    %c0_i32_0 = arith.constant 0 : i32
    %c0_i32_1 = arith.constant 0 : i32
    return %c0_i32, %c0_i32_0 : i32, i32
  }
  func.func @transform_24(%arg0: i32) -> (i32, i32, i32) {
    %c0_i32 = arith.constant 0 : i32
    %c0_i32_0 = arith.constant 0 : i32
    %c0_i32_1 = arith.constant 0 : i32
    return %arg0, %c0_i32, %c0_i32_0 : i32, i32, i32
  }
}

</mosaic_0001>

<bundles_post_ra>
// kernel: tpu_custom_call.1
= control target key start
LH: loop header
LB: loop body
LE: loop exit
PB: predicated region body
PF: predicated region fallthrough
CT: control target
= control target key end

     0   :  { %s5305_s0 = inlined_call_operand.vmem [shape: f32[2,8,32], index: 0, kind: input, shape index: {}]   ;;  %s5306_s1 = inlined_call_operand.hbm [shape: f32[2,8,32], index: 1, kind: input, shape index: {}]   ;;  %s5307_s2 = inlined_call_operand.vmem [shape: f32[2,16,32], index: 2, kind: input, shape index: {}]   ;;  %s5308_s3 = inlined_call_operand.hbm [shape: f32[2,16,32], index: 3, kind: input, shape index: {}]   ;;  %s5309_s4 = inlined_call_operand.hbm [shape: bf16[32,64], index: 4, kind: input, shape index: {}]   ;;  %s5310_s5 = inlined_call_operand.hbm [shape: f32[1,64], index: 5, kind: input, shape index: {}]   ;;  %s5311_s6 = inlined_call_operand.hbm [shape: bf16[32,32], index: 6, kind: input, shape index: {}]   ;;  %s5312_s7 = inlined_call_operand.hbm [shape: f32[1,32], index: 7, kind: input, shape index: {}]   ;;  %s5313_s8 = inlined_call_operand.hbm [shape: bf16[32,32], index: 8, kind: input, shape index: {}]   ;;  %s5314_s9 = inlined_call_operand.hbm [shape: f32[1,32], index: 9, kind: input, shape index: {}]   ;;  %s5315_s10 = inlined_call_operand.vmem [shape: bf16[32,32], index: 10, kind: input, shape index: {}]   ;;  %s5316_s11 = inlined_call_operand.hbm [shape: f32[1,32], index: 11, kind: input, shape index: {}]   ;;  %s5317_s12 = inlined_call_operand.hbm [shape: bf16[32,32], index: 12, kind: input, shape index: {}]   ;;  %s5318_s13 = inlined_call_operand.hbm [shape: f32[1,32], index: 13, kind: input, shape index: {}]   ;;  %s5319_s14 = inlined_call_operand.hbm [shape: bf16[32,32], index: 14, kind: input, shape index: {}]   ;;  %s5320_s15 = inlined_call_operand.hbm [shape: f32[1,32], index: 15, kind: input, shape index: {}]   ;;  %s5321_s16 = inlined_call_operand.hbm [shape: bf16[32,32], index: 16, kind: input, shape index: {}]   ;;  %s5322_s17 = inlined_call_operand.hbm [shape: f32[1,32], index: 17, kind: input, shape index: {}]   ;;  %s5323_s18 = inlined_call_operand.hbm [shape: f32[3,1,32], index: 18, kind: input, shape index: {}]   ;;  %s5324_s19 = inlined_call_operand.hbm [shape: f32[3,1,32], index: 19, kind: input, shape index: {}]   ;;  %s5325_s20 = inlined_call_operand.hbm [shape: bf16[32,64], index: 20, kind: input, shape index: {}]   ;;  %s5326_s21 = inlined_call_operand.vmem [shape: f32[1,64], index: 21, kind: input, shape index: {}]   ;;  %s5327_s22 = inlined_call_operand.vmem [shape: bf16[64,32], index: 22, kind: input, shape index: {}]   ;;  %s5328_s23 = inlined_call_operand.vmem [shape: f32[1,32], index: 23, kind: input, shape index: {}]   ;;  %s5329_s24 = inlined_call_operand.hbm [shape: f32[2,8,32], index: 24, kind: output, shape index: {}]  }
   0x1   :  { %5340 = sst [smem:[#allocation45_spill]] %s5305_s0 }
   0x2   :  { %5341 = sst [smem:[#allocation46_spill]] %s5306_s1 }
   0x3   :  { %5342 = sst [smem:[#allocation47_spill]] %s5307_s2 }
   0x4   :  { %5343 = sst [smem:[#allocation48_spill]] %s5308_s3 }
   0x5   :  { %5344 = sst [smem:[#allocation49_spill]] %s5309_s4 }
   0x6   :  { %5345 = sst [smem:[#allocation50_spill]] %s5310_s5 }
   0x7   :  { %5346 = sst [smem:[#allocation51_spill]] %s5311_s6 }
   0x8   :  { %5347 = sst [smem:[#allocation52_spill]] %s5312_s7 }
   0x9   :  { %5348 = sst [smem:[#allocation53_spill]] %s5313_s8 }
   0xa   :  { %5349 = sst [smem:[#allocation54_spill]] %s5314_s9 }
   0xb   :  { %5350 = sst [smem:[#allocation55_spill]] %s5315_s10 }
   0xc   :  { %5351 = sst [smem:[#allocation56_spill]] %s5316_s11 }
   0xd   :  { %5352 = sst [smem:[#allocation57_spill]] %s5317_s12 }
   0xe   :  { %5353 = sst [smem:[#allocation58_spill]] %s5318_s13 }
   0xf   :  { %5354 = sst [smem:[#allocation59_spill]] %s5319_s14 }
  0x10   :  { %5355 = sst [smem:[#allocation60_spill]] %s5320_s15 }
  0x11   :  { %5356 = sst [smem:[#allocation61_spill]] %s5321_s16 }
  0x12   :  { %5357 = sst [smem:[#allocation62_spill]] %s5326_s21 }
  0x13   :  { %5358 = sst [smem:[#allocation63_spill]] %s5327_s22 }
  0x14   :  { %5359 = sst [smem:[#allocation64_spill]] %s5328_s23 }
  0x15   :  { %5360 = sst [smem:[#allocation65_spill]] %s5329_s24 }
  0x16   :  { %29 = vsyncpa [#allocation3], 0 }
  0x17   :  { %31 = vsyncpa [#allocation3 + $0x1], 0 }
  0x18   :  { %32 = vsyncpa [#allocation6], 0 }
  0x19   :  { %34 = vsyncpa [#allocation6 + $0x1], 0 }
  0x1a   :  { %35 = vsyncpa [#allocation9], 0 }
  0x1b   :  { %36 = vsyncpa [#allocation12], 0 }
  0x1c   :  { %37 = vsyncpa [#allocation15], 0 }
  0x1d   :  { %38 = vsyncpa [#allocation18], 0 }
  0x1e   :  { %39 = vsyncpa [#allocation21], 0 }
  0x1f   :  { %40 = vsyncpa [#allocation24], 0 }
  0x20   :  { %41 = vsyncpa [#allocation27], 0 }
  0x21   :  { %42 = vsyncpa [#allocation30], 0 }
  0x22   :  { %43 = vsyncpa [#allocation4], 0 }
  0x23   :  { %45 = vsyncpa [#allocation4 + $0x1], 0  ;;  %s4614_s5 = smov 0   ;;  %s4616_s26 = smov 0  }
  0x24   :  { %s4618_s27 = smov 0   ;;  %s4620_s28 = smov 0  }
  0x25 LB: > { %s4455_s6 = smov [#allocation7]   ;;  %s4635_s29 = sadd.s32 4294967295, %s4453_s28   ;;  %s4453_s28 = sphi %s4620_s28, %s5421_s28   ;;  %s4449_s27 = sphi %s4618_s27, %s5420_s27   ;;  %s4445_s26 = sphi %s4616_s26, %s5419_s26   ;;  %s4441_s5 = sphi %s4614_s5, %s5418_s5  }
  0x26   : > { %s618_s2 = sshll.u32 %s4455_s6, 4  ;;  %p3207_p0 = scmp.ge.s32.totalorder %s4453_s28, 1  ;;  %s619_s2 = int_to_ptr.vmem [resolvable:$true] %s618_s2 }
  0x27   : > { %p5336_p1 = scmp.eq.s32.totalorder %s4635_s29, 0  ;;  %p606_p2 = scmp.lt.s32.totalorder %s4453_s28, 3 }
  0x28   : > { %s4456_s7 = smov [#allocation8]   ;;  %s4457_s25 = smov [#allocation11]  }
  0x29   : > { %p4640_p3 = pnand %p3207_p0, %p606_p2  ;;  %s632_s30 = sshll.u32 %s4456_s7, 4  ;;  %s633_s30 = int_to_ptr.vmem [resolvable:$true] %s632_s30 }
  0x2a   : > { %s656_s8 = sshll.u32 %s4457_s25, 4  ;;  %s3888_s1 = scalar_lea.vmem %s619_s2, 256  ;;  %s4653_s8 = int_to_ptr.vmem [resolvable:$true] %s656_s8 }
  0x2b   : > { %s5361_s0 = scalar_select %p4640_p3, 1, 0 }
  0x2c   : > { %p3666_p5 = pneg %p4640_p3  ;;  %p3889_p8 = scmp.ne.s32.totalorder %s619_s2, %s3888_s1 }
  0x2d   : > { %5362 = sst [smem:[#allocation44_spill]] %s5361_s0  ;;  %p3896_p11 = scmp.lt.s32.totalorder %s619_s2, %s619_s2 }
  0x2e   : > { %p4649_p6 = pnand %p3666_p5, %p5336_p1  ;;  %p3897_p12 = scmp.lt.s32.totalorder %s3888_s1, %s3888_s1 }
  0x30   : > { %p4657_p7 = pneg %p4649_p6  ;;  %p3898_p13 = por %p3897_p12, %p3896_p11 }
  0x32   : > { %p3891_p9 = pnand %p3889_p8, %p4657_p7 }
  0x34   : > { %p3892_p10 = pneg %p3891_p9 }
  0x36   : > { %p3899_p0 = pnand %p3898_p13, %p3892_p10 }
  0x38   : > { %3902 = shalt.err (!%p3899_p0)
}
  0x39   : > { %s4458_s6 = smov 64   ;;  %s4459_s7 = smov 4  }
  0x3a   : > { %s5365_s23 = sld [smem:[#allocation49_spill]]  ;;  %s3914_s21 = scalar_lea.vmem %s633_s30, 16 }
  0x3b   : > { %p3915_p2 = scmp.ne.s32.totalorder %s633_s30, %s3914_s21  ;;  %s3921_s1 = scalar_lea.vmem %s633_s30, 32 }
  0x3c   : > { %p3922_p9 = scmp.lt.s32.totalorder %s633_s30, %s633_s30  ;;  %p3923_p10 = scmp.lt.s32.totalorder %s3921_s1, %s3914_s21 }
  0x3d   : > { %p3917_p5 = pnand %p3915_p2, %p4657_p7 }
  0x3e   : > { %p3924_p11 = por %p3923_p10, %p3922_p9 }
  0x3f   : > { %p3918_p8 = pneg %p3917_p5 }
  0x40   : > { %3669 = dma.hbm_to_vmem [thread:$0]  (!%p4649_p6), %s5365_s23, 256, %s619_s2, [#allocation6], %s4458_s6, %s4458_s6, %s4459_s7  }
  0x41   : > { %p3925_p12 = pnand %p3924_p11, %p3918_p8 }
  0x43   : > { %3928 = shalt.err (!%p3925_p12)
}
  0x44   : > { %s5366_s0 = sld [smem:[#allocation50_spill]]  ;;  %s3940_s23 = scalar_lea.vmem %s4653_s8, 16 }
  0x45   : > { %p3941_p13 = scmp.ne.s32.totalorder %s4653_s8, %s3940_s23  ;;  %s3947_s21 = scalar_lea.vmem %s4653_s8, 32 }
  0x46   : > { %p3948_p5 = scmp.lt.s32.totalorder %s4653_s8, %s4653_s8  ;;  %p3949_p8 = scmp.lt.s32.totalorder %s3947_s21, %s3940_s23 }
  0x47   : > { %p3943_p0 = pnand %p3941_p13, %p4657_p7 }
  0x48   : > { %p3950_p9 = por %p3949_p8, %p3948_p5 }
  0x49   : > { %p3944_p2 = pneg %p3943_p0 }
  0x4a   : > { %3672 = dma.hbm_to_vmem [thread:$0]  (!%p4649_p6), %s5366_s0, 16, %s633_s30, [#allocation9]  }
  0x4b   : > { %p3951_p10 = pnand %p3950_p9, %p3944_p2 }
  0x4d   : > { %3954 = shalt.err (!%p3951_p10)
}
  0x4e   : > { %s5367_s24 = sld [smem:[#allocation52_spill]]  ;;  %s4460_s2 = smov [#allocation14]  }
  0x4f   : > { %s680_s0 = sshll.u32 %s4460_s2, 4  ;;  %s4461_s30 = smov [#allocation17]   ;;  %s681_s0 = int_to_ptr.vmem [resolvable:$true] %s680_s0 }
  0x50   : > { %s704_s25 = sshll.u32 %s4461_s30, 4  ;;  %s3966_s1 = scalar_lea.vmem %s681_s0, 16  ;;  %s705_s25 = int_to_ptr.vmem [resolvable:$true] %s704_s25 }
  0x51   : > { %p3967_p11 = scmp.ne.s32.totalorder %s681_s0, %s3966_s1  ;;  %s3973_s23 = scalar_lea.vmem %s681_s0, 32 }
  0x52   : > { %p3974_p0 = scmp.lt.s32.totalorder %s681_s0, %s681_s0  ;;  %p3975_p2 = scmp.lt.s32.totalorder %s3973_s23, %s3966_s1 }
  0x53   : > { %p3969_p12 = pnand %p3967_p11, %p4657_p7 }
  0x54   : > { %3678 = dma.hbm_to_vmem [thread:$0]  (!%p4649_p6), %s5367_s24, 16, %s4653_s8, [#allocation12]  }
  0x55   : > { %p3970_p13 = pneg %p3969_p12  ;;  %p3976_p5 = por %p3975_p2, %p3974_p0 }
  0x57   : > { %p3977_p8 = pnand %p3976_p5, %p3970_p13 }
  0x59   : > { %3980 = shalt.err (!%p3977_p8)
}
  0x5a   : > { %s5368_s9 = sld [smem:[#allocation54_spill]]  ;;  %s3992_s10 = scalar_lea.vmem %s705_s25, 256 }
  0x5b   : > { %p3993_p9 = scmp.ne.s32.totalorder %s705_s25, %s3992_s10  ;;  %p4000_p12 = scmp.lt.s32.totalorder %s705_s25, %s705_s25 }
  0x5c   : > { %p4001_p4 = scmp.lt.s32.totalorder %s3992_s10, %s3992_s10 }
  0x5d   : > { %p3995_p10 = pnand %p3993_p9, %p4657_p7 }
  0x5e   : > { %p4002_p1 = por %p4001_p4, %p4000_p12 }
  0x5f   : > { %p3996_p11 = pneg %p3995_p10 }
  0x60   : > { %3684 = dma.hbm_to_vmem [thread:$0]  (!%p4649_p6), %s5368_s9, 16, %s681_s0, [#allocation15]  }
  0x61   : > { %p4003_p3 = pnand %p4002_p1, %p3996_p11 }
  0x63   : > { %4006 = shalt.err (!%p4003_p3)
}
  0x64   : > { %s5369_s12 = sld [smem:[#allocation57_spill]]  ;;  %s4462_s2 = smov [#allocation20]  }
  0x65   : > { %s728_s0 = sshll.u32 %s4462_s2, 4  ;;  %s4463_s30 = smov [#allocation23]   ;;  %s729_s0 = int_to_ptr.vmem [resolvable:$true] %s728_s0 }
  0x66   : > { %s752_s1 = sshll.u32 %s4463_s30, 4  ;;  %s4018_s23 = scalar_lea.vmem %s729_s0, 256  ;;  %s753_s1 = int_to_ptr.vmem [resolvable:$true] %s752_s1 }
  0x67   : > { %p4019_p13 = scmp.ne.s32.totalorder %s729_s0, %s4018_s23  ;;  %p4026_p4 = scmp.lt.s32.totalorder %s729_s0, %s729_s0 }
  0x68   : > { %p4027_p0 = scmp.lt.s32.totalorder %s4018_s23, %s4018_s23 }
  0x69   : > { %p4021_p1 = pnand %p4019_p13, %p4657_p7 }
  0x6a   : > { %3690 = dma.hbm_to_vmem [thread:$0]  (!%p4649_p6), %s5369_s12, 256, %s705_s25, [#allocation18], %s4458_s6, %s4458_s6, %s4459_s7  }
  0x6b   : > { %p4022_p3 = pneg %p4021_p1  ;;  %p4028_p2 = por %p4027_p0, %p4026_p4 }
  0x6d   : > { %p4029_p5 = pnand %p4028_p2, %p4022_p3 }
  0x6f   : > { %4032 = shalt.err (!%p4029_p5)
}
  0x70   : > { %s5370_s14 = sld [smem:[#allocation59_spill]]  ;;  %s4044_s8 = scalar_lea.vmem %s753_s1, 256 }
  0x71   : > { %p4045_p8 = scmp.ne.s32.totalorder %s753_s1, %s4044_s8  ;;  %p4052_p11 = scmp.lt.s32.totalorder %s753_s1, %s753_s1 }
  0x72   : > { %p4053_p12 = scmp.lt.s32.totalorder %s4044_s8, %s4044_s8 }
  0x73   : > { %p4047_p9 = pnand %p4045_p8, %p4657_p7 }
  0x74   : > { %p4054_p13 = por %p4053_p12, %p4052_p11 }
  0x75   : > { %p4048_p10 = pneg %p4047_p9 }
  0x76   : > { %3696 = dma.hbm_to_vmem [thread:$0]  (!%p4649_p6), %s5370_s14, 256, %s729_s0, [#allocation21], %s4458_s6, %s4458_s6, %s4459_s7  }
  0x77   : > { %p4055_p1 = pnand %p4054_p13, %p4048_p10 }
  0x79   : > { %4058 = shalt.err (!%p4055_p1)
}
  0x7a   : > { %s5371_s16 = sld [smem:[#allocation61_spill]]  ;;  %s4464_s24 = smov [#allocation26]  }
  0x7b   : > { %s776_s2 = sshll.u32 %s4464_s24, 4  ;;  %s777_s2 = int_to_ptr.vmem [resolvable:$true] %s776_s2 }
  0x7c   : > { %s4070_s0 = scalar_lea.vmem %s777_s2, 48  ;;  %s4077_s30 = scalar_lea.vmem %s777_s2, 64 }
  0x7d   : > { %p4071_p3 = scmp.ne.s32.totalorder %s777_s2, %s4070_s0  ;;  %p4078_p2 = scmp.lt.s32.totalorder %s777_s2, %s777_s2 }
  0x7e   : > { %p4079_p5 = scmp.lt.s32.totalorder %s4077_s30, %s4070_s0 }
  0x7f   : > { %p4073_p4 = pnand %p4071_p3, %p4657_p7 }
  0x80   : > { %3702 = dma.hbm_to_vmem [thread:$0]  (!%p4649_p6), %s5371_s16, 256, %s753_s1, [#allocation24], %s4458_s6, %s4458_s6, %s4459_s7  }
  0x81   : > { %p4074_p0 = pneg %p4073_p4  ;;  %p4080_p8 = por %p4079_p5, %p4078_p2 }
  0x83   : > { %p4081_p9 = pnand %p4080_p8, %p4074_p0 }
  0x85   : > { %4084 = shalt.err (!%p4081_p9)
}
  0x86   : > { %s5338_s23 = smov 16   ;;  %s4466_s25 = smov 1  }
  0x87   : > { %3708 = dma.hbm_to_vmem [thread:$0]  (!%p4649_p6), %s5323_s18, 48, %s777_s2, [#allocation27], %s5338_s23, %s5338_s23, %s4466_s25  }
  0x88   : > { %s4467_s8 = smov [#allocation10]   ;;  %s4468_s22 = smov [#allocation13]  }
  0x89   : > { %s642_s10 = sshll.u32 %s4467_s8, 4  ;;  %s666_s24 = sshll.u32 %s4468_s22, 4  ;;  %s643_s10 = int_to_ptr.vmem [resolvable:$true] %s642_s10  ;;  %s667_s24 = int_to_ptr.vmem [resolvable:$true] %s666_s24 }
  0x8a   : > { %s4096_s0 = scalar_lea.vmem %s643_s10, 256  ;;  %p4104_p13 = scmp.lt.s32.totalorder %s643_s10, %s643_s10 }
  0x8b   : > { %p4097_p10 = scmp.ne.s32.totalorder %s643_s10, %s4096_s0  ;;  %p4105_p1 = scmp.lt.s32.totalorder %s4096_s0, %s4096_s0 }
  0x8d   : > { %p4099_p11 = pnand %p4097_p10, %p4657_p7  ;;  %p4106_p3 = por %p4105_p1, %p4104_p13 }
  0x8f   : > { %p4100_p12 = pneg %p4099_p11 }
  0x91   : > { %p4107_p4 = pnand %p4106_p3, %p4100_p12 }
  0x93   : > { %4110 = shalt.err (!%p4107_p4)
}
  0x94   : > { %s5372_s1 = sld [smem:[#allocation51_spill]]  ;;  %s4122_s21 = scalar_lea.vmem %s667_s24, 256 }
  0x95   : > { %p4123_p0 = scmp.ne.s32.totalorder %s667_s24, %s4122_s21  ;;  %p4130_p8 = scmp.lt.s32.totalorder %s667_s24, %s667_s24 }
  0x96   : > { %p4131_p9 = scmp.lt.s32.totalorder %s4122_s21, %s4122_s21 }
  0x97   : > { %p4125_p2 = pnand %p4123_p0, %p4657_p7 }
  0x98   : > { %p4132_p10 = por %p4131_p9, %p4130_p8 }
  0x99   : > { %p4126_p5 = pneg %p4125_p2 }
  0x9a   : > { %3675 = dma.hbm_to_vmem [thread:$0]  (!%p4649_p6), %s5372_s1, 256, %s643_s10, [#allocation9], %s4458_s6, %s4458_s6, %s4459_s7  }
  0x9b   : > { %p4133_p11 = pnand %p4132_p10, %p4126_p5 }
  0x9d   : > { %4136 = shalt.err (!%p4133_p11)
}
  0x9e   : > { %s5373_s0 = sld [smem:[#allocation53_spill]]  ;;  %s4469_s10 = smov [#allocation16]  }
  0x9f   : > { %s694_s2 = sshll.u32 %s4469_s10, 4  ;;  %s4470_s30 = smov [#allocation19]   ;;  %s695_s2 = int_to_ptr.vmem [resolvable:$true] %s694_s2 }
  0xa0   : > { %s718_s1 = sshll.u32 %s4470_s30, 4  ;;  %s4148_s21 = scalar_lea.vmem %s695_s2, 16  ;;  %s719_s1 = int_to_ptr.vmem [resolvable:$true] %s718_s1 }
  0xa1   : > { %p4149_p12 = scmp.ne.s32.totalorder %s695_s2, %s4148_s21  ;;  %s4155_s23 = scalar_lea.vmem %s695_s2, 32 }
  0xa2   : > { %p4156_p3 = scmp.lt.s32.totalorder %s695_s2, %s695_s2  ;;  %p4157_p4 = scmp.lt.s32.totalorder %s4155_s23, %s4148_s21 }
  0xa3   : > { %p4151_p13 = pnand %p4149_p12, %p4657_p7 }
  0xa4   : > { %3681 = dma.hbm_to_vmem [thread:$0]  (!%p4649_p6), %s5373_s0, 256, %s667_s24, [#allocation12], %s4458_s6, %s4458_s6, %s4459_s7  }
  0xa5   : > { %p4152_p1 = pneg %p4151_p13  ;;  %p4158_p0 = por %p4157_p4, %p4156_p3 }
  0xa7   : > { %p4159_p2 = pnand %p4158_p0, %p4152_p1 }
  0xa9   : > { %4162 = shalt.err (!%p4159_p2)
}
  0xaa   : > { %s5374_s11 = sld [smem:[#allocation56_spill]]  ;;  %s4174_s22 = scalar_lea.vmem %s719_s1, 16 }
  0xab   : > { %p4175_p5 = scmp.ne.s32.totalorder %s719_s1, %s4174_s22  ;;  %s4181_s0 = scalar_lea.vmem %s719_s1, 32 }
  0xac   : > { %p4182_p10 = scmp.lt.s32.totalorder %s719_s1, %s719_s1  ;;  %p4183_p11 = scmp.lt.s32.totalorder %s4181_s0, %s4174_s22 }
  0xad   : > { %p4177_p8 = pnand %p4175_p5, %p4657_p7 }
  0xae   : > { %p4184_p12 = por %p4183_p11, %p4182_p10 }
  0xaf   : > { %p4178_p9 = pneg %p4177_p8 }
  0xb0   : > { %3687 = dma.hbm_to_vmem [thread:$0]  (!%p4649_p6), %s5374_s11, 16, %s695_s2, [#allocation15]  }
  0xb1   : > { %p4185_p13 = pnand %p4184_p12, %p4178_p9 }
  0xb3   : > { %4188 = shalt.err (!%p4185_p13)
}
  0xb4   : > { %s5375_s13 = sld [smem:[#allocation58_spill]]  ;;  %s4471_s30 = smov [#allocation22]  }
  0xb5   : > { %s742_s2 = sshll.u32 %s4471_s30, 4  ;;  %s4472_s21 = smov [#allocation25]   ;;  %s743_s2 = int_to_ptr.vmem [resolvable:$true] %s742_s2 }
  0xb6   : > { %s766_s24 = sshll.u32 %s4472_s21, 4  ;;  %s4200_s8 = scalar_lea.vmem %s743_s2, 16  ;;  %s767_s24 = int_to_ptr.vmem [resolvable:$true] %s766_s24 }
  0xb7   : > { %p4201_p1 = scmp.ne.s32.totalorder %s743_s2, %s4200_s8  ;;  %s4207_s22 = scalar_lea.vmem %s743_s2, 32 }
  0xb8   : > { %p4208_p0 = scmp.lt.s32.totalorder %s743_s2, %s743_s2  ;;  %p4209_p2 = scmp.lt.s32.totalorder %s4207_s22, %s4200_s8 }
  0xb9   : > { %p4203_p3 = pnand %p4201_p1, %p4657_p7 }
  0xba   : > { %3693 = dma.hbm_to_vmem [thread:$0]  (!%p4649_p6), %s5375_s13, 16, %s719_s1, [#allocation18]  }
  0xbb   : > { %p4204_p4 = pneg %p4203_p3  ;;  %p4210_p5 = por %p4209_p2, %p4208_p0 }
  0xbd   : > { %p4211_p8 = pnand %p4210_p5, %p4204_p4 }
  0xbf   : > { %4214 = shalt.err (!%p4211_p8)
}
  0xc0   : > { %s5376_s15 = sld [smem:[#allocation60_spill]]  ;;  %s4226_s23 = scalar_lea.vmem %s767_s24, 16 }
  0xc1   : > { %p4227_p9 = scmp.ne.s32.totalorder %s767_s24, %s4226_s23  ;;  %s4233_s10 = scalar_lea.vmem %s767_s24, 32 }
  0xc2   : > { %p4234_p12 = scmp.lt.s32.totalorder %s767_s24, %s767_s24  ;;  %p4235_p13 = scmp.lt.s32.totalorder %s4233_s10, %s4226_s23 }
  0xc3   : > { %p4229_p10 = pnand %p4227_p9, %p4657_p7 }
  0xc4   : > { %p4236_p1 = por %p4235_p13, %p4234_p12 }
  0xc5   : > { %p4230_p11 = pneg %p4229_p10 }
  0xc6   : > { %3699 = dma.hbm_to_vmem [thread:$0]  (!%p4649_p6), %s5376_s15, 16, %s743_s2, [#allocation21]  }
  0xc7   : > { %p4237_p3 = pnand %p4236_p1, %p4230_p11 }
  0xc9   : > { %4240 = shalt.err (!%p4237_p3)
}
  0xca   : > { %3705 = dma.hbm_to_vmem [thread:$0]  (!%p4649_p6), %s5322_s17, 16, %s767_s24, [#allocation24]  }
  0xcb   : > { %s4473_s8 = smov [#allocation28]   ;;  %s4474_s22 = smov [#allocation29]  }
  0xcc   : > { %s789_s2 = sshll.u32 %s4473_s8, 4  ;;  %s802_s1 = sshll.u32 %s4474_s22, 4  ;;  %s790_s2 = int_to_ptr.vmem [resolvable:$true] %s789_s2  ;;  %s803_s1 = int_to_ptr.vmem [resolvable:$true] %s802_s1 }
  0xcd   : > { %s4252_s0 = scalar_lea.vmem %s790_s2, 48  ;;  %s4259_s23 = scalar_lea.vmem %s790_s2, 64 }
  0xce   : > { %p4253_p4 = scmp.ne.s32.totalorder %s790_s2, %s4252_s0  ;;  %p4260_p5 = scmp.lt.s32.totalorder %s790_s2, %s790_s2 }
  0xcf   : > { %p4261_p8 = scmp.lt.s32.totalorder %s4259_s23, %s4252_s0 }
  0xd0   : > { %p4255_p0 = pnand %p4253_p4, %p4657_p7 }
  0xd1   : > { %p4262_p9 = por %p4261_p8, %p4260_p5 }
  0xd2   : > { %p4256_p2 = pneg %p4255_p0 }
  0xd4   : > { %p4263_p10 = pnand %p4262_p9, %p4256_p2 }
  0xd6   : > { %4266 = shalt.err (!%p4263_p10)
}
  0xd7   : > { %s5377_s24 = smov 16   ;;  %s4278_s21 = scalar_lea.vmem %s803_s1, 256 }
  0xd8   : > { %3711 = dma.hbm_to_vmem [thread:$0]  (!%p4649_p6), %s5324_s19, 48, %s790_s2, [#allocation27], %s5377_s24, %s5377_s24, %s4466_s25  }
  0xd9   : > { %p4279_p11 = scmp.ne.s32.totalorder %s803_s1, %s4278_s21  ;;  %p4286_p1 = scmp.lt.s32.totalorder %s803_s1, %s803_s1 }
  0xda   : > { %p4287_p3 = scmp.lt.s32.totalorder %s4278_s21, %s4278_s21 }
  0xdb   : > { %p4281_p12 = pnand %p4279_p11, %p4657_p7 }
  0xdc   : > { %p4288_p4 = por %p4287_p3, %p4286_p1 }
  0xdd   : > { %p4282_p13 = pneg %p4281_p12 }
  0xdf   : > { %p4289_p0 = pnand %p4288_p4, %p4282_p13 }
  0xe1   : > { %4292 = shalt.err (!%p4289_p0)
}
  0xe2   : > { %3714 = dma.hbm_to_vmem [thread:$0]  (!%p4649_p6), %s5325_s20, 256, %s803_s1, [#allocation30], %s4458_s6, %s4458_s6, %s4459_s7  }
  0xe3   : > { %s3206_s3 = sadd.s32 4294967294, %s4453_s28   ;;  %s4808_s4 = sadd.s32 1, %s4453_s28  }
  0xe4   : > { %s81_s25 = ssub.s32 %s4453_s28, %s4808_s4  ;;  %s84_s2 = sadd.s32 1, %s4449_s27 }
  0xe5   : > { %p82_p7 = scmp.eq.s32.totalorder %s81_s25, 0  ;;  %p91_p2 = scmp.ne.s32.totalorder %s4449_s27, %s4445_s26 }
  0xe6   : > { %p92_p5 = scmp.eq.s32.totalorder %s4453_s28, 0  ;;  %p97_p8 = scmp.ne.s32.totalorder %s4445_s26, %s4441_s5 }
  0xe7   : > { %s4819_s0 = scalar_select %p82_p7, %s4449_s27, %s84_s2  }
  0xe8   : > { %p4821_p9 = por %p92_p5, %p91_p2  ;;  %p5379_p10 = scmp.eq.s32.totalorder %s4635_s29, 0 }
  0xe9   : > { %p593_p11 = scmp.eq.s32.totalorder %s4635_s29, 1  ;;  %p599_p12 = scmp.eq.s32.totalorder %s3206_s3, 1 }
  0xea   : > { %p4827_p6 = por %p5379_p10, %p97_p8  ;;  %p3742_p13 = scmp.lt.s32.totalorder %s4453_s28, 2 }
  0xeb   : > { %s4834_s7 = sand.u32 1, %s4449_s27   ;;  %p4836_p1 = por %p593_p11, %p91_p2 }
  0xec   : > { %p4840_p3 = por %p599_p12, %p97_p8  ;;  %s3225_s10 = sshll.u32 %s4834_s7, 3 }
  0xed   : > { %s5381_s1 = scalar_select %p4836_p1, 1, 0 }
  0xee   : > { %s5382_s24 = scalar_select %p4840_p3, 1, 0 }
  0xef   : > { %s3226_s30 = sshll.u32 %s4453_s28, 7  ;;  %s5383_s22 = sld [smem:[#allocation46_spill]] }
  0xf0   : > { %s836_s25 = scalar_lea.vmem [#allocation2], %s3225_s10  ;;  %p4855_p4 = pnand %p3742_p13, %p4821_p9 }
  0xf1   : > { %s843_s2 = sshll.u32 %s836_s25, 4  ;;  %s833_s13 = scalar_lea.sflag [#allocation3], %s4834_s7  ;;  %s4851_s2 = int_to_ptr.vmem [resolvable:$true] %s843_s2 }
  0xf2   : > { %p4295_p7 = pneg %p4855_p4 }
  0xf5   : > { %s4849_s3 = scalar_lea.hbm %s5383_s22, %s3226_s30  ;;  %s4298_s23 = scalar_lea.hbm %s5383_s22, 256 }
  0xf6   : > { %s4293_s21 = scalar_lea.hbm %s4849_s3, 128  ;;  %p4299_p8 = scmp.lt.s32.totalorder %s4849_s3, %s5383_s22 }
  0xf7   : > { %p4294_p0 = scmp.ne.s32.totalorder %s4849_s3, %s4293_s21  ;;  %p4300_p9 = scmp.lt.s32.totalorder %s4298_s23, %s4293_s21 }
  0xf9   : > { %p4296_p2 = pnand %p4295_p7, %p4294_p0  ;;  %p4301_p10 = por %p4300_p9, %p4299_p8 }
  0xfb   : > { %p4297_p5 = pneg %p4296_p2 }
  0xfd   : > { %p4302_p11 = pnand %p4301_p10, %p4297_p5 }
  0xff   : > { %4305 = shalt.err (!%p4302_p11)
}
 0x100   : > { %s4306_s12 = scalar_lea.vmem %s4851_s2, 128  ;;  %s4475_s10 = smov [#allocation2]  }
 0x101   : > { %p4307_p12 = scmp.ne.s32.totalorder %s4851_s2, %s4306_s12  ;;  %s4311_s30 = sshll.u32 %s4475_s10, 4  ;;  %s4312_s30 = int_to_ptr.vmem [resolvable:$false] %s4311_s30 }
 0x102   : > { %s4313_s11 = scalar_lea.vmem %s4312_s30, 256  ;;  %p4314_p2 = scmp.lt.s32.totalorder %s4851_s2, %s4312_s30 }
 0x103   : > { %p4309_p13 = pnand %p4307_p12, %p4295_p7  ;;  %p4315_p3 = scmp.lt.s32.totalorder %s4313_s11, %s4306_s12 }
 0x105   : > { %p4310_p0 = pneg %p4309_p13  ;;  %p4316_p1 = por %p4315_p3, %p4314_p2 }
 0x107   : > { %p4317_p8 = pnand %p4316_p1, %p4310_p0 }
 0x109   : > { %4320 = shalt.err (!%p4317_p8)
}
 0x10a   : > { %3718 = dma.hbm_to_vmem [thread:$0]  (!%p4855_p4), %s4849_s3, 128, %s4851_s2, %s833_s13  }
 0x10b   : > { %s5385_s21 = sshll.u32 %s4834_s7, 4  ;;  %s3319_s25 = sshll.u32 %s4453_s28, 8 }
 0x10c   : > { %s862_s23 = scalar_lea.vmem [#allocation5], %s5385_s21  ;;  %s5386_s12 = sld [smem:[#allocation48_spill]] }
 0x10d   : > { %s869_s8 = sshll.u32 %s862_s23, 4  ;;  %s5387_s14 = sand.u32 1, %s4453_s28   ;;  %s4888_s8 = int_to_ptr.vmem [resolvable:$true] %s869_s8 }
 0x10e   : > { %s4898_s15 = scalar_lea.sflag [#allocation6], %s5387_s14 }
 0x112   : > { %s4894_s30 = scalar_lea.hbm %s5386_s12, %s3319_s25  ;;  %s4326_s3 = scalar_lea.hbm %s5386_s12, 512 }
 0x113   : > { %s4321_s16 = scalar_lea.hbm %s4894_s30, 256  ;;  %p4327_p9 = scmp.lt.s32.totalorder %s4894_s30, %s5386_s12 }
 0x114   : > { %p4322_p1 = scmp.ne.s32.totalorder %s4894_s30, %s4321_s16  ;;  %p4328_p10 = scmp.lt.s32.totalorder %s4326_s3, %s4321_s16 }
 0x116   : > { %p4324_p3 = pnand %p4322_p1, %p4295_p7  ;;  %p4329_p11 = por %p4328_p10, %p4327_p9 }
 0x118   : > { %p4325_p5 = pneg %p4324_p3 }
 0x11a   : > { %p4330_p12 = pnand %p4329_p11, %p4325_p5 }
 0x11c   : > { %4333 = shalt.err (!%p4330_p12)
}
 0x11d   : > { %s4334_s14 = scalar_lea.vmem %s4888_s8, 256  ;;  %s4476_s23 = smov [#allocation5]  }
 0x11e   : > { %p4335_p13 = scmp.ne.s32.totalorder %s4888_s8, %s4334_s14  ;;  %s4339_s25 = sshll.u32 %s4476_s23, 4  ;;  %s4340_s25 = int_to_ptr.vmem [resolvable:$false] %s4339_s25 }
 0x11f   : > { %s4341_s10 = scalar_lea.vmem %s4340_s25, 512  ;;  %p4342_p8 = scmp.lt.s32.totalorder %s4888_s8, %s4340_s25 }
 0x120   : > { %p4337_p0 = pnand %p4335_p13, %p4295_p7  ;;  %p4343_p1 = scmp.lt.s32.totalorder %s4341_s10, %s4334_s14 }
 0x122   : > { %p4338_p2 = pneg %p4337_p0  ;;  %p4344_p3 = por %p4343_p1, %p4342_p8 }
 0x124   : > { %p4345_p9 = pnand %p4344_p3, %p4338_p2 }
 0x126   : > { %4348 = shalt.err (!%p4345_p9)
}
 0x127   : > { %s4477_s16 = smov 128   ;;  %s4478_s11 = smov 8  }
 0x128   : > { %3721 = dma.hbm_to_vmem [thread:$0]  (!%p4855_p4), %s4894_s30, 256, %s4888_s8, %s4898_s15, %s4477_s16, %s4477_s16, %s4478_s11  }
 0x129   : > { %s5388_s13 = sld [smem:[#allocation44_spill]] }
 0x12f   : > { %p5389_p7 = scmp.ne.s32.totalorder %s5388_s13, 0 }
 0x130   : > { %s4926_s7 = sand.u32 (!%p5389_p7), 1, %s4445_s26  }
 0x131   : > { %881 = sbr.rel (%p5389_p7) target bundleno = 6585 (0x19b9), region = 116  ;;  %s3231_s3 = sshll.u32 (!%p5389_p7), %s4926_s7, 3 }
 0x132   : > { %s884_s2 = scalar_lea.sflag (!%p5389_p7), [#allocation3], %s4926_s7  ;;  %s4932_s21 = scalar_lea.vmem (!%p5389_p7), [#allocation2], %s3231_s3 }
 0x136   : > { %4392 = dma.done.wait (%p4827_p6), %s884_s2, 128  }
 0x137   : > { %4394 = vsyncadd (%p4827_p6), %s884_s2, 4294967168  ;;  %s892_s9 = sand.u32 1, %s4635_s29   ;;  %s3232_s15 = sshll.u32 %s4926_s7, 4 }
 0x138   : > { %s893_s8 = scalar_lea.sflag [#allocation6], %s892_s9  ;;  %s4940_s30 = scalar_lea.vmem [#allocation5], %s3232_s15 }
 0x139   : > { %4396 = dma.done.wait (%p4827_p6), %s893_s8, 256  }
 0x13a   : > { %4398 = vsyncadd (%p4827_p6), %s893_s8, 4294967040  ;;  %p5390_p4 = scmp.eq.s32.totalorder %s4635_s29, 0 }
 0x13c   : > { %4400 = dma.done.wait (%p5390_p4), [#allocation6], 256   ;;  %p5391_p5 = pmov %p5390_p4 }
 0x13d   : > { %p5392_p10 = pmov %p5390_p4 }
 0x13e   : > { %4402 = vsyncadd (%p5391_p5), [#allocation6], 4294967040 }
 0x13f   : > { %4404 = dma.done.wait (%p5392_p10), [#allocation9], 272   ;;  %p5393_p11 = pmov %p5390_p4 }
 0x140   : > { %p5394_p12 = pmov %p5390_p4 }
 0x141   : > { %4406 = vsyncadd (%p5393_p11), [#allocation9], 4294967024 }
 0x142   : > { %4408 = dma.done.wait (%p5394_p12), [#allocation12], 272   ;;  %p5395_p13 = pmov %p5390_p4 }
 0x143   : > { %p5396_p6 = pmov %p5390_p4 }
 0x144   : > { %4410 = vsyncadd (%p5395_p13), [#allocation12], 4294967024 }
 0x145   : > { %4412 = dma.done.wait (%p5396_p6), [#allocation15], 32   ;;  %p5397_p0 = pmov %p5390_p4 }
 0x147   : > { %4414 = vsyncadd (%p5397_p0), [#allocation15], 4294967264  ;;  %p5398_p2 = pmov %p5397_p0 }
 0x148   : > { %p5399_p8 = pmov %p5397_p0 }
 0x149   : > { %4416 = dma.done.wait (%p5398_p2), [#allocation18], 272  }
 0x14a   : > { %4418 = vsyncadd (%p5399_p8), [#allocation18], 4294967024  ;;  %p5400_p1 = pmov %p5397_p0 }
 0x14b   : > { %p5401_p3 = pmov %p5397_p0 }
 0x14c   : > { %4420 = dma.done.wait (%p5400_p1), [#allocation21], 272  }
 0x14d   : > { %4422 = vsyncadd (%p5401_p3), [#allocation21], 4294967024  ;;  %p5402_p9 = pmov %p5397_p0 }
 0x14e   : > { %p5403_p7 = pmov %p5397_p0 }
 0x14f   : > { %4424 = dma.done.wait (%p5402_p9), [#allocation24], 272  }
 0x150   : > { %4426 = vsyncadd (%p5403_p7), [#allocation24], 4294967024  ;;  %p5404_p4 = pmov %p5397_p0 }
 0x151   : > { %p5405_p5 = pmov %p5397_p0 }
 0x152   : > { %4428 = dma.done.wait (%p5404_p4), [#allocation27], 96  }
 0x153   : > { %4430 = vsyncadd (%p5405_p5), [#allocation27], 4294967200  ;;  %p5406_p10 = pmov %p5397_p0 }
 0x154   : > { %p5407_p11 = pmov %p5397_p0 }
 0x155   : > { %4432 = dma.done.wait (%p5406_p10), [#allocation30], 256  }
 0x156   : > { %4434 = vsyncadd (%p5407_p11), [#allocation30], 4294967040  ;;  %p1039_p12 = scmp.lt.s32.totalorder %s4635_s29, 1  ;;  %v4479_v0 = vmov 0.0   ;;  %vm4480_vm0 = vmmov 0   ;;  %s5408_s10 = sld [smem:[#allocation45_spill]] }
 0x157   : > { %3392 = vmatprep.subr.bf16.mxu1 %v4479_v0  ;;  %3396 = vmatprep.mubr.msk.bf16.mxu1 %vm4480_vm0, %v4479_v0  ;;  %v3823_v1 = vld [vmem:[#allocation7 + $0x8] sm:$0xff]   ;;  %v3824_v2 = vld [vmem:[#allocation7] sm:$0xff]   ;;  %v4999_v4 = vld [vmem:[%s4932_s21] sm:$0xff]  ;;  %vm1080_vm1 = vcmask 261120   ;;  %s4481_s11 = smov 120   ;;  %s4482_s13 = smov 96  }
 0x158   : > { %s4987_s6 = scalar_select %p1039_p12, %s4635_s29, 1  ;;  %3408 = vmatprep.subr.bf16.mxu0 %v4479_v0  ;;  %3410 = vmatprep.mubr.msk.bf16.mxu0 %vm4480_vm0, %v4479_v0  ;;  %v3253_v7 = vld [vmem:[#allocation8] ss:$0 sm:$0xff]  ;;  %v3825_v14 = vld [vmem:[#allocation10 + $0x8] sm:$0xff]   ;;  %v3826_v15 = vld [vmem:[#allocation10] sm:$0xff]   ;;  %vm1195_vm2 = vcmask 64512  }
 0x159   : > { %3393 = vmatpush3.bf16.msra.mxu1 %v3823_v1  ;;  %s4483_s2 = smov 88   ;;  %v3257_v32 = vld [vmem:[#allocation11] ss:$0 sm:$0xff]  ;;  %vm1258_vm3 = vcmask 1043456   ;;  %s4484_s21 = smov 80   ;;  %vm2120_vm4 = vcmask 130048  }
 0x15a   : > { %s3250_s14 = sshll.u32 %s4987_s6, 3  ;;  %3394 = vmatprep.subr.bf16.mxu1 %v4479_v0  ;;  %s4485_s9 = smov 112   ;;  %v1303_v60 = vld [vmem:[#allocation13] sm:$0xf]  ;;  %v1416_v62 = vld [vmem:[#allocation13 + $0x4] sm:$0xf] }
 0x15b   : > { %v1467_v61 = vsel %vm1258_vm3, %v1303_v60, 0  ;;  %v1421_v63 = vsel %vm1258_vm3, %v1416_v62, 0  ;;  %s4486_s15 = smov 104   ;;  %s4487_s8 = smov 72   ;;  %vm2846_vm5 = vcmask 523264  }
 0x15c   : > { %s1042_s16 = scalar_lea.vmem %s5408_s10, %s3250_s14  ;;  %s3320_s14 = sshll.u32 %s4987_s6, 4 }
 0x15d   : > { %v4996_v3 = vld [vmem:[%s1042_s16] sm:$0xff]  ;;  %3395 = vmatpush3.bf16.msra.mxu1 %v3824_v2  ;;  %s5409_s10 = sld [smem:[#allocation47_spill]]  ;;  %p5415_p6 = scmp.ne.s32.totalorder %s5381_s1, 0 }
 0x15e   : > { %v1055_v5 = vadd.f32 %v4999_v4, %v4996_v3  ;;  %3400 = vmatprep.subr.bf16.mxu1 %v4479_v0  ;;  %v1124_v16 = vpack.c.bf16 %v4996_v3, %v4996_v3 }
 0x160   : > { %v1056_v6 = vpack.c.bf16 %v1055_v5, %v1055_v5 }
 0x162   : > { %3397 = vmatmul.mubr.msk.bf16.vlgmr.msra.gmra.mxu1 %vm1080_vm1, %v1056_v6 }
 0x163   : > { %3404 = vmatprep.mubr.msk.bf16.mxu1 %vm4480_vm0, %v4479_v0  ;;  %3401 = vmatpush3.bf16.msra.mxu1 %v3825_v14  ;;  %s1047_s16 = scalar_lea.vmem %s5409_s10, %s3320_s14  ;;  %s1038_s14 = scalar_lea.vmem [#allocation31], %s3231_s3 }
 0x164   : > { %3402 = vmatprep.subr.bf16.mxu1 %v4479_v0  ;;  %s2937_s23 = sshll.u32 %s1038_s14, 4  ;;  %s2938_s23 = int_to_ptr.vmem [resolvable:$true] %s2937_s23 }
 0x167   : > { %3403 = vmatpush3.bf16.msra.mxu1 %v3826_v15 }
 0x168   : > { %3414 = vmatprep.subr.bf16.mxu1 %v4479_v0 }
 0x16a   : > { %3405 = vmatmul.mubr.msk.bf16.vlgmr.msra.gmra.mxu1 %vm1080_vm1, %v1124_v16 }
 0x16b   : > { %3416 = vmatprep.mubr.msk.bf16.mxu1 %vm4480_vm0, %v4479_v0 }
 0x222   : > { %v1118_v8 = vpop.f32.mrf.mxu1 }
 0x223   : > { %v1119_v9 = vadd.f32 %v3253_v7, %v1118_v8 }
 0x224   : > { %v3398_v10 = vpop.f32.mrf.mxu1 }
 0x225   : > { %v5008_v11 = vpack.c.bf16 %v1119_v9, %v1119_v9 }
 0x226   : > { %v1121_v12 = vpop.f32.mrf.mxu1 }
 0x227   : > { %1304 = vrot.lane.b32.xlu1 %v5008_v11, %s4481_s11  ;;  %1193 = vrot.lane.b32.xlu0 %v5008_v11, %s4482_s13  ;;  %s2924_s13 = scalar_lea.sflag [#allocation4], %s4926_s7 }
 0x228   : > { %v3399_v13 = vpop.f32.mrf.mxu1 }
 0x22a   : > { %v1185_v33 = vpop.f32.mrf.mxu1 }
 0x22b   : > { %1306 = vrot.lane.b32.xlu0 %v5008_v11, %s4483_s2  ;;  %v1186_v34 = vadd.f32 %v3257_v32, %v1185_v33  ;;  %s5410_s2 = sld [smem:[#allocation55_spill]] }
 0x22c   : > { %v3406_v35 = vpop.f32.mrf.mxu1 }
 0x22d   : > { %v5034_v36 = vpack.c.bf16 %v1186_v34, %v1186_v34 }
 0x22e   : > { %v1188_v37 = vpop.f32.mrf.mxu1 }
 0x22f   : > { %v1260_v38 = vsel %vm1258_vm3, %v5034_v36, 0 }
 0x230   : > { %v3407_v39 = vpop.f32.mrf.mxu1  ;;  %3415 = vmatpush3.bf16.msra.mxu1 %v1260_v38 }
 0x231   : > { %3426 = vmatprep.subr.bf16.mxu1 %v4479_v0 }
 0x299   : > { %v1194_v17 = vpop.permute.xlu0 %1193  ;;  %v1305_v21 = vpop.permute.xlu1 %1304 }
 0x29a   : > { %v1200_v18 = vsel %vm1195_vm2, %v1194_v17, 0 }
 0x29b   : > { %3409 = vmatpush3.bf16.xpose.msra.mxu0 %v1200_v18 }
 0x29c   : > { %3420 = vmatprep.subr.bf16.mxu0 %v4479_v0 }
 0x29d   : > { %v1307_v19 = vpop.permute.xlu0 %1306 }
 0x29e   : > { %v1312_v20 = vsel %vm1195_vm2, %v1307_v19, 0 }
 0x2a2   : > { %3411 = vmatmul.mubr.msk.bf16.vlgmr.msra.gmra.mxu0 %vm1195_vm2, %v5008_v11 }
 0x2a3   : > { %3421 = vmatpush3.bf16.xpose.msra.mxu0 %v1312_v20  ;;  %3422 = vmatprep.mubr.msk.bf16.mxu0 %vm4480_vm0, %v4479_v0 }
 0x2a4   : > { %3432 = vmatprep.subr.bf16.mxu0 %v4479_v0 }
 0x2aa   : > { %3423 = vmatmul.mubr.msk.bf16.vlgmr.msra.gmra.mxu0 %vm1195_vm2, %v1305_v21 }
 0x2ab   : > { %3434 = vmatprep.mubr.msk.bf16.mxu0 %vm4480_vm0, %v4479_v0  ;;  %3433 = vmatpush3.bf16.msra.mxu0 %v1421_v63  ;;  %v1779_v63 = vld [vmem:[#allocation13 + $0xc] sm:$0xf] }
 0x2ac   : > { %3444 = vmatprep.subr.bf16.mxu0 %v4479_v0 }
 0x362   : > { %v1236_v22 = vpop.f32.mrf.mxu0 }
 0x363   : > { %v1242_v23 = vsel %vm1195_vm2, %v1236_v22, -inf }
 0x364   : > { %1243 = vmax.xlane.f32.xlu1 %v1242_v23  ;;  %v3412_v24 = vpop.f32.mrf.mxu0 }
 0x366   : > { %v1239_v25 = vpop.f32.mrf.mxu0 }
 0x368   : > { %v3413_v26 = vpop.f32.mrf.mxu0 }
 0x36a   : > { %v1348_v27 = vpop.f32.mrf.mxu0 }
 0x36b   : > { %v1354_v28 = vsel %vm1195_vm2, %v1348_v27, -inf }
 0x36c   : > { %1355 = vmax.xlane.f32.xlu0 %v1354_v28  ;;  %v3424_v29 = vpop.f32.mrf.mxu0 }
 0x36e   : > { %v1351_v30 = vpop.f32.mrf.mxu0 }
 0x370   : > { %v3425_v31 = vpop.f32.mrf.mxu0 }
 0x3ed   : > { %v1244_v40 = vpop.xlane.xlu1 %1243 }
 0x3ee   : > { %v1245_v41 = vsub.f32 %v1236_v22, %v1244_v40 }
 0x3f0   : > { %v1246_v42 = vmul.f32 1.442695, %v1245_v41 }
 0x3f2   : > { %3839 = vpow2.f32 %v1246_v42 }
 0x3f5   : > { %v1356_v43 = vpop.xlane.xlu0 %1355 }
 0x3f6   : > { %v1357_v44 = vsub.f32 %v1348_v27, %v1356_v43 }
 0x3f8   : > { %v1358_v45 = vmul.f32 1.442695, %v1357_v44 }
 0x3fa   : > { %3841 = vpow2.f32 %v1358_v45 }
 0x3ff   : > { %v3840_v46 = vpop.eup %3839 }
 0x400   : > { %v1248_v47 = vsel %vm1195_vm2, %v3840_v46, 0.0 }
 0x401   : > { %1249 = vadd.xlane.f32.xlu0 %v1248_v47 }
 0x407   : > { %v3842_v48 = vpop.eup %3841 }
 0x408   : > { %v1360_v49 = vsel %vm1195_vm2, %v3842_v48, 0.0 }
 0x409   : > { %1361 = vadd.xlane.f32.xlu1 %v1360_v49 }
 0x417   : > { %1367 = vrot.lane.b32.xlu0 %v5034_v36, %s4481_s11 }
 0x41a   : > { %1511 = vrot.lane.b32.xlu1 %v5008_v11, %s4484_s21  ;;  %s5412_s21 = sld [smem:[#allocation62_spill]] }
 0x41e   : > { %1509 = vrot.lane.b32.xlu1 %v5008_v11, %s4485_s9 }
 0x48a   : > { %v1250_v50 = vpop.xlane.xlu0 %1249 }
 0x48b   : > { %3843 = vrcp.f32 %v1250_v50 }
 0x48e   : > { %v1368_v53 = vpop.permute.xlu0 %1367 }
 0x48f   : > { %v1373_v55 = vsel %vm1258_vm3, %v1368_v53, 0 }
 0x492   : > { %v1362_v51 = vpop.xlane.xlu1 %1361 }
 0x493   : > { %3845 = vrcp.f32 %v1362_v51 }
 0x496   : > { %v1512_v8 = vpop.permute.xlu1 %1511 }
 0x497   : > { %v1517_v13 = vsel %vm1195_vm2, %v1512_v8, 0 }
 0x498   : > { %v3844_v52 = vpop.eup %3843 }
 0x499   : > { %v1252_v54 = vmul.f32 %v3844_v52, %v3840_v46 }
 0x49a   : > { %v1510_v16 = vpop.permute.xlu1 %1509 }
 0x49b   : > { %v1253_v56 = vpack.c.bf16 %v1252_v54, %v1252_v54 }
 0x49d   : > { %3417 = vmatmul.mubr.msk.bf16.vlgmr.msra.gmra.mxu1 %vm1195_vm2, %v1253_v56 }
 0x49e   : > { %3427 = vmatpush3.bf16.msra.mxu1 %v1373_v55  ;;  %3428 = vmatprep.mubr.msk.bf16.mxu1 %vm4480_vm0, %v4479_v0 }
 0x49f   : > { %3438 = vmatprep.subr.bf16.mxu1 %v4479_v0 }
 0x4a0   : > { %v3846_v57 = vpop.eup %3845 }
 0x4a1   : > { %v1364_v58 = vmul.f32 %v3846_v57, %v3842_v48 }
 0x4a3   : > { %v1365_v59 = vpack.c.bf16 %v1364_v58, %v1364_v58 }
 0x4a5   : > { %3429 = vmatmul.mubr.msk.bf16.vlgmr.msra.gmra.mxu1 %vm1195_vm2, %v1365_v59 }
 0x4a6   : > { %3440 = vmatprep.mubr.msk.bf16.mxu1 %vm4480_vm0, %v4479_v0  ;;  %3439 = vmatpush3.bf16.msra.mxu1 %v1467_v61 }
 0x4a7   : > { %3450 = vmatprep.subr.bf16.mxu1 %v4479_v0 }
 0x55d   : > { %v1296_v1 = vpop.f32.mrf.mxu1 }
 0x55e   : > { %v1302_v2 = vpack.c.bf16 %v1296_v1, %v1296_v1 }
 0x55f   : > { %v3418_v5 = vpop.f32.mrf.mxu1 }
 0x560   : > { %3441 = vmatmul.mubr.msk.bf16.vlgmr.msra.gmra.mxu1 %vm1195_vm2, %v1302_v2  ;;  %v1784_v2 = vsel %vm1258_vm3, %v1779_v63, 0  ;;  %v3832_v63 = vld [vmem:[#allocation20] sm:$0xff]  }
 0x561   : > { %v1299_v6 = vpop.f32.mrf.mxu1  ;;  %3452 = vmatprep.mubr.msk.bf16.mxu1 %vm4480_vm0, %v4479_v0 }
 0x563   : > { %v3419_v7 = vpop.f32.mrf.mxu1 }
 0x565   : > { %v1409_v9 = vpop.f32.mrf.mxu1 }
 0x566   : > { %v1415_v10 = vpack.c.bf16 %v1409_v9, %v1409_v9 }
 0x567   : > { %v3430_v12 = vpop.f32.mrf.mxu1 }
 0x568   : > { %3435 = vmatmul.mubr.msk.bf16.vlgmr.msra.gmra.mxu0 %vm1195_vm2, %v1415_v10 }
 0x569   : > { %3445 = vmatpush3.bf16.xpose.msra.mxu0 %v1517_v13  ;;  %v1412_v14 = vpop.f32.mrf.mxu1  ;;  %3446 = vmatprep.mubr.msk.bf16.mxu0 %vm4480_vm0, %v4479_v0 }
 0x56a   : > { %3456 = vmatprep.subr.bf16.mxu0 %v4479_v0 }
 0x56b   : > { %v3431_v15 = vpop.f32.mrf.mxu1 }
 0x570   : > { %3447 = vmatmul.mubr.msk.bf16.vlgmr.msra.gmra.mxu0 %vm1195_vm2, %v1510_v16 }
 0x571   : > { %3458 = vmatprep.mubr.msk.bf16.mxu0 %vm4480_vm0, %v4479_v0 }
 0x620   : > { %v1503_v17 = vpop.f32.mrf.mxu1 }
 0x622   : > { %v3442_v18 = vpop.f32.mrf.mxu1 }
 0x624   : > { %v1506_v19 = vpop.f32.mrf.mxu1 }
 0x626   : > { %v3443_v20 = vpop.f32.mrf.mxu1 }
 0x627   : > { %v3273_v20 = vld [vmem:[#allocation14] ss:$0 sm:$0xff] }
 0x628   : > { %v1457_v21 = vpop.f32.mrf.mxu0 }
 0x629   : > { %v5069_v22 = vadd.f32 %v1503_v17, %v1457_v21 }
 0x62a   : > { %v3436_v23 = vpop.f32.mrf.mxu0 }
 0x62c   : > { %v1460_v24 = vpop.f32.mrf.mxu0 }
 0x62e   : > { %v3437_v25 = vpop.f32.mrf.mxu0 }
 0x630   : > { %v1553_v26 = vpop.f32.mrf.mxu0 }
 0x631   : > { %v1559_v27 = vsel %vm1195_vm2, %v1553_v26, -inf }
 0x632   : > { %1560 = vmax.xlane.f32.xlu0 %v1559_v27  ;;  %v3448_v28 = vpop.f32.mrf.mxu0 }
 0x634   : > { %v1556_v29 = vpop.f32.mrf.mxu0 }
 0x636   : > { %v3449_v30 = vpop.f32.mrf.mxu0 }
 0x648   : > { %1571 = vrot.lane.b32.xlu0 %v5034_v36, %s4485_s9 }
 0x64c   : > { %1668 = vrot.lane.b32.xlu0 %v5008_v11, %s4486_s15 }
 0x6bb   : > { %v1561_v31 = vpop.xlane.xlu0 %1560 }
 0x6bc   : > { %v1562_v32 = vsub.f32 %v1553_v26, %v1561_v31 }
 0x6be   : > { %v1563_v33 = vmul.f32 1.442695, %v1562_v32 }
 0x6bf   : > { %v1572_v34 = vpop.permute.xlu0 %1571 }
 0x6c0   : > { %3847 = vpow2.f32 %v1563_v33  ;;  %v1577_v35 = vsel %vm1258_vm3, %v1572_v34, 0  ;;  %v3827_v33 = vld [vmem:[#allocation17 + $0x8] sm:$0xff]   ;;  %v1051_v34 = vld [vmem:[%s1047_s16] sm:$0xff] }
 0x6c1   : > { %3451 = vmatpush3.bf16.msra.mxu1 %v1577_v35  ;;  %v1052_v35 = vld [vmem:[%s1047_s16 + $0x8] sm:$0xff]  ;;  %s5414_s16 = sld [smem:[#allocation65_spill]] }
 0x6c2   : > { %3462 = vmatprep.subr.bf16.mxu1 %v4479_v0 }
 0x6c3   : > { %v1669_v45 = vpop.permute.xlu0 %1668 }
 0x6cd   : > { %v3848_v37 = vpop.eup %3847 }
 0x6ce   : > { %v1565_v38 = vsel %vm1195_vm2, %v3848_v37, 0.0 }
 0x6cf   : > { %1566 = vadd.xlane.f32.xlu1 %v1565_v38  ;;  %v1054_v38 = vld [vmem:[%s4940_s30 + $0x8] sm:$0xff] }
 0x6e0   : > { %1670 = vrot.lane.b32.xlu1 %v5008_v11, %s4487_s8  ;;  %v1620_v11 = vld [vmem:[#allocation13 + $0x8] sm:$0xf]  ;;  %s4488_s8 = smov [#allocation31]  }
 0x6e1   : > { %v1625_v46 = vsel %vm1258_vm3, %v1620_v11, 0 }
 0x6e2   : > { %3457 = vmatpush3.bf16.msra.mxu0 %v1625_v46 }
 0x6e3   : > { %3468 = vmatprep.subr.bf16.mxu0 %v4479_v0 }
 0x758   : > { %v1567_v39 = vpop.xlane.xlu1 %1566 }
 0x759   : > { %3849 = vrcp.f32 %v1567_v39 }
 0x75c   : > { %v1671_v42 = vpop.permute.xlu1 %1670 }
 0x75d   : > { %v1676_v44 = vsel %vm1195_vm2, %v1671_v42, 0  ;;  %v3829_v42 = vld [vmem:[%s5410_s2 + $0x8] sm:$0xff]  }
 0x766   : > { %v3850_v40 = vpop.eup %3849 }
 0x767   : > { %v1569_v41 = vmul.f32 %v3850_v40, %v3848_v37  ;;  %v1053_v37 = vld [vmem:[%s4940_s30] sm:$0xff]  ;;  %v1935_v40 = vadd.f32 %v1054_v38, %v1052_v35 }
 0x768   : > { %v1934_v39 = vadd.f32 %v1053_v37, %v1051_v34 }
 0x769   : > { %v1570_v43 = vpack.c.bf16 %v1569_v41, %v1569_v41 }
 0x76a   : > { %v1936_v41 = vpack.c.bf16 %v1935_v40, %v1934_v39 }
 0x76b   : > { %3453 = vmatmul.mubr.msk.bf16.vlgmr.msra.gmra.mxu1 %vm1195_vm2, %v1570_v43  ;;  %v3830_v43 = vld [vmem:[%s5410_s2] sm:$0xff]  }
 0x76c   : > { %3463 = vmatpush3.bf16.xpose.msra.mxu1 %v1676_v44  ;;  %3464 = vmatprep.mubr.msk.bf16.mxu1 %vm4480_vm0, %v4479_v0 }
 0x76d   : > { %3474 = vmatprep.subr.bf16.mxu1 %v4479_v0 }
 0x773   : > { %3465 = vmatmul.mubr.msk.bf16.vlgmr.msra.gmra.mxu1 %vm1195_vm2, %v1669_v45 }
 0x774   : > { %3476 = vmatprep.mubr.msk.bf16.mxu1 %vm4480_vm0, %v4479_v0  ;;  %3475 = vmatpush3.bf16.msra.mxu1 %v1784_v2  ;;  %v3276_v2 = vld [vmem:[#allocation16] ss:$0 sm:$0xff] }
 0x775   : > { %3488 = vmatprep.subr.bf16.mxu1 %v4479_v0 }
 0x82b   : > { %v1613_v47 = vpop.f32.mrf.mxu1 }
 0x82c   : > { %v1619_v48 = vpack.c.bf16 %v1613_v47, %v1613_v47  ;;  %v3274_v47 = vld [vmem:[#allocation26] ss:$0 sm:$0xff] }
 0x82d   : > { %v3454_v49 = vpop.f32.mrf.mxu1 }
 0x82e   : > { %3459 = vmatmul.mubr.msk.bf16.vlgmr.msra.gmra.mxu0 %vm1195_vm2, %v1619_v48  ;;  %v3275_v49 = vld [vmem:[#allocation28] ss:$0 sm:$0xff] }
 0x82f   : > { %v1616_v50 = vpop.f32.mrf.mxu1  ;;  %3470 = vmatprep.mubr.msk.bf16.mxu0 %vm4480_vm0, %v4479_v0 }
 0x831   : > { %v3455_v51 = vpop.f32.mrf.mxu1 }
 0x833   : > { %v1712_v52 = vpop.f32.mrf.mxu1 }
 0x834   : > { %v1718_v53 = vsel %vm1195_vm2, %v1712_v52, -inf }
 0x835   : > { %1719 = vmax.xlane.f32.xlu1 %v1718_v53  ;;  %v3466_v54 = vpop.f32.mrf.mxu1 }
 0x836   : > { %v3280_v54 = vld [vmem:[#allocation19] ss:$0 sm:$0xff] }
 0x837   : > { %v1715_v55 = vpop.f32.mrf.mxu1 }
 0x839   : > { %v3467_v56 = vpop.f32.mrf.mxu1 }
 0x8be   : > { %v1720_v57 = vpop.xlane.xlu1 %1719 }
 0x8bf   : > { %v1721_v58 = vsub.f32 %v1712_v52, %v1720_v57 }
 0x8c1   : > { %v1722_v59 = vmul.f32 1.442695, %v1721_v58 }
 0x8c3   : > { %3851 = vpow2.f32 %v1722_v59 }
 0x8d0   : > { %v3852_v60 = vpop.eup %3851 }
 0x8d1   : > { %v1724_v61 = vsel %vm1195_vm2, %v3852_v60, 0.0 }
 0x8d2   : > { %1725 = vadd.xlane.f32.xlu0 %v1724_v61 }
 0x8e8   : > { %1730 = vrot.lane.b32.xlu0 %v5034_v36, %s4486_s15 }
 0x8ee   : > { %v1661_v62 = vpop.f32.mrf.mxu0 }
 0x8ef   : > { %v1667_v1 = vadd.f32 %v1661_v62, %v5069_v22  ;;  %v3831_v62 = vld [vmem:[#allocation20 + $0x8] sm:$0xff]  }
 0x8f0   : > { %v3460_v5 = vpop.f32.mrf.mxu0 }
 0x8f2   : > { %v1664_v6 = vpop.f32.mrf.mxu0 }
 0x8f4   : > { %v3461_v7 = vpop.f32.mrf.mxu0 }
 0x95b   : > { %v1726_v8 = vpop.xlane.xlu0 %1725 }
 0x95c   : > { %3853 = vrcp.f32 %v1726_v8 }
 0x95f   : > { %v1731_v9 = vpop.permute.xlu0 %1730 }
 0x960   : > { %v1736_v10 = vsel %vm1258_vm3, %v1731_v9, 0 }
 0x961   : > { %3469 = vmatpush3.bf16.msra.mxu0 %v1736_v10 }
 0x962   : > { %3480 = vmatprep.subr.bf16.mxu0 %v4479_v0 }
 0x969   : > { %v3854_v36 = vpop.eup %3853 }
 0x96a   : > { %v1728_v12 = vmul.f32 %v3854_v36, %v3852_v60 }
 0x96c   : > { %v1729_v13 = vpack.c.bf16 %v1728_v12, %v1728_v12 }
 0x96e   : > { %3471 = vmatmul.mubr.msk.bf16.vlgmr.msra.gmra.mxu0 %vm1195_vm2, %v1729_v13 }
 0x96f   : > { %3484 = vmatprep.mubr.msk.bf16.mxu0 %vm4480_vm0, %v4479_v0  ;;  %3481 = vmatpush3.bf16.msra.mxu0 %v3829_v42 }
 0x970   : > { %3482 = vmatprep.subr.bf16.mxu0 %v4479_v0 }
 0x973   : > { %3483 = vmatpush3.bf16.msra.mxu0 %v3830_v43 }
 0x974   : > { %3496 = vmatprep.subr.bf16.mxu0 %v4479_v0 }
 0xa2e   : > { %v1772_v14 = vpop.f32.mrf.mxu0 }
 0xa2f   : > { %v1778_v15 = vpack.c.bf16 %v1772_v14, %v1772_v14  ;;  %v3284_v14 = vld [vmem:[#allocation22] ss:$0 sm:$0xff] }
 0xa30   : > { %v3472_v16 = vpop.f32.mrf.mxu0 }
 0xa31   : > { %3477 = vmatmul.mubr.msk.bf16.vlgmr.msra.gmra.mxu1 %vm1195_vm2, %v1778_v15 }
 0xa32   : > { %v1775_v17 = vpop.f32.mrf.mxu0  ;;  %3492 = vmatprep.mubr.msk.bf16.mxu1 %vm4480_vm0, %v4479_v0  ;;  %3489 = vmatpush3.bf16.msra.mxu1 %v3827_v33 }
 0xa33   : > { %3490 = vmatprep.subr.bf16.mxu1 %v4479_v0 }
 0xa34   : > { %v3473_v18 = vpop.f32.mrf.mxu0 }
 0xaf1   : > { %v1820_v19 = vpop.f32.mrf.mxu1 }
 0xaf2   : > { %v1826_v21 = vadd.f32 %v1820_v19, %v1667_v1  ;;  %v2004_v1 = vpack.c.bf16 %v1052_v35, %v1051_v34 }
 0xaf3   : > { %v3478_v22 = vpop.f32.mrf.mxu1 }
 0xaf4   : > { %v1834_v23 = vadd.f32 %v3273_v20, %v1826_v21 }
 0xaf5   : > { %v1823_v24 = vpop.f32.mrf.mxu1 }
 0xaf6   : > { %v1835_v25 = vadd.f32 %v1834_v23, %v4996_v3  ;;  %v3828_v3 = vld [vmem:[#allocation17] sm:$0xff]  }
 0xaf7   : > { %v3479_v26 = vpop.f32.mrf.mxu1  ;;  %3491 = vmatpush3.bf16.msra.mxu1 %v3828_v3 }
 0xaf8   : > { %v1838_v27 = vsel %vm1080_vm1, %v1835_v25, 0.0  ;;  %3504 = vmatprep.subr.bf16.mxu1 %v4479_v0 }
 0xaf9   : > { %1839 = vadd.xlane.f32.xlu1 %v1838_v27 }
 0xafa   : > { %3493 = vmatmul.mubr.msk.bf16.vlgmr.msra.gmra.mxu1 %vm1080_vm1, %v1936_v41 }
 0xafb   : > { %3506 = vmatprep.mubr.msk.bf16.mxu1 %vm4480_vm0, %v4479_v0 }
 0xb82   : > { %v1840_v28 = vpop.xlane.xlu1 %1839 }
 0xb83   : > { %v1842_v29 = vmul.f32 0.03125, %v1840_v28 }
 0xb85   : > { %v1843_v30 = vsub.f32 %v1835_v25, %v1842_v29 }
 0xb87   : > { %v1844_v31 = vmul.f32 %v1843_v30, %v1843_v30 }
 0xb89   : > { %v1845_v32 = vsel %vm1080_vm1, %v1844_v31, 0.0 }
 0xb8a   : > { %1846 = vadd.xlane.f32.xlu1 %v1845_v32 }
 0xbba   : > { %v1997_v55 = vpop.f32.mrf.mxu1 }
 0xbbb   : > { %v1998_v57 = vadd.f32 %v3280_v54, %v1997_v55 }
 0xbbc   : > { %v3494_v56 = vpop.f32.mrf.mxu1 }
 0xbbe   : > { %v2000_v58 = vpop.f32.mrf.mxu1 }
 0xbbf   : > { %v2001_v59 = vadd.f32 %v3280_v54, %v2000_v58 }
 0xbc0   : > { %v3495_v60 = vpop.f32.mrf.mxu1 }
 0xbc1   : > { %v5137_v61 = vpack.c.bf16 %v2001_v59, %v1998_v57 }
 0xbc3   : > { %2183 = vrot.lane.b32.xlu1 %v5137_v61, %s4481_s11 }
 0xc13   : > { %v1847_v44 = vpop.xlane.xlu1 %1846 }
 0xc14   : > { %v1848_v45 = vmul.f32 0.03125, %v1847_v44 }
 0xc16   : > { %v1849_v11 = vadd.f32 1e-05, %v1848_v45 }
 0xc18   : > { %3855 = vrsqrt.f32 %v1849_v11 }
 0xc25   : > { %v3856_v46 = vpop.eup %3855 }
 0xc26   : > { %v1851_v48 = vmul.f32 %v3856_v46, %v1843_v30  ;;  %v2291_v46 = vld [vmem:[#allocation23 + $0x4] sm:$0xf] }
 0xc28   : > { %v1858_v50 = vmul.f32 %v3274_v47, %v1851_v48  ;;  %v2296_v47 = vsel %vm1258_vm3, %v2291_v46, 0 }
 0xc2a   : > { %v5130_v51 = vadd.f32 %v3275_v49, %v1858_v50  ;;  %v2178_v50 = vld [vmem:[#allocation23] sm:$0xf] }
 0xc2b   : > { %v2342_v54 = vsel %vm1258_vm3, %v2178_v50, 0 }
 0xc2c   : > { %v1866_v52 = vadd.f32 %v5130_v51, %v4999_v4  ;;  %v2078_v4 = vsel %vm1195_vm2, %v5137_v61, 0 }
 0xc2d   : > { %3505 = vmatpush3.bf16.xpose.msra.mxu1 %v2078_v4 }
 0xc2e   : > { %v1867_v53 = vpack.c.bf16 %v1866_v52, %v1866_v52  ;;  %3516 = vmatprep.subr.bf16.mxu1 %v4479_v0 }
 0xc30   : > { %3485 = vmatmul.mubr.msk.bf16.vlgmr.msra.gmra.mxu0 %vm1080_vm1, %v1867_v53 }
 0xc31   : > { %3500 = vmatprep.mubr.msk.bf16.mxu0 %vm4480_vm0, %v4479_v0  ;;  %3497 = vmatpush3.bf16.msra.mxu0 %v3831_v62 }
 0xc32   : > { %3498 = vmatprep.subr.bf16.mxu0 %v4479_v0 }
 0xc35   : > { %3499 = vmatpush3.bf16.msra.mxu0 %v3832_v63  ;;  %v2184_v6 = vpop.permute.xlu1 %2183 }
 0xc36   : > { %3510 = vmatprep.subr.bf16.mxu0 %v4479_v0  ;;  %v2189_v10 = vsel %vm1195_vm2, %v2184_v6, 0 }
 0xc38   : > { %3501 = vmatmul.mubr.msk.bf16.vlgmr.msra.gmra.mxu0 %vm1080_vm1, %v2004_v1 }
 0xc39   : > { %3512 = vmatprep.mubr.msk.bf16.mxu0 %vm4480_vm0, %v4479_v0 }
 0xcf0   : > { %v1928_v5 = vpop.f32.mrf.mxu0 }
 0xcf1   : > { %v1929_v7 = vadd.f32 %v3276_v2, %v1928_v5 }
 0xcf2   : > { %v3486_v8 = vpop.f32.mrf.mxu0 }
 0xcf3   : > { %v5149_v9 = vpack.c.bf16 %v1929_v7, %v1929_v7 }
 0xcf4   : > { %v1931_v36 = vpop.f32.mrf.mxu0 }
 0xcf5   : > { %2180 = vrot.lane.b32.xlu0 %v5149_v9, %s4481_s11  ;;  %3507 = vmatmul.mubr.msk.bf16.vlgmr.msra.gmra.mxu1 %vm1195_vm2, %v5149_v9 }
 0xcf6   : > { %v3487_v12 = vpop.f32.mrf.mxu0  ;;  %3517 = vmatpush3.bf16.xpose.msra.mxu1 %v2189_v10  ;;  %3518 = vmatprep.mubr.msk.bf16.mxu1 %vm4480_vm0, %v4479_v0 }
 0xcf7   : > { %3528 = vmatprep.subr.bf16.mxu1 %v4479_v0 }
 0xcf8   : > { %v2065_v15 = vpop.f32.mrf.mxu0 }
 0xcf9   : > { %v2066_v17 = vadd.f32 %v3284_v14, %v2065_v15 }
 0xcfa   : > { %v3502_v16 = vpop.f32.mrf.mxu0 }
 0xcfc   : > { %v2068_v19 = vpop.f32.mrf.mxu0 }
 0xcfd   : > { %v2069_v21 = vadd.f32 %v3284_v14, %v2068_v19 }
 0xcfe   : > { %v3503_v23 = vpop.f32.mrf.mxu0 }
 0xcff   : > { %v5163_v24 = vpack.c.bf16 %v2069_v21, %v2066_v17 }
 0xd01   : > { %3511 = vmatpush3.bf16.msra.mxu0 %v5163_v24 }
 0xd02   : > { %3522 = vmatprep.subr.bf16.mxu0 %v4479_v0 }
 0xd67   : > { %v2181_v13 = vpop.permute.xlu0 %2180 }
 0xd68   : > { %3519 = vmatmul.mubr.msk.bf16.vlgmr.msra.gmra.mxu1 %vm1195_vm2, %v2181_v13 }
 0xd69   : > { %3530 = vmatprep.mubr.msk.bf16.mxu1 %vm4480_vm0, %v4479_v0  ;;  %3529 = vmatpush3.bf16.msra.mxu1 %v2296_v47 }
 0xd6a   : > { %3540 = vmatprep.subr.bf16.mxu1 %v4479_v0 }
 0xdb5   : > { %v2114_v18 = vpop.f32.mrf.mxu1 }
 0xdb6   : > { %v2121_v20 = vsel %vm2120_vm4, %v2114_v18, -inf }
 0xdb7   : > { %2122 = vmax.xlane.f32.xlu0 %v2121_v20  ;;  %v3508_v22 = vpop.f32.mrf.mxu1 }
 0xdb9   : > { %v2117_v25 = vpop.f32.mrf.mxu1 }
 0xdbb   : > { %v3509_v26 = vpop.f32.mrf.mxu1 }
 0xe28   : > { %v2225_v27 = vpop.f32.mrf.mxu1 }
 0xe29   : > { %v2231_v28 = vsel %vm2120_vm4, %v2225_v27, -inf }
 0xe2a   : > { %2232 = vmax.xlane.f32.xlu1 %v2231_v28  ;;  %v3520_v29 = vpop.f32.mrf.mxu1 }
 0xe2c   : > { %v2228_v30 = vpop.f32.mrf.mxu1 }
 0xe2e   : > { %v3521_v31 = vpop.f32.mrf.mxu1 }
 0xe3b   : > { %2244 = vrot.lane.b32.xlu1 %v5163_v24, %s4481_s11  ;;  %s5413_s11 = sld [smem:[#allocation64_spill]] }
 0xe3f   : > { %2384 = vrot.lane.b32.xlu1 %v5149_v9, %s4485_s9 }
 0xe40   : > { %v2123_v32 = vpop.xlane.xlu0 %2122 }
 0xe41   : > { %v2124_v33 = vsub.f32 %v2114_v18, %v2123_v32 }
 0xe43   : > { %v2125_v3 = vmul.f32 1.442695, %v2124_v33  ;;  %v2493_v33 = vld [vmem:[#allocation23 + $0x8] sm:$0xf] }
 0xe45   : > { %3857 = vpow2.f32 %v2125_v3  ;;  %v2498_v3 = vsel %vm1258_vm3, %v2493_v33, 0 }
 0xe52   : > { %v3858_v34 = vpop.eup %3857 }
 0xe53   : > { %v2127_v35 = vsel %vm2120_vm4, %v3858_v34, 0.0 }
 0xe54   : > { %2128 = vadd.xlane.f32.xlu0 %v2127_v35 }
 0xeb3   : > { %v2233_v37 = vpop.xlane.xlu1 %2232 }
 0xeb4   : > { %v2234_v38 = vsub.f32 %v2225_v27, %v2233_v37 }
 0xeb6   : > { %v2235_v39 = vmul.f32 1.442695, %v2234_v38 }
 0xeb7   : > { %v2245_v11 = vpop.permute.xlu1 %2244 }
 0xeb8   : > { %3859 = vpow2.f32 %v2235_v39 }
 0xebb   : > { %v2385_v6 = vpop.permute.xlu1 %2384 }
 0xec5   : > { %v3860_v40 = vpop.eup %3859 }
 0xec6   : > { %v2237_v41 = vsel %vm2120_vm4, %v3860_v40, 0.0 }
 0xec7   : > { %2238 = vadd.xlane.f32.xlu0 %v2237_v41 }
 0xedd   : > { %v2129_v42 = vpop.xlane.xlu0 %2128  ;;  %2386 = vrot.lane.b32.xlu0 %v5137_v61, %s4485_s9 }
 0xede   : > { %3861 = vrcp.f32 %v2129_v42 }
 0xeeb   : > { %v3862_v43 = vpop.eup %3861 }
 0xeec   : > { %v2131_v44 = vmul.f32 %v3862_v43, %v3858_v34 }
 0xeee   : > { %v2132_v45 = vpack.c.bf16 %v2131_v44, %v2131_v44 }
 0xef0   : > { %3513 = vmatmul.mubr.msk.bf16.vlgmr.msra.gmra.mxu0 %vm2120_vm4, %v2132_v45 }
 0xef1   : > { %3523 = vmatpush3.bf16.msra.mxu0 %v2245_v11  ;;  %3524 = vmatprep.mubr.msk.bf16.mxu0 %vm4480_vm0, %v4479_v0 }
 0xef2   : > { %3534 = vmatprep.subr.bf16.mxu0 %v4479_v0 }
 0xf50   : > { %v2239_v48 = vpop.xlane.xlu0 %2238 }
 0xf51   : > { %3863 = vrcp.f32 %v2239_v48 }
 0xf54   : > { %v2387_v60 = vpop.permute.xlu0 %2386 }
 0xf55   : > { %v2392_v1 = vsel %vm1195_vm2, %v2387_v60, 0 }
 0xf5e   : > { %v3864_v49 = vpop.eup %3863 }
 0xf5f   : > { %v2241_v52 = vmul.f32 %v3864_v49, %v3860_v40 }
 0xf61   : > { %v2242_v53 = vpack.c.bf16 %v2241_v52, %v2241_v52 }
 0xf63   : > { %3525 = vmatmul.mubr.msk.bf16.vlgmr.msra.gmra.mxu0 %vm2120_vm4, %v2242_v53  ;;  %v2650_v53 = vld [vmem:[#allocation23 + $0xc] sm:$0xf] }
 0xf64   : > { %3535 = vmatpush3.bf16.msra.mxu0 %v2342_v54  ;;  %3536 = vmatprep.mubr.msk.bf16.mxu0 %vm4480_vm0, %v4479_v0 }
 0xf65   : > { %3546 = vmatprep.subr.bf16.mxu0 %v4479_v0 }
 0xfb0   : > { %v2171_v55 = vpop.f32.mrf.mxu0 }
 0xfb1   : > { %v2177_v56 = vpack.c.bf16 %v2171_v55, %v2171_v55 }
 0xfb2   : > { %v3514_v57 = vpop.f32.mrf.mxu0 }
 0xfb3   : > { %3537 = vmatmul.mubr.msk.bf16.vlgmr.msra.gmra.mxu0 %vm1195_vm2, %v2177_v56 }
 0xfb4   : > { %v2174_v58 = vpop.f32.mrf.mxu0  ;;  %3548 = vmatprep.mubr.msk.bf16.mxu0 %vm4480_vm0, %v4479_v0 }
 0xfb6   : > { %v3515_v59 = vpop.f32.mrf.mxu0 }
0x1023   : > { %v2284_v4 = vpop.f32.mrf.mxu0 }
0x1024   : > { %v2290_v62 = vpack.c.bf16 %v2284_v4, %v2284_v4 }
0x1025   : > { %v3526_v63 = vpop.f32.mrf.mxu0 }
0x1026   : > { %3531 = vmatmul.mubr.msk.bf16.vlgmr.msra.gmra.mxu1 %vm1195_vm2, %v2290_v62 }
0x1027   : > { %3541 = vmatpush3.bf16.xpose.msra.mxu1 %v2392_v1  ;;  %v2287_v2 = vpop.f32.mrf.mxu0  ;;  %3542 = vmatprep.mubr.msk.bf16.mxu1 %vm4480_vm0, %v4479_v0 }
0x1028   : > { %3552 = vmatprep.subr.bf16.mxu1 %v4479_v0 }
0x1029   : > { %v3527_v5 = vpop.f32.mrf.mxu0 }
0x102e   : > { %3543 = vmatmul.mubr.msk.bf16.vlgmr.msra.gmra.mxu1 %vm1195_vm2, %v2385_v6 }
0x102f   : > { %3554 = vmatprep.mubr.msk.bf16.mxu1 %vm4480_vm0, %v4479_v0  ;;  %3553 = vmatpush3.bf16.msra.mxu1 %v2498_v3 }
0x1030   : > { %3564 = vmatprep.subr.bf16.mxu1 %v4479_v0 }
0x1073   : > { %v5198_v7 = vpop.f32.mrf.mxu0 }
0x1075   : > { %v3538_v8 = vpop.f32.mrf.mxu0 }
0x1077   : > { %v2381_v10 = vpop.f32.mrf.mxu0 }
0x1079   : > { %v3539_v36 = vpop.f32.mrf.mxu0 }
0x10e6   : > { %v5200_v12 = vpop.f32.mrf.mxu1 }
0x10e7   : > { %v2379_v50 = vadd.f32 %v5198_v7, %v5200_v12  ;;  %v3300_v7 = vld [vmem:[#allocation25] ss:$0 sm:$0xff] }
0x10e8   : > { %v3532_v13 = vpop.f32.mrf.mxu1 }
0x10ea   : > { %v2335_v14 = vpop.f32.mrf.mxu1 }
0x10ec   : > { %v3533_v15 = vpop.f32.mrf.mxu1 }
0x10ee   : > { %v2428_v16 = vpop.f32.mrf.mxu1 }
0x10ef   : > { %v2434_v17 = vsel %vm2120_vm4, %v2428_v16, -inf }
0x10f0   : > { %2435 = vmax.xlane.f32.xlu1 %v2434_v17  ;;  %v3544_v18 = vpop.f32.mrf.mxu1 }
0x10f2   : > { %v2431_v19 = vpop.f32.mrf.mxu1 }
0x10f4   : > { %v3545_v20 = vpop.f32.mrf.mxu1 }
0x1101   : > { %2543 = vrot.lane.b32.xlu1 %v5137_v61, %s4486_s15 }
0x1105   : > { %2541 = vrot.lane.b32.xlu1 %v5149_v9, %s4486_s15 }
0x1179   : > { %v2436_v21 = vpop.xlane.xlu1 %2435 }
0x117a   : > { %v2437_v22 = vsub.f32 %v2428_v16, %v2436_v21  ;;  %v3833_v21 = vld [vmem:[#allocation29 + $0x8] sm:$0xff]  }
0x117c   : > { %v2438_v23 = vmul.f32 1.442695, %v2437_v22  ;;  %v3834_v22 = vld [vmem:[#allocation29] sm:$0xff]  }
0x117d   : > { %v2544_v9 = vpop.permute.xlu1 %2543 }
0x117e   : > { %3865 = vpow2.f32 %v2438_v23  ;;  %v2549_v31 = vsel %vm1195_vm2, %v2544_v9, 0  ;;  %v3302_v9 = vld [vmem:[#allocation28 + $0x1] ss:$0 sm:$0xff] }
0x1181   : > { %v2542_v32 = vpop.permute.xlu1 %2541 }
0x118b   : > { %v3866_v25 = vpop.eup %3865 }
0x118c   : > { %v2440_v26 = vsel %vm2120_vm4, %v3866_v25, 0.0 }
0x118d   : > { %2441 = vadd.xlane.f32.xlu0 %v2440_v26 }
0x11a3   : > { %2446 = vrot.lane.b32.xlu0 %v5163_v24, %s4485_s9  ;;  %s5411_s9 = sld [smem:[#allocation63_spill]] }
0x11a9   : > { %v3836_v23 = vld [vmem:[%s5411_s9 + $0x10] sm:$0xff]   ;;  %v3837_v33 = vld [vmem:[%s5411_s9 + $0x8] sm:$0xff]   ;;  %v3838_v3 = vld [vmem:[%s5411_s9] sm:$0xff]  }
0x1216   : > { %v2442_v27 = vpop.xlane.xlu0 %2441 }
0x1217   : > { %3867 = vrcp.f32 %v2442_v27 }
0x121a   : > { %v2447_v28 = vpop.permute.xlu0 %2446 }
0x121b   : > { %3547 = vmatpush3.bf16.msra.mxu0 %v2447_v28 }
0x121c   : > { %3558 = vmatprep.subr.bf16.mxu0 %v4479_v0 }
0x1224   : > { %v3868_v61 = vpop.eup %3867 }
0x1225   : > { %v2444_v29 = vmul.f32 %v3868_v61, %v3866_v25  ;;  %v3301_v61 = vld [vmem:[#allocation26 + $0x1] ss:$0 sm:$0xff] }
0x1227   : > { %v2445_v30 = vpack.c.bf16 %v2444_v29, %v2444_v29 }
0x1229   : > { %3549 = vmatmul.mubr.msk.bf16.vlgmr.msra.gmra.mxu0 %vm2120_vm4, %v2445_v30 }
0x122a   : > { %3559 = vmatpush3.bf16.xpose.msra.mxu0 %v2549_v31  ;;  %3560 = vmatprep.mubr.msk.bf16.mxu0 %vm4480_vm0, %v4479_v0 }
0x122b   : > { %3570 = vmatprep.subr.bf16.mxu0 %v4479_v0 }
0x1231   : > { %3561 = vmatmul.mubr.msk.bf16.vlgmr.msra.gmra.mxu0 %vm1195_vm2, %v2542_v32 }
0x1232   : > { %3572 = vmatprep.mubr.msk.bf16.mxu0 %vm4480_vm0, %v4479_v0 }
0x12e9   : > { %v2486_v34 = vpop.f32.mrf.mxu0 }
0x12ea   : > { %v2492_v35 = vpack.c.bf16 %v2486_v34, %v2486_v34  ;;  %v3303_v34 = vld [vmem:[%s5412_s21] ss:$0 sm:$0xff]  ;;  %s4349_s21 = scalar_lea.vmem %s2938_s23, 128 }
0x12eb   : > { %v3550_v37 = vpop.f32.mrf.mxu0  ;;  %p4350_p13 = scmp.ne.s32.totalorder %s2938_s23, %s4349_s21 }
0x12ec   : > { %3555 = vmatmul.mubr.msk.bf16.vlgmr.msra.gmra.mxu1 %vm1195_vm2, %v2492_v35 }
0x12ed   : > { %v2489_v38 = vpop.f32.mrf.mxu0  ;;  %3566 = vmatprep.mubr.msk.bf16.mxu1 %vm4480_vm0, %v4479_v0  ;;  %p4351_p0 = pnand %p4350_p13, %p5415_p6 }
0x12ef   : > { %v3551_v39 = vpop.f32.mrf.mxu0  ;;  %p4352_p2 = pneg %p4351_p0 }
0x12f1   : > { %v2585_v40 = vpop.f32.mrf.mxu0 }
0x12f2   : > { %v2591_v41 = vsel %vm2120_vm4, %v2585_v40, -inf }
0x12f3   : > { %2592 = vmax.xlane.f32.xlu0 %v2591_v41  ;;  %v3562_v42 = vpop.f32.mrf.mxu0 }
0x12f5   : > { %v2588_v43 = vpop.f32.mrf.mxu0 }
0x12f7   : > { %v3563_v44 = vpop.f32.mrf.mxu0 }
0x1309   : > { %2603 = vrot.lane.b32.xlu0 %v5163_v24, %s4486_s15  ;;  %v2655_v24 = vsel %vm1258_vm3, %v2650_v53, 0  ;;  %s3316_s15 = sshll.u32 %s4635_s29, 7  ;;  %s4353_s29 = sshll.u32 %s4488_s8, 4  ;;  %s4354_s29 = int_to_ptr.vmem [resolvable:$false] %s4353_s29 }
0x130a   : > { %3571 = vmatpush3.bf16.msra.mxu0 %v2655_v24  ;;  %s2935_s6 = scalar_lea.hbm %s5414_s16, %s3316_s15  ;;  %s4355_s3 = scalar_lea.vmem %s4354_s29, 256 }
0x130b   : > { %3584 = vmatprep.subr.bf16.mxu0 %v4479_v0  ;;  %p4356_p8 = scmp.lt.s32.totalorder %s2938_s23, %s4354_s29  ;;  %p4357_p1 = scmp.lt.s32.totalorder %s4355_s3, %s4349_s21 }
0x130d   : > { %p4358_p3 = por %p4357_p1, %p4356_p8 }
0x130f   : > { %p4359_p9 = pnand %p4358_p3, %p4352_p2 }
0x137c   : > { %v2593_v45 = vpop.xlane.xlu0 %2592 }
0x137d   : > { %v2594_v11 = vsub.f32 %v2585_v40, %v2593_v45 }
0x137f   : > { %v2595_v46 = vmul.f32 1.442695, %v2594_v11 }
0x1380   : > { %v2604_v47 = vpop.permute.xlu0 %2603 }
0x1381   : > { %3869 = vpow2.f32 %v2595_v46  ;;  %3565 = vmatpush3.bf16.msra.mxu1 %v2604_v47 }
0x1382   : > { %3576 = vmatprep.subr.bf16.mxu1 %v4479_v0 }
0x138e   : > { %v3870_v48 = vpop.eup %3869 }
0x138f   : > { %v2597_v49 = vsel %vm2120_vm4, %v3870_v48, 0.0 }
0x1390   : > { %2598 = vadd.xlane.f32.xlu1 %v2597_v49 }
0x13ac   : > { %v2534_v52 = vpop.f32.mrf.mxu1 }
0x13ad   : > { %v2540_v54 = vadd.f32 %v2534_v52, %v2379_v50 }
0x13ae   : > { %v3556_v55 = vpop.f32.mrf.mxu1 }
0x13b0   : > { %v2537_v56 = vpop.f32.mrf.mxu1 }
0x13b2   : > { %v3557_v57 = vpop.f32.mrf.mxu1 }
0x1419   : > { %v2599_v58 = vpop.xlane.xlu1 %2598 }
0x141a   : > { %3871 = vrcp.f32 %v2599_v58  ;;  %v3313_v58 = vld [vmem:[#allocation26 + $0x2] ss:$0 sm:$0xff] }
0x1427   : > { %v3872_v59 = vpop.eup %3871 }
0x1428   : > { %v2601_v60 = vmul.f32 %v3872_v59, %v3870_v48 }
0x142a   : > { %v2602_v4 = vpack.c.bf16 %v2601_v60, %v2601_v60  ;;  %v3314_v60 = vld [vmem:[#allocation28 + $0x2] ss:$0 sm:$0xff] }
0x142c   : > { %3567 = vmatmul.mubr.msk.bf16.vlgmr.msra.gmra.mxu1 %vm2120_vm4, %v2602_v4 }
0x142d   : > { %3580 = vmatprep.mubr.msk.bf16.mxu1 %vm4480_vm0, %v4479_v0  ;;  %3577 = vmatpush3.bf16.msra.mxu1 %v3833_v21 }
0x142e   : > { %3578 = vmatprep.subr.bf16.mxu1 %v4479_v0 }
0x1431   : > { %3579 = vmatpush3.bf16.msra.mxu1 %v3834_v22 }
0x14ec   : > { %v2643_v62 = vpop.f32.mrf.mxu1 }
0x14ed   : > { %v2649_v63 = vpack.c.bf16 %v2643_v62, %v2643_v62 }
0x14ee   : > { %v3568_v1 = vpop.f32.mrf.mxu1 }
0x14ef   : > { %3573 = vmatmul.mubr.msk.bf16.vlgmr.msra.gmra.mxu0 %vm1195_vm2, %v2649_v63 }
0x14f0   : > { %v2646_v2 = vpop.f32.mrf.mxu1  ;;  %3592 = vmatprep.mubr.msk.bf16.mxu0 %vm4480_vm0, %v4479_v0 }
0x14f2   : > { %v3569_v5 = vpop.f32.mrf.mxu1 }
0x15af   : > { %v2691_v6 = vpop.f32.mrf.mxu0 }
0x15b0   : > { %v2697_v8 = vadd.f32 %v2691_v6, %v2540_v54 }
0x15b1   : > { %v3574_v10 = vpop.f32.mrf.mxu0 }
0x15b2   : > { %v2705_v36 = vadd.f32 %v3300_v7, %v2697_v8 }
0x15b3   : > { %v2694_v12 = vpop.f32.mrf.mxu0 }
0x15b4   : > { %v2706_v13 = vadd.f32 %v2705_v36, %v5130_v51  ;;  %v3835_v51 = vld [vmem:[%s5411_s9 + $0x18] sm:$0xff]  }
0x15b5   : > { %v3575_v14 = vpop.f32.mrf.mxu0  ;;  %3585 = vmatpush3.bf16.msra.mxu0 %v3835_v51 }
0x15b6   : > { %v2711_v15 = vsel %vm1080_vm1, %v2706_v13, 0.0  ;;  %3586 = vmatprep.subr.bf16.mxu0 %v4479_v0 }
0x15b7   : > { %2712 = vadd.xlane.f32.xlu1 %v2711_v15 }
0x15b9   : > { %3587 = vmatpush3.bf16.msra.mxu0 %v3836_v23 }
0x15ba   : > { %3588 = vmatprep.subr.bf16.mxu0 %v4479_v0 }
0x15bd   : > { %3589 = vmatpush3.bf16.msra.mxu0 %v3837_v33 }
0x15be   : > { %3590 = vmatprep.subr.bf16.mxu0 %v4479_v0  ;;  %v3307_v0 = vld [vmem:[%s5413_s11] ss:$0 sm:$0xff] }
0x15c1   : > { %3591 = vmatpush3.bf16.msra.mxu0 %v3838_v3 }
0x1640   : > { %v2713_v16 = vpop.xlane.xlu1 %2712 }
0x1641   : > { %v2714_v17 = vmul.f32 0.03125, %v2713_v16 }
0x1643   : > { %v2715_v18 = vsub.f32 %v2706_v13, %v2714_v17 }
0x1645   : > { %v2716_v19 = vmul.f32 %v2715_v18, %v2715_v18 }
0x1647   : > { %v2717_v20 = vsel %vm1080_vm1, %v2716_v19, 0.0 }
0x1648   : > { %2718 = vadd.xlane.f32.xlu1 %v2717_v20 }
0x16d1   : > { %v2719_v25 = vpop.xlane.xlu1 %2718 }
0x16d2   : > { %v2720_v26 = vmul.f32 0.03125, %v2719_v25 }
0x16d4   : > { %v2721_v27 = vadd.f32 1e-05, %v2720_v26 }
0x16d6   : > { %3873 = vrsqrt.f32 %v2721_v27 }
0x16e3   : > { %v3874_v28 = vpop.eup %3873 }
0x16e4   : > { %v2723_v29 = vmul.f32 %v3874_v28, %v2715_v18 }
0x16e6   : > { %v2730_v30 = vmul.f32 %v3301_v61, %v2723_v29 }
0x16e8   : > { %v2737_v31 = vadd.f32 %v3302_v9, %v2730_v30 }
0x16ea   : > { %v2738_v32 = vpack.c.bf16 %v2737_v31, %v2737_v31 }
0x16ec   : > { %3581 = vmatmul.mubr.msk.bf16.vlgmr.msra.gmra.mxu1 %vm1080_vm1, %v2738_v32 }
0x17ac   : > { %v2799_v35 = vpop.f32.mrf.mxu1 }
0x17ad   : > { %v2800_v37 = vadd.f32 %v3303_v34, %v2799_v35 }
0x17ae   : > { %v3582_v38 = vpop.f32.mrf.mxu1 }
0x17af   : > { %v2805_v39 = vmax.f32 %v2800_v37, 0.0 }
0x17b0   : > { %v2802_v40 = vpop.f32.mrf.mxu1 }
0x17b1   : > { %v2806_v41 = vpack.c.bf16 %v2805_v39, %v2805_v39 }
0x17b2   : > { %v3583_v42 = vpop.f32.mrf.mxu1 }
0x17b3   : > { %3593 = vmatmul.mubr.msk.bf16.vlgmr.msra.gmra.mxu0 %vm2846_vm5, %v2806_v41 }
0x1873   : > { %v2884_v43 = vpop.f32.mrf.mxu0 }
0x1874   : > { %v2885_v44 = vadd.f32 %v3307_v0, %v2884_v43 }
0x1875   : > { %v3594_v45 = vpop.f32.mrf.mxu0 }
0x1876   : > { %v2890_v11 = vadd.f32 %v2885_v44, %v2737_v31 }
0x1877   : > { %v2887_v46 = vpop.f32.mrf.mxu0 }
0x1878   : > { %v2895_v47 = vsel %vm1080_vm1, %v2890_v11, 0.0 }
0x1879   : > { %2896 = vadd.xlane.f32.xlu1 %v2895_v47  ;;  %v3595_v48 = vpop.f32.mrf.mxu0 }
0x1902   : > { %v2897_v49 = vpop.xlane.xlu1 %2896 }
0x1903   : > { %v2898_v50 = vmul.f32 0.03125, %v2897_v49 }
0x1905   : > { %v2899_v52 = vsub.f32 %v2890_v11, %v2898_v50 }
0x1907   : > { %v2900_v53 = vmul.f32 %v2899_v52, %v2899_v52 }
0x1909   : > { %v2901_v54 = vsel %vm1080_vm1, %v2900_v53, 0.0 }
0x190a   : > { %2902 = vadd.xlane.f32.xlu1 %v2901_v54 }
0x1993   : > { %v2903_v24 = vpop.xlane.xlu1 %2902 }
0x1994   : > { %v2904_v55 = vmul.f32 0.03125, %v2903_v24 }
0x1996   : > { %v2905_v56 = vadd.f32 1e-05, %v2904_v55 }
0x1998   : > { %3875 = vrsqrt.f32 %v2905_v56 }
0x19a5   : > { %v3876_v57 = vpop.eup %3875 }
0x19a6   : > { %v2907_v59 = vmul.f32 %v3876_v57, %v2899_v52 }
0x19a8   : > { %v2914_v4 = vmul.f32 %v3313_v58, %v2907_v59 }
0x19aa   : > { %v2921_v62 = vadd.f32 %v3314_v60, %v2914_v4 }
0x19ac   : > { %2922 = vst.msk [vmem:[%s1038_s14] sm:$0xff] %vm1080_vm1, %v2921_v62 }
0x19ad   : > { %4362 = shalt.err (!%p4359_p9)
}
0x19ae   : > { %s4363_s30 = scalar_lea.hbm %s2935_s6, 128  ;;  %s4367_s15 = scalar_lea.hbm %s5414_s16, 256 }
0x19af   : > { %p4364_p7 = scmp.ne.s32.totalorder %s2935_s6, %s4363_s30  ;;  %p4368_p10 = scmp.lt.s32.totalorder %s2935_s6, %s5414_s16 }
0x19b0   : > { %p4369_p11 = scmp.lt.s32.totalorder %s4367_s15, %s4363_s30 }
0x19b1   : > { %p4365_p4 = pnand %p4364_p7, %p5415_p6 }
0x19b2   : > { %p4370_p12 = por %p4369_p11, %p4368_p10 }
0x19b3   : > { %p4366_p5 = pneg %p4365_p4 }
0x19b5   : > { %p4371_p13 = pnand %p4370_p12, %p4366_p5 }
0x19b7   : > { %4374 = shalt.err (!%p4371_p13)
}
0x19b8   : > { %3664 = dma.vmem_to_hbm [thread:$0]  (%p5415_p6), %s2938_s23, 128, %s2935_s6, %s2924_s13  }
0x19b9 PF: > { %s2949_s10 = sand.u32 1, %s4441_s5   ;;  %p5416_p0 = scmp.ne.s32.totalorder %s5382_s24, 0 }
0x19ba   : > { %p5417_p2 = scmp.ge.s32.totalorder %s4453_s28, 2  ;;  %s2950_s21 = scalar_lea.sflag [#allocation4], %s2949_s10 }
0x19bc   : > { %p3723_p8 = pnand %p5417_p2, %p5416_p0 }
0x19be   : > { %p3724_p1 = pneg %p3723_p8 }
0x19c0   : > { %4436 = dma.done.wait (%p3724_p1), %s2950_s21, 128  }
0x19c1   : > { %4438 = vsyncadd (%p3724_p1), %s2950_s21, 4294967168  ;;  %p48_p3 = scmp.ge.s32.totalorder %s4808_s4, 4   ;;  %s5418_s5 = smov %s4445_s26 }
0x19c2   : > { %s5419_s26 = smov %s4449_s27  ;;  %s5420_s27 = smov %s4819_s0 }
0x19c3   : > { %s5421_s28 = smov %s4808_s4  ;;  %50 = sbr.rel (!%p48_p3) target bundleno = 37 (0x25), region = 248 }
0x19c8   :  { %2955 = vsyncpa [#allocation3], 1 }
0x19c9   :  { %2957 = vsyncpa [#allocation3 + $0x1], 1 }
0x19ca   :  { %2958 = vsyncpa [#allocation6], 1 }
0x19cb   :  { %2960 = vsyncpa [#allocation6 + $0x1], 1 }
0x19cc   :  { %2961 = vsyncpa [#allocation9], 1 }
0x19cd   :  { %2962 = vsyncpa [#allocation12], 1 }
0x19ce   :  { %2963 = vsyncpa [#allocation15], 1 }
0x19cf   :  { %2964 = vsyncpa [#allocation18], 1 }
0x19d0   :  { %2965 = vsyncpa [#allocation21], 1 }
0x19d1   :  { %2966 = vsyncpa [#allocation24], 1 }
0x19d2   :  { %2967 = vsyncpa [#allocation27], 1 }
0x19d3   :  { %2968 = vsyncpa [#allocation30], 1 }
0x19d4   :  { %2969 = vsyncpa [#allocation4], 1 }
0x19d5   :  { %2971 = vsyncpa [#allocation4 + $0x1], 1 }

// kernel: tpu_custom_call.1
= control target key start
LH: loop header
LB: loop body
LE: loop exit
PB: predicated region body
PF: predicated region fallthrough
CT: control target
= control target key end

     0   :  { %s5305_s0 = inlined_call_operand.vmem [shape: f32[2,8,32], index: 0, kind: input, shape index: {}]   ;;  %s5306_s1 = inlined_call_operand.hbm [shape: f32[2,8,32], index: 1, kind: input, shape index: {}]   ;;  %s5307_s2 = inlined_call_operand.vmem [shape: f32[2,16,32], index: 2, kind: input, shape index: {}]   ;;  %s5308_s3 = inlined_call_operand.hbm [shape: f32[2,16,32], index: 3, kind: input, shape index: {}]   ;;  %s5309_s4 = inlined_call_operand.hbm [shape: bf16[32,64], index: 4, kind: input, shape index: {}]   ;;  %s5310_s5 = inlined_call_operand.hbm [shape: f32[1,64], index: 5, kind: input, shape index: {}]   ;;  %s5311_s6 = inlined_call_operand.hbm [shape: bf16[32,32], index: 6, kind: input, shape index: {}]   ;;  %s5312_s7 = inlined_call_operand.hbm [shape: f32[1,32], index: 7, kind: input, shape index: {}]   ;;  %s5313_s8 = inlined_call_operand.hbm [shape: bf16[32,32], index: 8, kind: input, shape index: {}]   ;;  %s5314_s9 = inlined_call_operand.hbm [shape: f32[1,32], index: 9, kind: input, shape index: {}]   ;;  %s5315_s10 = inlined_call_operand.vmem [shape: bf16[32,32], index: 10, kind: input, shape index: {}]   ;;  %s5316_s11 = inlined_call_operand.hbm [shape: f32[1,32], index: 11, kind: input, shape index: {}]   ;;  %s5317_s12 = inlined_call_operand.hbm [shape: bf16[32,32], index: 12, kind: input, shape index: {}]   ;;  %s5318_s13 = inlined_call_operand.hbm [shape: f32[1,32], index: 13, kind: input, shape index: {}]   ;;  %s5319_s14 = inlined_call_operand.hbm [shape: bf16[32,32], index: 14, kind: input, shape index: {}]   ;;  %s5320_s15 = inlined_call_operand.hbm [shape: f32[1,32], index: 15, kind: input, shape index: {}]   ;;  %s5321_s16 = inlined_call_operand.hbm [shape: bf16[32,32], index: 16, kind: input, shape index: {}]   ;;  %s5322_s17 = inlined_call_operand.hbm [shape: f32[1,32], index: 17, kind: input, shape index: {}]   ;;  %s5323_s18 = inlined_call_operand.hbm [shape: f32[3,1,32], index: 18, kind: input, shape index: {}]   ;;  %s5324_s19 = inlined_call_operand.hbm [shape: f32[3,1,32], index: 19, kind: input, shape index: {}]   ;;  %s5325_s20 = inlined_call_operand.hbm [shape: bf16[32,64], index: 20, kind: input, shape index: {}]   ;;  %s5326_s21 = inlined_call_operand.vmem [shape: f32[1,64], index: 21, kind: input, shape index: {}]   ;;  %s5327_s22 = inlined_call_operand.vmem [shape: bf16[64,32], index: 22, kind: input, shape index: {}]   ;;  %s5328_s23 = inlined_call_operand.vmem [shape: f32[1,32], index: 23, kind: input, shape index: {}]   ;;  %s5329_s24 = inlined_call_operand.hbm [shape: f32[2,8,32], index: 24, kind: output, shape index: {}]  }
   0x1   :  { %5340 = sst [smem:[#allocation45_spill]] %s5305_s0 }
   0x2   :  { %5341 = sst [smem:[#allocation46_spill]] %s5306_s1 }
   0x3   :  { %5342 = sst [smem:[#allocation47_spill]] %s5307_s2 }
   0x4   :  { %5343 = sst [smem:[#allocation48_spill]] %s5308_s3 }
   0x5   :  { %5344 = sst [smem:[#allocation49_spill]] %s5309_s4 }
   0x6   :  { %5345 = sst [smem:[#allocation50_spill]] %s5310_s5 }
   0x7   :  { %5346 = sst [smem:[#allocation51_spill]] %s5311_s6 }
   0x8   :  { %5347 = sst [smem:[#allocation52_spill]] %s5312_s7 }
   0x9   :  { %5348 = sst [smem:[#allocation53_spill]] %s5313_s8 }
   0xa   :  { %5349 = sst [smem:[#allocation54_spill]] %s5314_s9 }
   0xb   :  { %5350 = sst [smem:[#allocation55_spill]] %s5315_s10 }
   0xc   :  { %5351 = sst [smem:[#allocation56_spill]] %s5316_s11 }
   0xd   :  { %5352 = sst [smem:[#allocation57_spill]] %s5317_s12 }
   0xe   :  { %5353 = sst [smem:[#allocation58_spill]] %s5318_s13 }
   0xf   :  { %5354 = sst [smem:[#allocation59_spill]] %s5319_s14 }
  0x10   :  { %5355 = sst [smem:[#allocation60_spill]] %s5320_s15 }
  0x11   :  { %5356 = sst [smem:[#allocation61_spill]] %s5321_s16 }
  0x12   :  { %5357 = sst [smem:[#allocation62_spill]] %s5326_s21 }
  0x13   :  { %5358 = sst [smem:[#allocation63_spill]] %s5327_s22 }
  0x14   :  { %5359 = sst [smem:[#allocation64_spill]] %s5328_s23 }
  0x15   :  { %5360 = sst [smem:[#allocation65_spill]] %s5329_s24 }
  0x16   :  { %29 = vsyncpa [#allocation3], 0 }
  0x17   :  { %31 = vsyncpa [#allocation3 + $0x1], 0 }
  0x18   :  { %32 = vsyncpa [#allocation6], 0 }
  0x19   :  { %34 = vsyncpa [#allocation6 + $0x1], 0 }
  0x1a   :  { %35 = vsyncpa [#allocation9], 0 }
  0x1b   :  { %36 = vsyncpa [#allocation12], 0 }
  0x1c   :  { %37 = vsyncpa [#allocation15], 0 }
  0x1d   :  { %38 = vsyncpa [#allocation18], 0 }
  0x1e   :  { %39 = vsyncpa [#allocation21], 0 }
  0x1f   :  { %40 = vsyncpa [#allocation24], 0 }
  0x20   :  { %41 = vsyncpa [#allocation27], 0 }
  0x21   :  { %42 = vsyncpa [#allocation30], 0 }
  0x22   :  { %43 = vsyncpa [#allocation4], 0 }
  0x23   :  { %45 = vsyncpa [#allocation4 + $0x1], 0  ;;  %s4614_s5 = smov 0   ;;  %s4616_s26 = smov 0  }
  0x24   :  { %s4618_s27 = smov 0   ;;  %s4620_s28 = smov 0  }
  0x25 LB: > { %s4455_s6 = smov [#allocation7]   ;;  %s4635_s29 = sadd.s32 4294967295, %s4453_s28   ;;  %s4453_s28 = sphi %s4620_s28, %s5421_s28   ;;  %s4449_s27 = sphi %s4618_s27, %s5420_s27   ;;  %s4445_s26 = sphi %s4616_s26, %s5419_s26   ;;  %s4441_s5 = sphi %s4614_s5, %s5418_s5  }
  0x26   : > { %s618_s2 = sshll.u32 %s4455_s6, 4  ;;  %p3207_p0 = scmp.ge.s32.totalorder %s4453_s28, 1  ;;  %s619_s2 = int_to_ptr.vmem [resolvable:$true] %s618_s2 }
  0x27   : > { %p5336_p1 = scmp.eq.s32.totalorder %s4635_s29, 0  ;;  %p606_p2 = scmp.lt.s32.totalorder %s4453_s28, 3 }
  0x28   : > { %s4456_s7 = smov [#allocation8]   ;;  %s4457_s25 = smov [#allocation11]  }
  0x29   : > { %p4640_p3 = pnand %p3207_p0, %p606_p2  ;;  %s632_s30 = sshll.u32 %s4456_s7, 4  ;;  %s633_s30 = int_to_ptr.vmem [resolvable:$true] %s632_s30 }
  0x2a   : > { %s656_s8 = sshll.u32 %s4457_s25, 4  ;;  %s3888_s1 = scalar_lea.vmem %s619_s2, 256  ;;  %s4653_s8 = int_to_ptr.vmem [resolvable:$true] %s656_s8 }
  0x2b   : > { %s5361_s0 = scalar_select %p4640_p3, 1, 0 }
  0x2c   : > { %p3666_p5 = pneg %p4640_p3  ;;  %p3889_p8 = scmp.ne.s32.totalorder %s619_s2, %s3888_s1 }
  0x2d   : > { %5362 = sst [smem:[#allocation44_spill]] %s5361_s0  ;;  %p3896_p11 = scmp.lt.s32.totalorder %s619_s2, %s619_s2 }
  0x2e   : > { %p4649_p6 = pnand %p3666_p5, %p5336_p1  ;;  %p3897_p12 = scmp.lt.s32.totalorder %s3888_s1, %s3888_s1 }
  0x30   : > { %p4657_p7 = pneg %p4649_p6  ;;  %p3898_p13 = por %p3897_p12, %p3896_p11 }
  0x32   : > { %p3891_p9 = pnand %p3889_p8, %p4657_p7 }
  0x34   : > { %p3892_p10 = pneg %p3891_p9 }
  0x36   : > { %p3899_p0 = pnand %p3898_p13, %p3892_p10 }
  0x38   : > { %3902 = shalt.err (!%p3899_p0)
}
  0x39   : > { %s4458_s6 = smov 64   ;;  %s4459_s7 = smov 4  }
  0x3a   : > { %s5365_s23 = sld [smem:[#allocation49_spill]]  ;;  %s3914_s21 = scalar_lea.vmem %s633_s30, 16 }
  0x3b   : > { %p3915_p2 = scmp.ne.s32.totalorder %s633_s30, %s3914_s21  ;;  %s3921_s1 = scalar_lea.vmem %s633_s30, 32 }
  0x3c   : > { %p3922_p9 = scmp.lt.s32.totalorder %s633_s30, %s633_s30  ;;  %p3923_p10 = scmp.lt.s32.totalorder %s3921_s1, %s3914_s21 }
  0x3d   : > { %p3917_p5 = pnand %p3915_p2, %p4657_p7 }
  0x3e   : > { %p3924_p11 = por %p3923_p10, %p3922_p9 }
  0x3f   : > { %p3918_p8 = pneg %p3917_p5 }
  0x40   : > { %3669 = dma.hbm_to_vmem [thread:$0]  (!%p4649_p6), %s5365_s23, 256, %s619_s2, [#allocation6], %s4458_s6, %s4458_s6, %s4459_s7  }
  0x41   : > { %p3925_p12 = pnand %p3924_p11, %p3918_p8 }
  0x43   : > { %3928 = shalt.err (!%p3925_p12)
}
  0x44   : > { %s5366_s0 = sld [smem:[#allocation50_spill]]  ;;  %s3940_s23 = scalar_lea.vmem %s4653_s8, 16 }
  0x45   : > { %p3941_p13 = scmp.ne.s32.totalorder %s4653_s8, %s3940_s23  ;;  %s3947_s21 = scalar_lea.vmem %s4653_s8, 32 }
  0x46   : > { %p3948_p5 = scmp.lt.s32.totalorder %s4653_s8, %s4653_s8  ;;  %p3949_p8 = scmp.lt.s32.totalorder %s3947_s21, %s3940_s23 }
  0x47   : > { %p3943_p0 = pnand %p3941_p13, %p4657_p7 }
  0x48   : > { %p3950_p9 = por %p3949_p8, %p3948_p5 }
  0x49   : > { %p3944_p2 = pneg %p3943_p0 }
  0x4a   : > { %3672 = dma.hbm_to_vmem [thread:$0]  (!%p4649_p6), %s5366_s0, 16, %s633_s30, [#allocation9]  }
  0x4b   : > { %p3951_p10 = pnand %p3950_p9, %p3944_p2 }
  0x4d   : > { %3954 = shalt.err (!%p3951_p10)
}
  0x4e   : > { %s5367_s24 = sld [smem:[#allocation52_spill]]  ;;  %s4460_s2 = smov [#allocation14]  }
  0x4f   : > { %s680_s0 = sshll.u32 %s4460_s2, 4  ;;  %s4461_s30 = smov [#allocation17]   ;;  %s681_s0 = int_to_ptr.vmem [resolvable:$true] %s680_s0 }
  0x50   : > { %s704_s25 = sshll.u32 %s4461_s30, 4  ;;  %s3966_s1 = scalar_lea.vmem %s681_s0, 16  ;;  %s705_s25 = int_to_ptr.vmem [resolvable:$true] %s704_s25 }
  0x51   : > { %p3967_p11 = scmp.ne.s32.totalorder %s681_s0, %s3966_s1  ;;  %s3973_s23 = scalar_lea.vmem %s681_s0, 32 }
  0x52   : > { %p3974_p0 = scmp.lt.s32.totalorder %s681_s0, %s681_s0  ;;  %p3975_p2 = scmp.lt.s32.totalorder %s3973_s23, %s3966_s1 }
  0x53   : > { %p3969_p12 = pnand %p3967_p11, %p4657_p7 }
  0x54   : > { %3678 = dma.hbm_to_vmem [thread:$0]  (!%p4649_p6), %s5367_s24, 16, %s4653_s8, [#allocation12]  }
  0x55   : > { %p3970_p13 = pneg %p3969_p12  ;;  %p3976_p5 = por %p3975_p2, %p3974_p0 }
  0x57   : > { %p3977_p8 = pnand %p3976_p5, %p3970_p13 }
  0x59   : > { %3980 = shalt.err (!%p3977_p8)
}
  0x5a   : > { %s5368_s9 = sld [smem:[#allocation54_spill]]  ;;  %s3992_s10 = scalar_lea.vmem %s705_s25, 256 }
  0x5b   : > { %p3993_p9 = scmp.ne.s32.totalorder %s705_s25, %s3992_s10  ;;  %p4000_p12 = scmp.lt.s32.totalorder %s705_s25, %s705_s25 }
  0x5c   : > { %p4001_p4 = scmp.lt.s32.totalorder %s3992_s10, %s3992_s10 }
  0x5d   : > { %p3995_p10 = pnand %p3993_p9, %p4657_p7 }
  0x5e   : > { %p4002_p1 = por %p4001_p4, %p4000_p12 }
  0x5f   : > { %p3996_p11 = pneg %p3995_p10 }
  0x60   : > { %3684 = dma.hbm_to_vmem [thread:$0]  (!%p4649_p6), %s5368_s9, 16, %s681_s0, [#allocation15]  }
  0x61   : > { %p4003_p3 = pnand %p4002_p1, %p3996_p11 }
  0x63   : > { %4006 = shalt.err (!%p4003_p3)
}
  0x64   : > { %s5369_s12 = sld [smem:[#allocation57_spill]]  ;;  %s4462_s2 = smov [#allocation20]  }
  0x65   : > { %s728_s0 = sshll.u32 %s4462_s2, 4  ;;  %s4463_s30 = smov [#allocation23]   ;;  %s729_s0 = int_to_ptr.vmem [resolvable:$true] %s728_s0 }
  0x66   : > { %s752_s1 = sshll.u32 %s4463_s30, 4  ;;  %s4018_s23 = scalar_lea.vmem %s729_s0, 256  ;;  %s753_s1 = int_to_ptr.vmem [resolvable:$true] %s752_s1 }
  0x67   : > { %p4019_p13 = scmp.ne.s32.totalorder %s729_s0, %s4018_s23  ;;  %p4026_p4 = scmp.lt.s32.totalorder %s729_s0, %s729_s0 }
  0x68   : > { %p4027_p0 = scmp.lt.s32.totalorder %s4018_s23, %s4018_s23 }
  0x69   : > { %p4021_p1 = pnand %p4019_p13, %p4657_p7 }
  0x6a   : > { %3690 = dma.hbm_to_vmem [thread:$0]  (!%p4649_p6), %s5369_s12, 256, %s705_s25, [#allocation18], %s4458_s6, %s4458_s6, %s4459_s7  }
  0x6b   : > { %p4022_p3 = pneg %p4021_p1  ;;  %p4028_p2 = por %p4027_p0, %p4026_p4 }
  0x6d   : > { %p4029_p5 = pnand %p4028_p2, %p4022_p3 }
  0x6f   : > { %4032 = shalt.err (!%p4029_p5)
}
  0x70   : > { %s5370_s14 = sld [smem:[#allocation59_spill]]  ;;  %s4044_s8 = scalar_lea.vmem %s753_s1, 256 }
  0x71   : > { %p4045_p8 = scmp.ne.s32.totalorder %s753_s1, %s4044_s8  ;;  %p4052_p11 = scmp.lt.s32.totalorder %s753_s1, %s753_s1 }
  0x72   : > { %p4053_p12 = scmp.lt.s32.totalorder %s4044_s8, %s4044_s8 }
  0x73   : > { %p4047_p9 = pnand %p4045_p8, %p4657_p7 }
  0x74   : > { %p4054_p13 = por %p4053_p12, %p4052_p11 }
  0x75   : > { %p4048_p10 = pneg %p4047_p9 }
  0x76   : > { %3696 = dma.hbm_to_vmem [thread:$0]  (!%p4649_p6), %s5370_s14, 256, %s729_s0, [#allocation21], %s4458_s6, %s4458_s6, %s4459_s7  }
  0x77   : > { %p4055_p1 = pnand %p4054_p13, %p4048_p10 }
  0x79   : > { %4058 = shalt.err (!%p4055_p1)
}
  0x7a   : > { %s5371_s16 = sld [smem:[#allocation61_spill]]  ;;  %s4464_s24 = smov [#allocation26]  }
  0x7b   : > { %s776_s2 = sshll.u32 %s4464_s24, 4  ;;  %s777_s2 = int_to_ptr.vmem [resolvable:$true] %s776_s2 }
  0x7c   : > { %s4070_s0 = scalar_lea.vmem %s777_s2, 48  ;;  %s4077_s30 = scalar_lea.vmem %s777_s2, 64 }
  0x7d   : > { %p4071_p3 = scmp.ne.s32.totalorder %s777_s2, %s4070_s0  ;;  %p4078_p2 = scmp.lt.s32.totalorder %s777_s2, %s777_s2 }
  0x7e   : > { %p4079_p5 = scmp.lt.s32.totalorder %s4077_s30, %s4070_s0 }
  0x7f   : > { %p4073_p4 = pnand %p4071_p3, %p4657_p7 }
  0x80   : > { %3702 = dma.hbm_to_vmem [thread:$0]  (!%p4649_p6), %s5371_s16, 256, %s753_s1, [#allocation24], %s4458_s6, %s4458_s6, %s4459_s7  }
  0x81   : > { %p4074_p0 = pneg %p4073_p4  ;;  %p4080_p8 = por %p4079_p5, %p4078_p2 }
  0x83   : > { %p4081_p9 = pnand %p4080_p8, %p4074_p0 }
  0x85   : > { %4084 = shalt.err (!%p4081_p9)
}
  0x86   : > { %s5338_s23 = smov 16   ;;  %s4466_s25 = smov 1  }
  0x87   : > { %3708 = dma.hbm_to_vmem [thread:$0]  (!%p4649_p6), %s5323_s18, 48, %s777_s2, [#allocation27], %s5338_s23, %s5338_s23, %s4466_s25  }
  0x88   : > { %s4467_s8 = smov [#allocation10]   ;;  %s4468_s22 = smov [#allocation13]  }
  0x89   : > { %s642_s10 = sshll.u32 %s4467_s8, 4  ;;  %s666_s24 = sshll.u32 %s4468_s22, 4  ;;  %s643_s10 = int_to_ptr.vmem [resolvable:$true] %s642_s10  ;;  %s667_s24 = int_to_ptr.vmem [resolvable:$true] %s666_s24 }
  0x8a   : > { %s4096_s0 = scalar_lea.vmem %s643_s10, 256  ;;  %p4104_p13 = scmp.lt.s32.totalorder %s643_s10, %s643_s10 }
  0x8b   : > { %p4097_p10 = scmp.ne.s32.totalorder %s643_s10, %s4096_s0  ;;  %p4105_p1 = scmp.lt.s32.totalorder %s4096_s0, %s4096_s0 }
  0x8d   : > { %p4099_p11 = pnand %p4097_p10, %p4657_p7  ;;  %p4106_p3 = por %p4105_p1, %p4104_p13 }
  0x8f   : > { %p4100_p12 = pneg %p4099_p11 }
  0x91   : > { %p4107_p4 = pnand %p4106_p3, %p4100_p12 }
  0x93   : > { %4110 = shalt.err (!%p4107_p4)
}
  0x94   : > { %s5372_s1 = sld [smem:[#allocation51_spill]]  ;;  %s4122_s21 = scalar_lea.vmem %s667_s24, 256 }
  0x95   : > { %p4123_p0 = scmp.ne.s32.totalorder %s667_s24, %s4122_s21  ;;  %p4130_p8 = scmp.lt.s32.totalorder %s667_s24, %s667_s24 }
  0x96   : > { %p4131_p9 = scmp.lt.s32.totalorder %s4122_s21, %s4122_s21 }
  0x97   : > { %p4125_p2 = pnand %p4123_p0, %p4657_p7 }
  0x98   : > { %p4132_p10 = por %p4131_p9, %p4130_p8 }
  0x99   : > { %p4126_p5 = pneg %p4125_p2 }
  0x9a   : > { %3675 = dma.hbm_to_vmem [thread:$0]  (!%p4649_p6), %s5372_s1, 256, %s643_s10, [#allocation9], %s4458_s6, %s4458_s6, %s4459_s7  }
  0x9b   : > { %p4133_p11 = pnand %p4132_p10, %p4126_p5 }
  0x9d   : > { %4136 = shalt.err (!%p4133_p11)
}
  0x9e   : > { %s5373_s0 = sld [smem:[#allocation53_spill]]  ;;  %s4469_s10 = smov [#allocation16]  }
  0x9f   : > { %s694_s2 = sshll.u32 %s4469_s10, 4  ;;  %s4470_s30 = smov [#allocation19]   ;;  %s695_s2 = int_to_ptr.vmem [resolvable:$true] %s694_s2 }
  0xa0   : > { %s718_s1 = sshll.u32 %s4470_s30, 4  ;;  %s4148_s21 = scalar_lea.vmem %s695_s2, 16  ;;  %s719_s1 = int_to_ptr.vmem [resolvable:$true] %s718_s1 }
  0xa1   : > { %p4149_p12 = scmp.ne.s32.totalorder %s695_s2, %s4148_s21  ;;  %s4155_s23 = scalar_lea.vmem %s695_s2, 32 }
  0xa2   : > { %p4156_p3 = scmp.lt.s32.totalorder %s695_s2, %s695_s2  ;;  %p4157_p4 = scmp.lt.s32.totalorder %s4155_s23, %s4148_s21 }
  0xa3   : > { %p4151_p13 = pnand %p4149_p12, %p4657_p7 }
  0xa4   : > { %3681 = dma.hbm_to_vmem [thread:$0]  (!%p4649_p6), %s5373_s0, 256, %s667_s24, [#allocation12], %s4458_s6, %s4458_s6, %s4459_s7  }
  0xa5   : > { %p4152_p1 = pneg %p4151_p13  ;;  %p4158_p0 = por %p4157_p4, %p4156_p3 }
  0xa7   : > { %p4159_p2 = pnand %p4158_p0, %p4152_p1 }
  0xa9   : > { %4162 = shalt.err (!%p4159_p2)
}
  0xaa   : > { %s5374_s11 = sld [smem:[#allocation56_spill]]  ;;  %s4174_s22 = scalar_lea.vmem %s719_s1, 16 }
  0xab   : > { %p4175_p5 = scmp.ne.s32.totalorder %s719_s1, %s4174_s22  ;;  %s4181_s0 = scalar_lea.vmem %s719_s1, 32 }
  0xac   : > { %p4182_p10 = scmp.lt.s32.totalorder %s719_s1, %s719_s1  ;;  %p4183_p11 = scmp.lt.s32.totalorder %s4181_s0, %s4174_s22 }
  0xad   : > { %p4177_p8 = pnand %p4175_p5, %p4657_p7 }
  0xae   : > { %p4184_p12 = por %p4183_p11, %p4182_p10 }
  0xaf   : > { %p4178_p9 = pneg %p4177_p8 }
  0xb0   : > { %3687 = dma.hbm_to_vmem [thread:$0]  (!%p4649_p6), %s5374_s11, 16, %s695_s2, [#allocation15]  }
  0xb1   : > { %p4185_p13 = pnand %p4184_p12, %p4178_p9 }
  0xb3   : > { %4188 = shalt.err (!%p4185_p13)
}
  0xb4   : > { %s5375_s13 = sld [smem:[#allocation58_spill]]  ;;  %s4471_s30 = smov [#allocation22]  }
  0xb5   : > { %s742_s2 = sshll.u32 %s4471_s30, 4  ;;  %s4472_s21 = smov [#allocation25]   ;;  %s743_s2 = int_to_ptr.vmem [resolvable:$true] %s742_s2 }
  0xb6   : > { %s766_s24 = sshll.u32 %s4472_s21, 4  ;;  %s4200_s8 = scalar_lea.vmem %s743_s2, 16  ;;  %s767_s24 = int_to_ptr.vmem [resolvable:$true] %s766_s24 }
  0xb7   : > { %p4201_p1 = scmp.ne.s32.totalorder %s743_s2, %s4200_s8  ;;  %s4207_s22 = scalar_lea.vmem %s743_s2, 32 }
  0xb8   : > { %p4208_p0 = scmp.lt.s32.totalorder %s743_s2, %s743_s2  ;;  %p4209_p2 = scmp.lt.s32.totalorder %s4207_s22, %s4200_s8 }
  0xb9   : > { %p4203_p3 = pnand %p4201_p1, %p4657_p7 }
  0xba   : > { %3693 = dma.hbm_to_vmem [thread:$0]  (!%p4649_p6), %s5375_s13, 16, %s719_s1, [#allocation18]  }
  0xbb   : > { %p4204_p4 = pneg %p4203_p3  ;;  %p4210_p5 = por %p4209_p2, %p4208_p0 }
  0xbd   : > { %p4211_p8 = pnand %p4210_p5, %p4204_p4 }
  0xbf   : > { %4214 = shalt.err (!%p4211_p8)
}
  0xc0   : > { %s5376_s15 = sld [smem:[#allocation60_spill]]  ;;  %s4226_s23 = scalar_lea.vmem %s767_s24, 16 }
  0xc1   : > { %p4227_p9 = scmp.ne.s32.totalorder %s767_s24, %s4226_s23  ;;  %s4233_s10 = scalar_lea.vmem %s767_s24, 32 }
  0xc2   : > { %p4234_p12 = scmp.lt.s32.totalorder %s767_s24, %s767_s24  ;;  %p4235_p13 = scmp.lt.s32.totalorder %s4233_s10, %s4226_s23 }
  0xc3   : > { %p4229_p10 = pnand %p4227_p9, %p4657_p7 }
  0xc4   : > { %p4236_p1 = por %p4235_p13, %p4234_p12 }
  0xc5   : > { %p4230_p11 = pneg %p4229_p10 }
  0xc6   : > { %3699 = dma.hbm_to_vmem [thread:$0]  (!%p4649_p6), %s5376_s15, 16, %s743_s2, [#allocation21]  }
  0xc7   : > { %p4237_p3 = pnand %p4236_p1, %p4230_p11 }
  0xc9   : > { %4240 = shalt.err (!%p4237_p3)
}
  0xca   : > { %3705 = dma.hbm_to_vmem [thread:$0]  (!%p4649_p6), %s5322_s17, 16, %s767_s24, [#allocation24]  }
  0xcb   : > { %s4473_s8 = smov [#allocation28]   ;;  %s4474_s22 = smov [#allocation29]  }
  0xcc   : > { %s789_s2 = sshll.u32 %s4473_s8, 4  ;;  %s802_s1 = sshll.u32 %s4474_s22, 4  ;;  %s790_s2 = int_to_ptr.vmem [resolvable:$true] %s789_s2  ;;  %s803_s1 = int_to_ptr.vmem [resolvable:$true] %s802_s1 }
  0xcd   : > { %s4252_s0 = scalar_lea.vmem %s790_s2, 48  ;;  %s4259_s23 = scalar_lea.vmem %s790_s2, 64 }
  0xce   : > { %p4253_p4 = scmp.ne.s32.totalorder %s790_s2, %s4252_s0  ;;  %p4260_p5 = scmp.lt.s32.totalorder %s790_s2, %s790_s2 }
  0xcf   : > { %p4261_p8 = scmp.lt.s32.totalorder %s4259_s23, %s4252_s0 }
  0xd0   : > { %p4255_p0 = pnand %p4253_p4, %p4657_p7 }
  0xd1   : > { %p4262_p9 = por %p4261_p8, %p4260_p5 }
  0xd2   : > { %p4256_p2 = pneg %p4255_p0 }
  0xd4   : > { %p4263_p10 = pnand %p4262_p9, %p4256_p2 }
  0xd6   : > { %4266 = shalt.err (!%p4263_p10)
}
  0xd7   : > { %s5377_s24 = smov 16   ;;  %s4278_s21 = scalar_lea.vmem %s803_s1, 256 }
  0xd8   : > { %3711 = dma.hbm_to_vmem [thread:$0]  (!%p4649_p6), %s5324_s19, 48, %s790_s2, [#allocation27], %s5377_s24, %s5377_s24, %s4466_s25  }
  0xd9   : > { %p4279_p11 = scmp.ne.s32.totalorder %s803_s1, %s4278_s21  ;;  %p4286_p1 = scmp.lt.s32.totalorder %s803_s1, %s803_s1 }
  0xda   : > { %p4287_p3 = scmp.lt.s32.totalorder %s4278_s21, %s4278_s21 }
  0xdb   : > { %p4281_p12 = pnand %p4279_p11, %p4657_p7 }
  0xdc   : > { %p4288_p4 = por %p4287_p3, %p4286_p1 }
  0xdd   : > { %p4282_p13 = pneg %p4281_p12 }
  0xdf   : > { %p4289_p0 = pnand %p4288_p4, %p4282_p13 }
  0xe1   : > { %4292 = shalt.err (!%p4289_p0)
}
  0xe2   : > { %3714 = dma.hbm_to_vmem [thread:$0]  (!%p4649_p6), %s5325_s20, 256, %s803_s1, [#allocation30], %s4458_s6, %s4458_s6, %s4459_s7  }
  0xe3   : > { %s3206_s3 = sadd.s32 4294967294, %s4453_s28   ;;  %s4808_s4 = sadd.s32 1, %s4453_s28  }
  0xe4   : > { %s81_s25 = ssub.s32 %s4453_s28, %s4808_s4  ;;  %s84_s2 = sadd.s32 1, %s4449_s27 }
  0xe5   : > { %p82_p7 = scmp.eq.s32.totalorder %s81_s25, 0  ;;  %p91_p2 = scmp.ne.s32.totalorder %s4449_s27, %s4445_s26 }
  0xe6   : > { %p92_p5 = scmp.eq.s32.totalorder %s4453_s28, 0  ;;  %p97_p8 = scmp.ne.s32.totalorder %s4445_s26, %s4441_s5 }
  0xe7   : > { %s4819_s0 = scalar_select %p82_p7, %s4449_s27, %s84_s2  }
  0xe8   : > { %p4821_p9 = por %p92_p5, %p91_p2  ;;  %p5379_p10 = scmp.eq.s32.totalorder %s4635_s29, 0 }
  0xe9   : > { %p593_p11 = scmp.eq.s32.totalorder %s4635_s29, 1  ;;  %p599_p12 = scmp.eq.s32.totalorder %s3206_s3, 1 }
  0xea   : > { %p4827_p6 = por %p5379_p10, %p97_p8  ;;  %p3742_p13 = scmp.lt.s32.totalorder %s4453_s28, 2 }
  0xeb   : > { %s4834_s7 = sand.u32 1, %s4449_s27   ;;  %p4836_p1 = por %p593_p11, %p91_p2 }
  0xec   : > { %p4840_p3 = por %p599_p12, %p97_p8  ;;  %s3225_s10 = sshll.u32 %s4834_s7, 3 }
  0xed   : > { %s5381_s1 = scalar_select %p4836_p1, 1, 0 }
  0xee   : > { %s5382_s24 = scalar_select %p4840_p3, 1, 0 }
  0xef   : > { %s3226_s30 = sshll.u32 %s4453_s28, 7  ;;  %s5383_s22 = sld [smem:[#allocation46_spill]] }
  0xf0   : > { %s836_s25 = scalar_lea.vmem [#allocation2], %s3225_s10  ;;  %p4855_p4 = pnand %p3742_p13, %p4821_p9 }
  0xf1   : > { %s843_s2 = sshll.u32 %s836_s25, 4  ;;  %s833_s13 = scalar_lea.sflag [#allocation3], %s4834_s7  ;;  %s4851_s2 = int_to_ptr.vmem [resolvable:$true] %s843_s2 }
  0xf2   : > { %p4295_p7 = pneg %p4855_p4 }
  0xf5   : > { %s4849_s3 = scalar_lea.hbm %s5383_s22, %s3226_s30  ;;  %s4298_s23 = scalar_lea.hbm %s5383_s22, 256 }
  0xf6   : > { %s4293_s21 = scalar_lea.hbm %s4849_s3, 128  ;;  %p4299_p8 = scmp.lt.s32.totalorder %s4849_s3, %s5383_s22 }
  0xf7   : > { %p4294_p0 = scmp.ne.s32.totalorder %s4849_s3, %s4293_s21  ;;  %p4300_p9 = scmp.lt.s32.totalorder %s4298_s23, %s4293_s21 }
  0xf9   : > { %p4296_p2 = pnand %p4295_p7, %p4294_p0  ;;  %p4301_p10 = por %p4300_p9, %p4299_p8 }
  0xfb   : > { %p4297_p5 = pneg %p4296_p2 }
  0xfd   : > { %p4302_p11 = pnand %p4301_p10, %p4297_p5 }
  0xff   : > { %4305 = shalt.err (!%p4302_p11)
}
 0x100   : > { %s4306_s12 = scalar_lea.vmem %s4851_s2, 128  ;;  %s4475_s10 = smov [#allocation2]  }
 0x101   : > { %p4307_p12 = scmp.ne.s32.totalorder %s4851_s2, %s4306_s12  ;;  %s4311_s30 = sshll.u32 %s4475_s10, 4  ;;  %s4312_s30 = int_to_ptr.vmem [resolvable:$false] %s4311_s30 }
 0x102   : > { %s4313_s11 = scalar_lea.vmem %s4312_s30, 256  ;;  %p4314_p2 = scmp.lt.s32.totalorder %s4851_s2, %s4312_s30 }
 0x103   : > { %p4309_p13 = pnand %p4307_p12, %p4295_p7  ;;  %p4315_p3 = scmp.lt.s32.totalorder %s4313_s11, %s4306_s12 }
 0x105   : > { %p4310_p0 = pneg %p4309_p13  ;;  %p4316_p1 = por %p4315_p3, %p4314_p2 }
 0x107   : > { %p4317_p8 = pnand %p4316_p1, %p4310_p0 }
 0x109   : > { %4320 = shalt.err (!%p4317_p8)
}
 0x10a   : > { %3718 = dma.hbm_to_vmem [thread:$0]  (!%p4855_p4), %s4849_s3, 128, %s4851_s2, %s833_s13  }
 0x10b   : > { %s5385_s21 = sshll.u32 %s4834_s7, 4  ;;  %s3319_s25 = sshll.u32 %s4453_s28, 8 }
 0x10c   : > { %s862_s23 = scalar_lea.vmem [#allocation5], %s5385_s21  ;;  %s5386_s12 = sld [smem:[#allocation48_spill]] }
 0x10d   : > { %s869_s8 = sshll.u32 %s862_s23, 4  ;;  %s5387_s14 = sand.u32 1, %s4453_s28   ;;  %s4888_s8 = int_to_ptr.vmem [resolvable:$true] %s869_s8 }
 0x10e   : > { %s4898_s15 = scalar_lea.sflag [#allocation6], %s5387_s14 }
 0x112   : > { %s4894_s30 = scalar_lea.hbm %s5386_s12, %s3319_s25  ;;  %s4326_s3 = scalar_lea.hbm %s5386_s12, 512 }
 0x113   : > { %s4321_s16 = scalar_lea.hbm %s4894_s30, 256  ;;  %p4327_p9 = scmp.lt.s32.totalorder %s4894_s30, %s5386_s12 }
 0x114   : > { %p4322_p1 = scmp.ne.s32.totalorder %s4894_s30, %s4321_s16  ;;  %p4328_p10 = scmp.lt.s32.totalorder %s4326_s3, %s4321_s16 }
 0x116   : > { %p4324_p3 = pnand %p4322_p1, %p4295_p7  ;;  %p4329_p11 = por %p4328_p10, %p4327_p9 }
 0x118   : > { %p4325_p5 = pneg %p4324_p3 }
 0x11a   : > { %p4330_p12 = pnand %p4329_p11, %p4325_p5 }
 0x11c   : > { %4333 = shalt.err (!%p4330_p12)
}
 0x11d   : > { %s4334_s14 = scalar_lea.vmem %s4888_s8, 256  ;;  %s4476_s23 = smov [#allocation5]  }
 0x11e   : > { %p4335_p13 = scmp.ne.s32.totalorder %s4888_s8, %s4334_s14  ;;  %s4339_s25 = sshll.u32 %s4476_s23, 4  ;;  %s4340_s25 = int_to_ptr.vmem [resolvable:$false] %s4339_s25 }
 0x11f   : > { %s4341_s10 = scalar_lea.vmem %s4340_s25, 512  ;;  %p4342_p8 = scmp.lt.s32.totalorder %s4888_s8, %s4340_s25 }
 0x120   : > { %p4337_p0 = pnand %p4335_p13, %p4295_p7  ;;  %p4343_p1 = scmp.lt.s32.totalorder %s4341_s10, %s4334_s14 }
 0x122   : > { %p4338_p2 = pneg %p4337_p0  ;;  %p4344_p3 = por %p4343_p1, %p4342_p8 }
 0x124   : > { %p4345_p9 = pnand %p4344_p3, %p4338_p2 }
 0x126   : > { %4348 = shalt.err (!%p4345_p9)
}
 0x127   : > { %s4477_s16 = smov 128   ;;  %s4478_s11 = smov 8  }
 0x128   : > { %3721 = dma.hbm_to_vmem [thread:$0]  (!%p4855_p4), %s4894_s30, 256, %s4888_s8, %s4898_s15, %s4477_s16, %s4477_s16, %s4478_s11  }
 0x129   : > { %s5388_s13 = sld [smem:[#allocation44_spill]] }
 0x12f   : > { %p5389_p7 = scmp.ne.s32.totalorder %s5388_s13, 0 }
 0x130   : > { %s4926_s7 = sand.u32 (!%p5389_p7), 1, %s4445_s26  }
 0x131   : > { %881 = sbr.rel (%p5389_p7) target bundleno = 6585 (0x19b9), region = 116  ;;  %s3231_s3 = sshll.u32 (!%p5389_p7), %s4926_s7, 3 }
 0x132   : > { %s884_s2 = scalar_lea.sflag (!%p5389_p7), [#allocation3], %s4926_s7  ;;  %s4932_s21 = scalar_lea.vmem (!%p5389_p7), [#allocation2], %s3231_s3 }
 0x136   : > { %4392 = dma.done.wait (%p4827_p6), %s884_s2, 128  }
 0x137   : > { %4394 = vsyncadd (%p4827_p6), %s884_s2, 4294967168  ;;  %s892_s9 = sand.u32 1, %s4635_s29   ;;  %s3232_s15 = sshll.u32 %s4926_s7, 4 }
 0x138   : > { %s893_s8 = scalar_lea.sflag [#allocation6], %s892_s9  ;;  %s4940_s30 = scalar_lea.vmem [#allocation5], %s3232_s15 }
 0x139   : > { %4396 = dma.done.wait (%p4827_p6), %s893_s8, 256  }
 0x13a   : > { %4398 = vsyncadd (%p4827_p6), %s893_s8, 4294967040  ;;  %p5390_p4 = scmp.eq.s32.totalorder %s4635_s29, 0 }
 0x13c   : > { %4400 = dma.done.wait (%p5390_p4), [#allocation6], 256   ;;  %p5391_p5 = pmov %p5390_p4 }
 0x13d   : > { %p5392_p10 = pmov %p5390_p4 }
 0x13e   : > { %4402 = vsyncadd (%p5391_p5), [#allocation6], 4294967040 }
 0x13f   : > { %4404 = dma.done.wait (%p5392_p10), [#allocation9], 272   ;;  %p5393_p11 = pmov %p5390_p4 }
 0x140   : > { %p5394_p12 = pmov %p5390_p4 }
 0x141   : > { %4406 = vsyncadd (%p5393_p11), [#allocation9], 4294967024 }
 0x142   : > { %4408 = dma.done.wait (%p5394_p12), [#allocation12], 272   ;;  %p5395_p13 = pmov %p5390_p4 }
 0x143   : > { %p5396_p6 = pmov %p5390_p4 }
 0x144   : > { %4410 = vsyncadd (%p5395_p13), [#allocation12], 4294967024 }
 0x145   : > { %4412 = dma.done.wait (%p5396_p6), [#allocation15], 32   ;;  %p5397_p0 = pmov %p5390_p4 }
 0x147   : > { %4414 = vsyncadd (%p5397_p0), [#allocation15], 4294967264  ;;  %p5398_p2 = pmov %p5397_p0 }
 0x148   : > { %p5399_p8 = pmov %p5397_p0 }
 0x149   : > { %4416 = dma.done.wait (%p5398_p2), [#allocation18], 272  }
 0x14a   : > { %4418 = vsyncadd (%p5399_p8), [#allocation18], 4294967024  ;;  %p5400_p1 = pmov %p5397_p0 }
 0x14b   : > { %p5401_p3 = pmov %p5397_p0 }
 0x14c   : > { %4420 = dma.done.wait (%p5400_p1), [#allocation21], 272  }
 0x14d   : > { %4422 = vsyncadd (%p5401_p3), [#allocation21], 4294967024  ;;  %p5402_p9 = pmov %p5397_p0 }
 0x14e   : > { %p5403_p7 = pmov %p5397_p0 }
 0x14f   : > { %4424 = dma.done.wait (%p5402_p9), [#allocation24], 272  }
 0x150   : > { %4426 = vsyncadd (%p5403_p7), [#allocation24], 4294967024  ;;  %p5404_p4 = pmov %p5397_p0 }
 0x151   : > { %p5405_p5 = pmov %p5397_p0 }
 0x152   : > { %4428 = dma.done.wait (%p5404_p4), [#allocation27], 96  }
 0x153   : > { %4430 = vsyncadd (%p5405_p5), [#allocation27], 4294967200  ;;  %p5406_p10 = pmov %p5397_p0 }
 0x154   : > { %p5407_p11 = pmov %p5397_p0 }
 0x155   : > { %4432 = dma.done.wait (%p5406_p10), [#allocation30], 256  }
 0x156   : > { %4434 = vsyncadd (%p5407_p11), [#allocation30], 4294967040  ;;  %p1039_p12 = scmp.lt.s32.totalorder %s4635_s29, 1  ;;  %v4479_v0 = vmov 0.0   ;;  %vm4480_vm0 = vmmov 0   ;;  %s5408_s10 = sld [smem:[#allocation45_spill]] }
 0x157   : > { %3392 = vmatprep.subr.bf16.mxu1 %v4479_v0  ;;  %3396 = vmatprep.mubr.msk.bf16.mxu1 %vm4480_vm0, %v4479_v0  ;;  %v3823_v1 = vld [vmem:[#allocation7 + $0x8] sm:$0xff]   ;;  %v3824_v2 = vld [vmem:[#allocation7] sm:$0xff]   ;;  %v4999_v4 = vld [vmem:[%s4932_s21] sm:$0xff]  ;;  %vm1080_vm1 = vcmask 261120   ;;  %s4481_s11 = smov 120   ;;  %s4482_s13 = smov 96  }
 0x158   : > { %s4987_s6 = scalar_select %p1039_p12, %s4635_s29, 1  ;;  %3408 = vmatprep.subr.bf16.mxu0 %v4479_v0  ;;  %3410 = vmatprep.mubr.msk.bf16.mxu0 %vm4480_vm0, %v4479_v0  ;;  %v3253_v7 = vld [vmem:[#allocation8] ss:$0 sm:$0xff]  ;;  %v3825_v14 = vld [vmem:[#allocation10 + $0x8] sm:$0xff]   ;;  %v3826_v15 = vld [vmem:[#allocation10] sm:$0xff]   ;;  %vm1195_vm2 = vcmask 64512  }
 0x159   : > { %3393 = vmatpush3.bf16.msra.mxu1 %v3823_v1  ;;  %s4483_s2 = smov 88   ;;  %v3257_v32 = vld [vmem:[#allocation11] ss:$0 sm:$0xff]  ;;  %vm1258_vm3 = vcmask 1043456   ;;  %s4484_s21 = smov 80   ;;  %vm2120_vm4 = vcmask 130048  }
 0x15a   : > { %s3250_s14 = sshll.u32 %s4987_s6, 3  ;;  %3394 = vmatprep.subr.bf16.mxu1 %v4479_v0  ;;  %s4485_s9 = smov 112   ;;  %v1303_v60 = vld [vmem:[#allocation13] sm:$0xf]  ;;  %v1416_v62 = vld [vmem:[#allocation13 + $0x4] sm:$0xf] }
 0x15b   : > { %v1467_v61 = vsel %vm1258_vm3, %v1303_v60, 0  ;;  %v1421_v63 = vsel %vm1258_vm3, %v1416_v62, 0  ;;  %s4486_s15 = smov 104   ;;  %s4487_s8 = smov 72   ;;  %vm2846_vm5 = vcmask 523264  }
 0x15c   : > { %s1042_s16 = scalar_lea.vmem %s5408_s10, %s3250_s14  ;;  %s3320_s14 = sshll.u32 %s4987_s6, 4 }
 0x15d   : > { %v4996_v3 = vld [vmem:[%s1042_s16] sm:$0xff]  ;;  %3395 = vmatpush3.bf16.msra.mxu1 %v3824_v2  ;;  %s5409_s10 = sld [smem:[#allocation47_spill]]  ;;  %p5415_p6 = scmp.ne.s32.totalorder %s5381_s1, 0 }
 0x15e   : > { %v1055_v5 = vadd.f32 %v4999_v4, %v4996_v3  ;;  %3400 = vmatprep.subr.bf16.mxu1 %v4479_v0  ;;  %v1124_v16 = vpack.c.bf16 %v4996_v3, %v4996_v3 }
 0x160   : > { %v1056_v6 = vpack.c.bf16 %v1055_v5, %v1055_v5 }
 0x162   : > { %3397 = vmatmul.mubr.msk.bf16.vlgmr.msra.gmra.mxu1 %vm1080_vm1, %v1056_v6 }
 0x163   : > { %3404 = vmatprep.mubr.msk.bf16.mxu1 %vm4480_vm0, %v4479_v0  ;;  %3401 = vmatpush3.bf16.msra.mxu1 %v3825_v14  ;;  %s1047_s16 = scalar_lea.vmem %s5409_s10, %s3320_s14  ;;  %s1038_s14 = scalar_lea.vmem [#allocation31], %s3231_s3 }
 0x164   : > { %3402 = vmatprep.subr.bf16.mxu1 %v4479_v0  ;;  %s2937_s23 = sshll.u32 %s1038_s14, 4  ;;  %s2938_s23 = int_to_ptr.vmem [resolvable:$true] %s2937_s23 }
 0x167   : > { %3403 = vmatpush3.bf16.msra.mxu1 %v3826_v15 }
 0x168   : > { %3414 = vmatprep.subr.bf16.mxu1 %v4479_v0 }
 0x16a   : > { %3405 = vmatmul.mubr.msk.bf16.vlgmr.msra.gmra.mxu1 %vm1080_vm1, %v1124_v16 }
 0x16b   : > { %3416 = vmatprep.mubr.msk.bf16.mxu1 %vm4480_vm0, %v4479_v0 }
 0x222   : > { %v1118_v8 = vpop.f32.mrf.mxu1 }
 0x223   : > { %v1119_v9 = vadd.f32 %v3253_v7, %v1118_v8 }
 0x224   : > { %v3398_v10 = vpop.f32.mrf.mxu1 }
 0x225   : > { %v5008_v11 = vpack.c.bf16 %v1119_v9, %v1119_v9 }
 0x226   : > { %v1121_v12 = vpop.f32.mrf.mxu1 }
 0x227   : > { %1304 = vrot.lane.b32.xlu1 %v5008_v11, %s4481_s11  ;;  %1193 = vrot.lane.b32.xlu0 %v5008_v11, %s4482_s13  ;;  %s2924_s13 = scalar_lea.sflag [#allocation4], %s4926_s7 }
 0x228   : > { %v3399_v13 = vpop.f32.mrf.mxu1 }
 0x22a   : > { %v1185_v33 = vpop.f32.mrf.mxu1 }
 0x22b   : > { %1306 = vrot.lane.b32.xlu0 %v5008_v11, %s4483_s2  ;;  %v1186_v34 = vadd.f32 %v3257_v32, %v1185_v33  ;;  %s5410_s2 = sld [smem:[#allocation55_spill]] }
 0x22c   : > { %v3406_v35 = vpop.f32.mrf.mxu1 }
 0x22d   : > { %v5034_v36 = vpack.c.bf16 %v1186_v34, %v1186_v34 }
 0x22e   : > { %v1188_v37 = vpop.f32.mrf.mxu1 }
 0x22f   : > { %v1260_v38 = vsel %vm1258_vm3, %v5034_v36, 0 }
 0x230   : > { %v3407_v39 = vpop.f32.mrf.mxu1  ;;  %3415 = vmatpush3.bf16.msra.mxu1 %v1260_v38 }
 0x231   : > { %3426 = vmatprep.subr.bf16.mxu1 %v4479_v0 }
 0x299   : > { %v1194_v17 = vpop.permute.xlu0 %1193  ;;  %v1305_v21 = vpop.permute.xlu1 %1304 }
 0x29a   : > { %v1200_v18 = vsel %vm1195_vm2, %v1194_v17, 0 }
 0x29b   : > { %3409 = vmatpush3.bf16.xpose.msra.mxu0 %v1200_v18 }
 0x29c   : > { %3420 = vmatprep.subr.bf16.mxu0 %v4479_v0 }
 0x29d   : > { %v1307_v19 = vpop.permute.xlu0 %1306 }
 0x29e   : > { %v1312_v20 = vsel %vm1195_vm2, %v1307_v19, 0 }
 0x2a2   : > { %3411 = vmatmul.mubr.msk.bf16.vlgmr.msra.gmra.mxu0 %vm1195_vm2, %v5008_v11 }
 0x2a3   : > { %3421 = vmatpush3.bf16.xpose.msra.mxu0 %v1312_v20  ;;  %3422 = vmatprep.mubr.msk.bf16.mxu0 %vm4480_vm0, %v4479_v0 }
 0x2a4   : > { %3432 = vmatprep.subr.bf16.mxu0 %v4479_v0 }
 0x2aa   : > { %3423 = vmatmul.mubr.msk.bf16.vlgmr.msra.gmra.mxu0 %vm1195_vm2, %v1305_v21 }
 0x2ab   : > { %3434 = vmatprep.mubr.msk.bf16.mxu0 %vm4480_vm0, %v4479_v0  ;;  %3433 = vmatpush3.bf16.msra.mxu0 %v1421_v63  ;;  %v1779_v63 = vld [vmem:[#allocation13 + $0xc] sm:$0xf] }
 0x2ac   : > { %3444 = vmatprep.subr.bf16.mxu0 %v4479_v0 }
 0x362   : > { %v1236_v22 = vpop.f32.mrf.mxu0 }
 0x363   : > { %v1242_v23 = vsel %vm1195_vm2, %v1236_v22, -inf }
 0x364   : > { %1243 = vmax.xlane.f32.xlu1 %v1242_v23  ;;  %v3412_v24 = vpop.f32.mrf.mxu0 }
 0x366   : > { %v1239_v25 = vpop.f32.mrf.mxu0 }
 0x368   : > { %v3413_v26 = vpop.f32.mrf.mxu0 }
 0x36a   : > { %v1348_v27 = vpop.f32.mrf.mxu0 }
 0x36b   : > { %v1354_v28 = vsel %vm1195_vm2, %v1348_v27, -inf }
 0x36c   : > { %1355 = vmax.xlane.f32.xlu0 %v1354_v28  ;;  %v3424_v29 = vpop.f32.mrf.mxu0 }
 0x36e   : > { %v1351_v30 = vpop.f32.mrf.mxu0 }
 0x370   : > { %v3425_v31 = vpop.f32.mrf.mxu0 }
 0x3ed   : > { %v1244_v40 = vpop.xlane.xlu1 %1243 }
 0x3ee   : > { %v1245_v41 = vsub.f32 %v1236_v22, %v1244_v40 }
 0x3f0   : > { %v1246_v42 = vmul.f32 1.442695, %v1245_v41 }
 0x3f2   : > { %3839 = vpow2.f32 %v1246_v42 }
 0x3f5   : > { %v1356_v43 = vpop.xlane.xlu0 %1355 }
 0x3f6   : > { %v1357_v44 = vsub.f32 %v1348_v27, %v1356_v43 }
 0x3f8   : > { %v1358_v45 = vmul.f32 1.442695, %v1357_v44 }
 0x3fa   : > { %3841 = vpow2.f32 %v1358_v45 }
 0x3ff   : > { %v3840_v46 = vpop.eup %3839 }
 0x400   : > { %v1248_v47 = vsel %vm1195_vm2, %v3840_v46, 0.0 }
 0x401   : > { %1249 = vadd.xlane.f32.xlu0 %v1248_v47 }
 0x407   : > { %v3842_v48 = vpop.eup %3841 }
 0x408   : > { %v1360_v49 = vsel %vm1195_vm2, %v3842_v48, 0.0 }
 0x409   : > { %1361 = vadd.xlane.f32.xlu1 %v1360_v49 }
 0x417   : > { %1367 = vrot.lane.b32.xlu0 %v5034_v36, %s4481_s11 }
 0x41a   : > { %1511 = vrot.lane.b32.xlu1 %v5008_v11, %s4484_s21  ;;  %s5412_s21 = sld [smem:[#allocation62_spill]] }
 0x41e   : > { %1509 = vrot.lane.b32.xlu1 %v5008_v11, %s4485_s9 }
 0x48a   : > { %v1250_v50 = vpop.xlane.xlu0 %1249 }
 0x48b   : > { %3843 = vrcp.f32 %v1250_v50 }
 0x48e   : > { %v1368_v53 = vpop.permute.xlu0 %1367 }
 0x48f   : > { %v1373_v55 = vsel %vm1258_vm3, %v1368_v53, 0 }
 0x492   : > { %v1362_v51 = vpop.xlane.xlu1 %1361 }
 0x493   : > { %3845 = vrcp.f32 %v1362_v51 }
 0x496   : > { %v1512_v8 = vpop.permute.xlu1 %1511 }
 0x497   : > { %v1517_v13 = vsel %vm1195_vm2, %v1512_v8, 0 }
 0x498   : > { %v3844_v52 = vpop.eup %3843 }
 0x499   : > { %v1252_v54 = vmul.f32 %v3844_v52, %v3840_v46 }
 0x49a   : > { %v1510_v16 = vpop.permute.xlu1 %1509 }
 0x49b   : > { %v1253_v56 = vpack.c.bf16 %v1252_v54, %v1252_v54 }
 0x49d   : > { %3417 = vmatmul.mubr.msk.bf16.vlgmr.msra.gmra.mxu1 %vm1195_vm2, %v1253_v56 }
 0x49e   : > { %3427 = vmatpush3.bf16.msra.mxu1 %v1373_v55  ;;  %3428 = vmatprep.mubr.msk.bf16.mxu1 %vm4480_vm0, %v4479_v0 }
 0x49f   : > { %3438 = vmatprep.subr.bf16.mxu1 %v4479_v0 }
 0x4a0   : > { %v3846_v57 = vpop.eup %3845 }
 0x4a1   : > { %v1364_v58 = vmul.f32 %v3846_v57, %v3842_v48 }
 0x4a3   : > { %v1365_v59 = vpack.c.bf16 %v1364_v58, %v1364_v58 }
 0x4a5   : > { %3429 = vmatmul.mubr.msk.bf16.vlgmr.msra.gmra.mxu1 %vm1195_vm2, %v1365_v59 }
 0x4a6   : > { %3440 = vmatprep.mubr.msk.bf16.mxu1 %vm4480_vm0, %v4479_v0  ;;  %3439 = vmatpush3.bf16.msra.mxu1 %v1467_v61 }
 0x4a7   : > { %3450 = vmatprep.subr.bf16.mxu1 %v4479_v0 }
 0x55d   : > { %v1296_v1 = vpop.f32.mrf.mxu1 }
 0x55e   : > { %v1302_v2 = vpack.c.bf16 %v1296_v1, %v1296_v1 }
 0x55f   : > { %v3418_v5 = vpop.f32.mrf.mxu1 }
 0x560   : > { %3441 = vmatmul.mubr.msk.bf16.vlgmr.msra.gmra.mxu1 %vm1195_vm2, %v1302_v2  ;;  %v1784_v2 = vsel %vm1258_vm3, %v1779_v63, 0  ;;  %v3832_v63 = vld [vmem:[#allocation20] sm:$0xff]  }
 0x561   : > { %v1299_v6 = vpop.f32.mrf.mxu1  ;;  %3452 = vmatprep.mubr.msk.bf16.mxu1 %vm4480_vm0, %v4479_v0 }
 0x563   : > { %v3419_v7 = vpop.f32.mrf.mxu1 }
 0x565   : > { %v1409_v9 = vpop.f32.mrf.mxu1 }
 0x566   : > { %v1415_v10 = vpack.c.bf16 %v1409_v9, %v1409_v9 }
 0x567   : > { %v3430_v12 = vpop.f32.mrf.mxu1 }
 0x568   : > { %3435 = vmatmul.mubr.msk.bf16.vlgmr.msra.gmra.mxu0 %vm1195_vm2, %v1415_v10 }
 0x569   : > { %3445 = vmatpush3.bf16.xpose.msra.mxu0 %v1517_v13  ;;  %v1412_v14 = vpop.f32.mrf.mxu1  ;;  %3446 = vmatprep.mubr.msk.bf16.mxu0 %vm4480_vm0, %v4479_v0 }
 0x56a   : > { %3456 = vmatprep.subr.bf16.mxu0 %v4479_v0 }
 0x56b   : > { %v3431_v15 = vpop.f32.mrf.mxu1 }
 0x570   : > { %3447 = vmatmul.mubr.msk.bf16.vlgmr.msra.gmra.mxu0 %vm1195_vm2, %v1510_v16 }
 0x571   : > { %3458 = vmatprep.mubr.msk.bf16.mxu0 %vm4480_vm0, %v4479_v0 }
 0x620   : > { %v1503_v17 = vpop.f32.mrf.mxu1 }
 0x622   : > { %v3442_v18 = vpop.f32.mrf.mxu1 }
 0x624   : > { %v1506_v19 = vpop.f32.mrf.mxu1 }
 0x626   : > { %v3443_v20 = vpop.f32.mrf.mxu1 }
 0x627   : > { %v3273_v20 = vld [vmem:[#allocation14] ss:$0 sm:$0xff] }
 0x628   : > { %v1457_v21 = vpop.f32.mrf.mxu0 }
 0x629   : > { %v5069_v22 = vadd.f32 %v1503_v17, %v1457_v21 }
 0x62a   : > { %v3436_v23 = vpop.f32.mrf.mxu0 }
 0x62c   : > { %v1460_v24 = vpop.f32.mrf.mxu0 }
 0x62e   : > { %v3437_v25 = vpop.f32.mrf.mxu0 }
 0x630   : > { %v1553_v26 = vpop.f32.mrf.mxu0 }
 0x631   : > { %v1559_v27 = vsel %vm1195_vm2, %v1553_v26, -inf }
 0x632   : > { %1560 = vmax.xlane.f32.xlu0 %v1559_v27  ;;  %v3448_v28 = vpop.f32.mrf.mxu0 }
 0x634   : > { %v1556_v29 = vpop.f32.mrf.mxu0 }
 0x636   : > { %v3449_v30 = vpop.f32.mrf.mxu0 }
 0x648   : > { %1571 = vrot.lane.b32.xlu0 %v5034_v36, %s4485_s9 }
 0x64c   : > { %1668 = vrot.lane.b32.xlu0 %v5008_v11, %s4486_s15 }
 0x6bb   : > { %v1561_v31 = vpop.xlane.xlu0 %1560 }
 0x6bc   : > { %v1562_v32 = vsub.f32 %v1553_v26, %v1561_v31 }
 0x6be   : > { %v1563_v33 = vmul.f32 1.442695, %v1562_v32 }
 0x6bf   : > { %v1572_v34 = vpop.permute.xlu0 %1571 }
 0x6c0   : > { %3847 = vpow2.f32 %v1563_v33  ;;  %v1577_v35 = vsel %vm1258_vm3, %v1572_v34, 0  ;;  %v3827_v33 = vld [vmem:[#allocation17 + $0x8] sm:$0xff]   ;;  %v1051_v34 = vld [vmem:[%s1047_s16] sm:$0xff] }
 0x6c1   : > { %3451 = vmatpush3.bf16.msra.mxu1 %v1577_v35  ;;  %v1052_v35 = vld [vmem:[%s1047_s16 + $0x8] sm:$0xff]  ;;  %s5414_s16 = sld [smem:[#allocation65_spill]] }
 0x6c2   : > { %3462 = vmatprep.subr.bf16.mxu1 %v4479_v0 }
 0x6c3   : > { %v1669_v45 = vpop.permute.xlu0 %1668 }
 0x6cd   : > { %v3848_v37 = vpop.eup %3847 }
 0x6ce   : > { %v1565_v38 = vsel %vm1195_vm2, %v3848_v37, 0.0 }
 0x6cf   : > { %1566 = vadd.xlane.f32.xlu1 %v1565_v38  ;;  %v1054_v38 = vld [vmem:[%s4940_s30 + $0x8] sm:$0xff] }
 0x6e0   : > { %1670 = vrot.lane.b32.xlu1 %v5008_v11, %s4487_s8  ;;  %v1620_v11 = vld [vmem:[#allocation13 + $0x8] sm:$0xf]  ;;  %s4488_s8 = smov [#allocation31]  }
 0x6e1   : > { %v1625_v46 = vsel %vm1258_vm3, %v1620_v11, 0 }
 0x6e2   : > { %3457 = vmatpush3.bf16.msra.mxu0 %v1625_v46 }
 0x6e3   : > { %3468 = vmatprep.subr.bf16.mxu0 %v4479_v0 }
 0x758   : > { %v1567_v39 = vpop.xlane.xlu1 %1566 }
 0x759   : > { %3849 = vrcp.f32 %v1567_v39 }
 0x75c   : > { %v1671_v42 = vpop.permute.xlu1 %1670 }
 0x75d   : > { %v1676_v44 = vsel %vm1195_vm2, %v1671_v42, 0  ;;  %v3829_v42 = vld [vmem:[%s5410_s2 + $0x8] sm:$0xff]  }
 0x766   : > { %v3850_v40 = vpop.eup %3849 }
 0x767   : > { %v1569_v41 = vmul.f32 %v3850_v40, %v3848_v37  ;;  %v1053_v37 = vld [vmem:[%s4940_s30] sm:$0xff]  ;;  %v1935_v40 = vadd.f32 %v1054_v38, %v1052_v35 }
 0x768   : > { %v1934_v39 = vadd.f32 %v1053_v37, %v1051_v34 }
 0x769   : > { %v1570_v43 = vpack.c.bf16 %v1569_v41, %v1569_v41 }
 0x76a   : > { %v1936_v41 = vpack.c.bf16 %v1935_v40, %v1934_v39 }
 0x76b   : > { %3453 = vmatmul.mubr.msk.bf16.vlgmr.msra.gmra.mxu1 %vm1195_vm2, %v1570_v43  ;;  %v3830_v43 = vld [vmem:[%s5410_s2] sm:$0xff]  }
 0x76c   : > { %3463 = vmatpush3.bf16.xpose.msra.mxu1 %v1676_v44  ;;  %3464 = vmatprep.mubr.msk.bf16.mxu1 %vm4480_vm0, %v4479_v0 }
 0x76d   : > { %3474 = vmatprep.subr.bf16.mxu1 %v4479_v0 }
 0x773   : > { %3465 = vmatmul.mubr.msk.bf16.vlgmr.msra.gmra.mxu1 %vm1195_vm2, %v1669_v45 }
 0x774   : > { %3476 = vmatprep.mubr.msk.bf16.mxu1 %vm4480_vm0, %v4479_v0  ;;  %3475 = vmatpush3.bf16.msra.mxu1 %v1784_v2  ;;  %v3276_v2 = vld [vmem:[#allocation16] ss:$0 sm:$0xff] }
 0x775   : > { %3488 = vmatprep.subr.bf16.mxu1 %v4479_v0 }
 0x82b   : > { %v1613_v47 = vpop.f32.mrf.mxu1 }
 0x82c   : > { %v1619_v48 = vpack.c.bf16 %v1613_v47, %v1613_v47  ;;  %v3274_v47 = vld [vmem:[#allocation26] ss:$0 sm:$0xff] }
 0x82d   : > { %v3454_v49 = vpop.f32.mrf.mxu1 }
 0x82e   : > { %3459 = vmatmul.mubr.msk.bf16.vlgmr.msra.gmra.mxu0 %vm1195_vm2, %v1619_v48  ;;  %v3275_v49 = vld [vmem:[#allocation28] ss:$0 sm:$0xff] }
 0x82f   : > { %v1616_v50 = vpop.f32.mrf.mxu1  ;;  %3470 = vmatprep.mubr.msk.bf16.mxu0 %vm4480_vm0, %v4479_v0 }
 0x831   : > { %v3455_v51 = vpop.f32.mrf.mxu1 }
 0x833   : > { %v1712_v52 = vpop.f32.mrf.mxu1 }
 0x834   : > { %v1718_v53 = vsel %vm1195_vm2, %v1712_v52, -inf }
 0x835   : > { %1719 = vmax.xlane.f32.xlu1 %v1718_v53  ;;  %v3466_v54 = vpop.f32.mrf.mxu1 }
 0x836   : > { %v3280_v54 = vld [vmem:[#allocation19] ss:$0 sm:$0xff] }
 0x837   : > { %v1715_v55 = vpop.f32.mrf.mxu1 }
 0x839   : > { %v3467_v56 = vpop.f32.mrf.mxu1 }
 0x8be   : > { %v1720_v57 = vpop.xlane.xlu1 %1719 }
 0x8bf   : > { %v1721_v58 = vsub.f32 %v1712_v52, %v1720_v57 }
 0x8c1   : > { %v1722_v59 = vmul.f32 1.442695, %v1721_v58 }
 0x8c3   : > { %3851 = vpow2.f32 %v1722_v59 }
 0x8d0   : > { %v3852_v60 = vpop.eup %3851 }
 0x8d1   : > { %v1724_v61 = vsel %vm1195_vm2, %v3852_v60, 0.0 }
 0x8d2   : > { %1725 = vadd.xlane.f32.xlu0 %v1724_v61 }
 0x8e8   : > { %1730 = vrot.lane.b32.xlu0 %v5034_v36, %s4486_s15 }
 0x8ee   : > { %v1661_v62 = vpop.f32.mrf.mxu0 }
 0x8ef   : > { %v1667_v1 = vadd.f32 %v1661_v62, %v5069_v22  ;;  %v3831_v62 = vld [vmem:[#allocation20 + $0x8] sm:$0xff]  }
 0x8f0   : > { %v3460_v5 = vpop.f32.mrf.mxu0 }
 0x8f2   : > { %v1664_v6 = vpop.f32.mrf.mxu0 }
 0x8f4   : > { %v3461_v7 = vpop.f32.mrf.mxu0 }
 0x95b   : > { %v1726_v8 = vpop.xlane.xlu0 %1725 }
 0x95c   : > { %3853 = vrcp.f32 %v1726_v8 }
 0x95f   : > { %v1731_v9 = vpop.permute.xlu0 %1730 }
 0x960   : > { %v1736_v10 = vsel %vm1258_vm3, %v1731_v9, 0 }
 0x961   : > { %3469 = vmatpush3.bf16.msra.mxu0 %v1736_v10 }
 0x962   : > { %3480 = vmatprep.subr.bf16.mxu0 %v4479_v0 }
 0x969   : > { %v3854_v36 = vpop.eup %3853 }
 0x96a   : > { %v1728_v12 = vmul.f32 %v3854_v36, %v3852_v60 }
 0x96c   : > { %v1729_v13 = vpack.c.bf16 %v1728_v12, %v1728_v12 }
 0x96e   : > { %3471 = vmatmul.mubr.msk.bf16.vlgmr.msra.gmra.mxu0 %vm1195_vm2, %v1729_v13 }
 0x96f   : > { %3484 = vmatprep.mubr.msk.bf16.mxu0 %vm4480_vm0, %v4479_v0  ;;  %3481 = vmatpush3.bf16.msra.mxu0 %v3829_v42 }
 0x970   : > { %3482 = vmatprep.subr.bf16.mxu0 %v4479_v0 }
 0x973   : > { %3483 = vmatpush3.bf16.msra.mxu0 %v3830_v43 }
 0x974   : > { %3496 = vmatprep.subr.bf16.mxu0 %v4479_v0 }
 0xa2e   : > { %v1772_v14 = vpop.f32.mrf.mxu0 }
 0xa2f   : > { %v1778_v15 = vpack.c.bf16 %v1772_v14, %v1772_v14  ;;  %v3284_v14 = vld [vmem:[#allocation22] ss:$0 sm:$0xff] }
 0xa30   : > { %v3472_v16 = vpop.f32.mrf.mxu0 }
 0xa31   : > { %3477 = vmatmul.mubr.msk.bf16.vlgmr.msra.gmra.mxu1 %vm1195_vm2, %v1778_v15 }
 0xa32   : > { %v1775_v17 = vpop.f32.mrf.mxu0  ;;  %3492 = vmatprep.mubr.msk.bf16.mxu1 %vm4480_vm0, %v4479_v0  ;;  %3489 = vmatpush3.bf16.msra.mxu1 %v3827_v33 }
 0xa33   : > { %3490 = vmatprep.subr.bf16.mxu1 %v4479_v0 }
 0xa34   : > { %v3473_v18 = vpop.f32.mrf.mxu0 }
 0xaf1   : > { %v1820_v19 = vpop.f32.mrf.mxu1 }
 0xaf2   : > { %v1826_v21 = vadd.f32 %v1820_v19, %v1667_v1  ;;  %v2004_v1 = vpack.c.bf16 %v1052_v35, %v1051_v34 }
 0xaf3   : > { %v3478_v22 = vpop.f32.mrf.mxu1 }
 0xaf4   : > { %v1834_v23 = vadd.f32 %v3273_v20, %v1826_v21 }
 0xaf5   : > { %v1823_v24 = vpop.f32.mrf.mxu1 }
 0xaf6   : > { %v1835_v25 = vadd.f32 %v1834_v23, %v4996_v3  ;;  %v3828_v3 = vld [vmem:[#allocation17] sm:$0xff]  }
 0xaf7   : > { %v3479_v26 = vpop.f32.mrf.mxu1  ;;  %3491 = vmatpush3.bf16.msra.mxu1 %v3828_v3 }
 0xaf8   : > { %v1838_v27 = vsel %vm1080_vm1, %v1835_v25, 0.0  ;;  %3504 = vmatprep.subr.bf16.mxu1 %v4479_v0 }
 0xaf9   : > { %1839 = vadd.xlane.f32.xlu1 %v1838_v27 }
 0xafa   : > { %3493 = vmatmul.mubr.msk.bf16.vlgmr.msra.gmra.mxu1 %vm1080_vm1, %v1936_v41 }
 0xafb   : > { %3506 = vmatprep.mubr.msk.bf16.mxu1 %vm4480_vm0, %v4479_v0 }
 0xb82   : > { %v1840_v28 = vpop.xlane.xlu1 %1839 }
 0xb83   : > { %v1842_v29 = vmul.f32 0.03125, %v1840_v28 }
 0xb85   : > { %v1843_v30 = vsub.f32 %v1835_v25, %v1842_v29 }
 0xb87   : > { %v1844_v31 = vmul.f32 %v1843_v30, %v1843_v30 }
 0xb89   : > { %v1845_v32 = vsel %vm1080_vm1, %v1844_v31, 0.0 }
 0xb8a   : > { %1846 = vadd.xlane.f32.xlu1 %v1845_v32 }
 0xbba   : > { %v1997_v55 = vpop.f32.mrf.mxu1 }
 0xbbb   : > { %v1998_v57 = vadd.f32 %v3280_v54, %v1997_v55 }
 0xbbc   : > { %v3494_v56 = vpop.f32.mrf.mxu1 }
 0xbbe   : > { %v2000_v58 = vpop.f32.mrf.mxu1 }
 0xbbf   : > { %v2001_v59 = vadd.f32 %v3280_v54, %v2000_v58 }
 0xbc0   : > { %v3495_v60 = vpop.f32.mrf.mxu1 }
 0xbc1   : > { %v5137_v61 = vpack.c.bf16 %v2001_v59, %v1998_v57 }
 0xbc3   : > { %2183 = vrot.lane.b32.xlu1 %v5137_v61, %s4481_s11 }
 0xc13   : > { %v1847_v44 = vpop.xlane.xlu1 %1846 }
 0xc14   : > { %v1848_v45 = vmul.f32 0.03125, %v1847_v44 }
 0xc16   : > { %v1849_v11 = vadd.f32 1e-05, %v1848_v45 }
 0xc18   : > { %3855 = vrsqrt.f32 %v1849_v11 }
 0xc25   : > { %v3856_v46 = vpop.eup %3855 }
 0xc26   : > { %v1851_v48 = vmul.f32 %v3856_v46, %v1843_v30  ;;  %v2291_v46 = vld [vmem:[#allocation23 + $0x4] sm:$0xf] }
 0xc28   : > { %v1858_v50 = vmul.f32 %v3274_v47, %v1851_v48  ;;  %v2296_v47 = vsel %vm1258_vm3, %v2291_v46, 0 }
 0xc2a   : > { %v5130_v51 = vadd.f32 %v3275_v49, %v1858_v50  ;;  %v2178_v50 = vld [vmem:[#allocation23] sm:$0xf] }
 0xc2b   : > { %v2342_v54 = vsel %vm1258_vm3, %v2178_v50, 0 }
 0xc2c   : > { %v1866_v52 = vadd.f32 %v5130_v51, %v4999_v4  ;;  %v2078_v4 = vsel %vm1195_vm2, %v5137_v61, 0 }
 0xc2d   : > { %3505 = vmatpush3.bf16.xpose.msra.mxu1 %v2078_v4 }
 0xc2e   : > { %v1867_v53 = vpack.c.bf16 %v1866_v52, %v1866_v52  ;;  %3516 = vmatprep.subr.bf16.mxu1 %v4479_v0 }
 0xc30   : > { %3485 = vmatmul.mubr.msk.bf16.vlgmr.msra.gmra.mxu0 %vm1080_vm1, %v1867_v53 }
 0xc31   : > { %3500 = vmatprep.mubr.msk.bf16.mxu0 %vm4480_vm0, %v4479_v0  ;;  %3497 = vmatpush3.bf16.msra.mxu0 %v3831_v62 }
 0xc32   : > { %3498 = vmatprep.subr.bf16.mxu0 %v4479_v0 }
 0xc35   : > { %3499 = vmatpush3.bf16.msra.mxu0 %v3832_v63  ;;  %v2184_v6 = vpop.permute.xlu1 %2183 }
 0xc36   : > { %3510 = vmatprep.subr.bf16.mxu0 %v4479_v0  ;;  %v2189_v10 = vsel %vm1195_vm2, %v2184_v6, 0 }
 0xc38   : > { %3501 = vmatmul.mubr.msk.bf16.vlgmr.msra.gmra.mxu0 %vm1080_vm1, %v2004_v1 }
 0xc39   : > { %3512 = vmatprep.mubr.msk.bf16.mxu0 %vm4480_vm0, %v4479_v0 }
 0xcf0   : > { %v1928_v5 = vpop.f32.mrf.mxu0 }
 0xcf1   : > { %v1929_v7 = vadd.f32 %v3276_v2, %v1928_v5 }
 0xcf2   : > { %v3486_v8 = vpop.f32.mrf.mxu0 }
 0xcf3   : > { %v5149_v9 = vpack.c.bf16 %v1929_v7, %v1929_v7 }
 0xcf4   : > { %v1931_v36 = vpop.f32.mrf.mxu0 }
 0xcf5   : > { %2180 = vrot.lane.b32.xlu0 %v5149_v9, %s4481_s11  ;;  %3507 = vmatmul.mubr.msk.bf16.vlgmr.msra.gmra.mxu1 %vm1195_vm2, %v5149_v9 }
 0xcf6   : > { %v3487_v12 = vpop.f32.mrf.mxu0  ;;  %3517 = vmatpush3.bf16.xpose.msra.mxu1 %v2189_v10  ;;  %3518 = vmatprep.mubr.msk.bf16.mxu1 %vm4480_vm0, %v4479_v0 }
 0xcf7   : > { %3528 = vmatprep.subr.bf16.mxu1 %v4479_v0 }
 0xcf8   : > { %v2065_v15 = vpop.f32.mrf.mxu0 }
 0xcf9   : > { %v2066_v17 = vadd.f32 %v3284_v14, %v2065_v15 }
 0xcfa   : > { %v3502_v16 = vpop.f32.mrf.mxu0 }
 0xcfc   : > { %v2068_v19 = vpop.f32.mrf.mxu0 }
 0xcfd   : > { %v2069_v21 = vadd.f32 %v3284_v14, %v2068_v19 }
 0xcfe   : > { %v3503_v23 = vpop.f32.mrf.mxu0 }
 0xcff   : > { %v5163_v24 = vpack.c.bf16 %v2069_v21, %v2066_v17 }
 0xd01   : > { %3511 = vmatpush3.bf16.msra.mxu0 %v5163_v24 }
 0xd02   : > { %3522 = vmatprep.subr.bf16.mxu0 %v4479_v0 }
 0xd67   : > { %v2181_v13 = vpop.permute.xlu0 %2180 }
 0xd68   : > { %3519 = vmatmul.mubr.msk.bf16.vlgmr.msra.gmra.mxu1 %vm1195_vm2, %v2181_v13 }
 0xd69   : > { %3530 = vmatprep.mubr.msk.bf16.mxu1 %vm4480_vm0, %v4479_v0  ;;  %3529 = vmatpush3.bf16.msra.mxu1 %v2296_v47 }
 0xd6a   : > { %3540 = vmatprep.subr.bf16.mxu1 %v4479_v0 }
 0xdb5   : > { %v2114_v18 = vpop.f32.mrf.mxu1 }
 0xdb6   : > { %v2121_v20 = vsel %vm2120_vm4, %v2114_v18, -inf }
 0xdb7   : > { %2122 = vmax.xlane.f32.xlu0 %v2121_v20  ;;  %v3508_v22 = vpop.f32.mrf.mxu1 }
 0xdb9   : > { %v2117_v25 = vpop.f32.mrf.mxu1 }
 0xdbb   : > { %v3509_v26 = vpop.f32.mrf.mxu1 }
 0xe28   : > { %v2225_v27 = vpop.f32.mrf.mxu1 }
 0xe29   : > { %v2231_v28 = vsel %vm2120_vm4, %v2225_v27, -inf }
 0xe2a   : > { %2232 = vmax.xlane.f32.xlu1 %v2231_v28  ;;  %v3520_v29 = vpop.f32.mrf.mxu1 }
 0xe2c   : > { %v2228_v30 = vpop.f32.mrf.mxu1 }
 0xe2e   : > { %v3521_v31 = vpop.f32.mrf.mxu1 }
 0xe3b   : > { %2244 = vrot.lane.b32.xlu1 %v5163_v24, %s4481_s11  ;;  %s5413_s11 = sld [smem:[#allocation64_spill]] }
 0xe3f   : > { %2384 = vrot.lane.b32.xlu1 %v5149_v9, %s4485_s9 }
 0xe40   : > { %v2123_v32 = vpop.xlane.xlu0 %2122 }
 0xe41   : > { %v2124_v33 = vsub.f32 %v2114_v18, %v2123_v32 }
 0xe43   : > { %v2125_v3 = vmul.f32 1.442695, %v2124_v33  ;;  %v2493_v33 = vld [vmem:[#allocation23 + $0x8] sm:$0xf] }
 0xe45   : > { %3857 = vpow2.f32 %v2125_v3  ;;  %v2498_v3 = vsel %vm1258_vm3, %v2493_v33, 0 }
 0xe52   : > { %v3858_v34 = vpop.eup %3857 }
 0xe53   : > { %v2127_v35 = vsel %vm2120_vm4, %v3858_v34, 0.0 }
 0xe54   : > { %2128 = vadd.xlane.f32.xlu0 %v2127_v35 }
 0xeb3   : > { %v2233_v37 = vpop.xlane.xlu1 %2232 }
 0xeb4   : > { %v2234_v38 = vsub.f32 %v2225_v27, %v2233_v37 }
 0xeb6   : > { %v2235_v39 = vmul.f32 1.442695, %v2234_v38 }
 0xeb7   : > { %v2245_v11 = vpop.permute.xlu1 %2244 }
 0xeb8   : > { %3859 = vpow2.f32 %v2235_v39 }
 0xebb   : > { %v2385_v6 = vpop.permute.xlu1 %2384 }
 0xec5   : > { %v3860_v40 = vpop.eup %3859 }
 0xec6   : > { %v2237_v41 = vsel %vm2120_vm4, %v3860_v40, 0.0 }
 0xec7   : > { %2238 = vadd.xlane.f32.xlu0 %v2237_v41 }
 0xedd   : > { %v2129_v42 = vpop.xlane.xlu0 %2128  ;;  %2386 = vrot.lane.b32.xlu0 %v5137_v61, %s4485_s9 }
 0xede   : > { %3861 = vrcp.f32 %v2129_v42 }
 0xeeb   : > { %v3862_v43 = vpop.eup %3861 }
 0xeec   : > { %v2131_v44 = vmul.f32 %v3862_v43, %v3858_v34 }
 0xeee   : > { %v2132_v45 = vpack.c.bf16 %v2131_v44, %v2131_v44 }
 0xef0   : > { %3513 = vmatmul.mubr.msk.bf16.vlgmr.msra.gmra.mxu0 %vm2120_vm4, %v2132_v45 }
 0xef1   : > { %3523 = vmatpush3.bf16.msra.mxu0 %v2245_v11  ;;  %3524 = vmatprep.mubr.msk.bf16.mxu0 %vm4480_vm0, %v4479_v0 }
 0xef2   : > { %3534 = vmatprep.subr.bf16.mxu0 %v4479_v0 }
 0xf50   : > { %v2239_v48 = vpop.xlane.xlu0 %2238 }
 0xf51   : > { %3863 = vrcp.f32 %v2239_v48 }
 0xf54   : > { %v2387_v60 = vpop.permute.xlu0 %2386 }
 0xf55   : > { %v2392_v1 = vsel %vm1195_vm2, %v2387_v60, 0 }
 0xf5e   : > { %v3864_v49 = vpop.eup %3863 }
 0xf5f   : > { %v2241_v52 = vmul.f32 %v3864_v49, %v3860_v40 }
 0xf61   : > { %v2242_v53 = vpack.c.bf16 %v2241_v52, %v2241_v52 }
 0xf63   : > { %3525 = vmatmul.mubr.msk.bf16.vlgmr.msra.gmra.mxu0 %vm2120_vm4, %v2242_v53  ;;  %v2650_v53 = vld [vmem:[#allocation23 + $0xc] sm:$0xf] }
 0xf64   : > { %3535 = vmatpush3.bf16.msra.mxu0 %v2342_v54  ;;  %3536 = vmatprep.mubr.msk.bf16.mxu0 %vm4480_vm0, %v4479_v0 }
 0xf65   : > { %3546 = vmatprep.subr.bf16.mxu0 %v4479_v0 }
 0xfb0   : > { %v2171_v55 = vpop.f32.mrf.mxu0 }
 0xfb1   : > { %v2177_v56 = vpack.c.bf16 %v2171_v55, %v2171_v55 }
 0xfb2   : > { %v3514_v57 = vpop.f32.mrf.mxu0 }
 0xfb3   : > { %3537 = vmatmul.mubr.msk.bf16.vlgmr.msra.gmra.mxu0 %vm1195_vm2, %v2177_v56 }
 0xfb4   : > { %v2174_v58 = vpop.f32.mrf.mxu0  ;;  %3548 = vmatprep.mubr.msk.bf16.mxu0 %vm4480_vm0, %v4479_v0 }
 0xfb6   : > { %v3515_v59 = vpop.f32.mrf.mxu0 }
0x1023   : > { %v2284_v4 = vpop.f32.mrf.mxu0 }
0x1024   : > { %v2290_v62 = vpack.c.bf16 %v2284_v4, %v2284_v4 }
0x1025   : > { %v3526_v63 = vpop.f32.mrf.mxu0 }
0x1026   : > { %3531 = vmatmul.mubr.msk.bf16.vlgmr.msra.gmra.mxu1 %vm1195_vm2, %v2290_v62 }
0x1027   : > { %3541 = vmatpush3.bf16.xpose.msra.mxu1 %v2392_v1  ;;  %v2287_v2 = vpop.f32.mrf.mxu0  ;;  %3542 = vmatprep.mubr.msk.bf16.mxu1 %vm4480_vm0, %v4479_v0 }
0x1028   : > { %3552 = vmatprep.subr.bf16.mxu1 %v4479_v0 }
0x1029   : > { %v3527_v5 = vpop.f32.mrf.mxu0 }
0x102e   : > { %3543 = vmatmul.mubr.msk.bf16.vlgmr.msra.gmra.mxu1 %vm1195_vm2, %v2385_v6 }
0x102f   : > { %3554 = vmatprep.mubr.msk.bf16.mxu1 %vm4480_vm0, %v4479_v0  ;;  %3553 = vmatpush3.bf16.msra.mxu1 %v2498_v3 }
0x1030   : > { %3564 = vmatprep.subr.bf16.mxu1 %v4479_v0 }
0x1073   : > { %v5198_v7 = vpop.f32.mrf.mxu0 }
0x1075   : > { %v3538_v8 = vpop.f32.mrf.mxu0 }
0x1077   : > { %v2381_v10 = vpop.f32.mrf.mxu0 }
0x1079   : > { %v3539_v36 = vpop.f32.mrf.mxu0 }
0x10e6   : > { %v5200_v12 = vpop.f32.mrf.mxu1 }
0x10e7   : > { %v2379_v50 = vadd.f32 %v5198_v7, %v5200_v12  ;;  %v3300_v7 = vld [vmem:[#allocation25] ss:$0 sm:$0xff] }
0x10e8   : > { %v3532_v13 = vpop.f32.mrf.mxu1 }
0x10ea   : > { %v2335_v14 = vpop.f32.mrf.mxu1 }
0x10ec   : > { %v3533_v15 = vpop.f32.mrf.mxu1 }
0x10ee   : > { %v2428_v16 = vpop.f32.mrf.mxu1 }
0x10ef   : > { %v2434_v17 = vsel %vm2120_vm4, %v2428_v16, -inf }
0x10f0   : > { %2435 = vmax.xlane.f32.xlu1 %v2434_v17  ;;  %v3544_v18 = vpop.f32.mrf.mxu1 }
0x10f2   : > { %v2431_v19 = vpop.f32.mrf.mxu1 }
0x10f4   : > { %v3545_v20 = vpop.f32.mrf.mxu1 }
0x1101   : > { %2543 = vrot.lane.b32.xlu1 %v5137_v61, %s4486_s15 }
0x1105   : > { %2541 = vrot.lane.b32.xlu1 %v5149_v9, %s4486_s15 }
0x1179   : > { %v2436_v21 = vpop.xlane.xlu1 %2435 }
0x117a   : > { %v2437_v22 = vsub.f32 %v2428_v16, %v2436_v21  ;;  %v3833_v21 = vld [vmem:[#allocation29 + $0x8] sm:$0xff]  }
0x117c   : > { %v2438_v23 = vmul.f32 1.442695, %v2437_v22  ;;  %v3834_v22 = vld [vmem:[#allocation29] sm:$0xff]  }
0x117d   : > { %v2544_v9 = vpop.permute.xlu1 %2543 }
0x117e   : > { %3865 = vpow2.f32 %v2438_v23  ;;  %v2549_v31 = vsel %vm1195_vm2, %v2544_v9, 0  ;;  %v3302_v9 = vld [vmem:[#allocation28 + $0x1] ss:$0 sm:$0xff] }
0x1181   : > { %v2542_v32 = vpop.permute.xlu1 %2541 }
0x118b   : > { %v3866_v25 = vpop.eup %3865 }
0x118c   : > { %v2440_v26 = vsel %vm2120_vm4, %v3866_v25, 0.0 }
0x118d   : > { %2441 = vadd.xlane.f32.xlu0 %v2440_v26 }
0x11a3   : > { %2446 = vrot.lane.b32.xlu0 %v5163_v24, %s4485_s9  ;;  %s5411_s9 = sld [smem:[#allocation63_spill]] }
0x11a9   : > { %v3836_v23 = vld [vmem:[%s5411_s9 + $0x10] sm:$0xff]   ;;  %v3837_v33 = vld [vmem:[%s5411_s9 + $0x8] sm:$0xff]   ;;  %v3838_v3 = vld [vmem:[%s5411_s9] sm:$0xff]  }
0x1216   : > { %v2442_v27 = vpop.xlane.xlu0 %2441 }
0x1217   : > { %3867 = vrcp.f32 %v2442_v27 }
0x121a   : > { %v2447_v28 = vpop.permute.xlu0 %2446 }
0x121b   : > { %3547 = vmatpush3.bf16.msra.mxu0 %v2447_v28 }
0x121c   : > { %3558 = vmatprep.subr.bf16.mxu0 %v4479_v0 }
0x1224   : > { %v3868_v61 = vpop.eup %3867 }
0x1225   : > { %v2444_v29 = vmul.f32 %v3868_v61, %v3866_v25  ;;  %v3301_v61 = vld [vmem:[#allocation26 + $0x1] ss:$0 sm:$0xff] }
0x1227   : > { %v2445_v30 = vpack.c.bf16 %v2444_v29, %v2444_v29 }
0x1229   : > { %3549 = vmatmul.mubr.msk.bf16.vlgmr.msra.gmra.mxu0 %vm2120_vm4, %v2445_v30 }
0x122a   : > { %3559 = vmatpush3.bf16.xpose.msra.mxu0 %v2549_v31  ;;  %3560 = vmatprep.mubr.msk.bf16.mxu0 %vm4480_vm0, %v4479_v0 }
0x122b   : > { %3570 = vmatprep.subr.bf16.mxu0 %v4479_v0 }
0x1231   : > { %3561 = vmatmul.mubr.msk.bf16.vlgmr.msra.gmra.mxu0 %vm1195_vm2, %v2542_v32 }
0x1232   : > { %3572 = vmatprep.mubr.msk.bf16.mxu0 %vm4480_vm0, %v4479_v0 }
0x12e9   : > { %v2486_v34 = vpop.f32.mrf.mxu0 }
0x12ea   : > { %v2492_v35 = vpack.c.bf16 %v2486_v34, %v2486_v34  ;;  %v3303_v34 = vld [vmem:[%s5412_s21] ss:$0 sm:$0xff]  ;;  %s4349_s21 = scalar_lea.vmem %s2938_s23, 128 }
0x12eb   : > { %v3550_v37 = vpop.f32.mrf.mxu0  ;;  %p4350_p13 = scmp.ne.s32.totalorder %s2938_s23, %s4349_s21 }
0x12ec   : > { %3555 = vmatmul.mubr.msk.bf16.vlgmr.msra.gmra.mxu1 %vm1195_vm2, %v2492_v35 }
0x12ed   : > { %v2489_v38 = vpop.f32.mrf.mxu0  ;;  %3566 = vmatprep.mubr.msk.bf16.mxu1 %vm4480_vm0, %v4479_v0  ;;  %p4351_p0 = pnand %p4350_p13, %p5415_p6 }
0x12ef   : > { %v3551_v39 = vpop.f32.mrf.mxu0  ;;  %p4352_p2 = pneg %p4351_p0 }
0x12f1   : > { %v2585_v40 = vpop.f32.mrf.mxu0 }
0x12f2   : > { %v2591_v41 = vsel %vm2120_vm4, %v2585_v40, -inf }
0x12f3   : > { %2592 = vmax.xlane.f32.xlu0 %v2591_v41  ;;  %v3562_v42 = vpop.f32.mrf.mxu0 }
0x12f5   : > { %v2588_v43 = vpop.f32.mrf.mxu0 }
0x12f7   : > { %v3563_v44 = vpop.f32.mrf.mxu0 }
0x1309   : > { %2603 = vrot.lane.b32.xlu0 %v5163_v24, %s4486_s15  ;;  %v2655_v24 = vsel %vm1258_vm3, %v2650_v53, 0  ;;  %s3316_s15 = sshll.u32 %s4635_s29, 7  ;;  %s4353_s29 = sshll.u32 %s4488_s8, 4  ;;  %s4354_s29 = int_to_ptr.vmem [resolvable:$false] %s4353_s29 }
0x130a   : > { %3571 = vmatpush3.bf16.msra.mxu0 %v2655_v24  ;;  %s2935_s6 = scalar_lea.hbm %s5414_s16, %s3316_s15  ;;  %s4355_s3 = scalar_lea.vmem %s4354_s29, 256 }
0x130b   : > { %3584 = vmatprep.subr.bf16.mxu0 %v4479_v0  ;;  %p4356_p8 = scmp.lt.s32.totalorder %s2938_s23, %s4354_s29  ;;  %p4357_p1 = scmp.lt.s32.totalorder %s4355_s3, %s4349_s21 }
0x130d   : > { %p4358_p3 = por %p4357_p1, %p4356_p8 }
0x130f   : > { %p4359_p9 = pnand %p4358_p3, %p4352_p2 }
0x137c   : > { %v2593_v45 = vpop.xlane.xlu0 %2592 }
0x137d   : > { %v2594_v11 = vsub.f32 %v2585_v40, %v2593_v45 }
0x137f   : > { %v2595_v46 = vmul.f32 1.442695, %v2594_v11 }
0x1380   : > { %v2604_v47 = vpop.permute.xlu0 %2603 }
0x1381   : > { %3869 = vpow2.f32 %v2595_v46  ;;  %3565 = vmatpush3.bf16.msra.mxu1 %v2604_v47 }
0x1382   : > { %3576 = vmatprep.subr.bf16.mxu1 %v4479_v0 }
0x138e   : > { %v3870_v48 = vpop.eup %3869 }
0x138f   : > { %v2597_v49 = vsel %vm2120_vm4, %v3870_v48, 0.0 }
0x1390   : > { %2598 = vadd.xlane.f32.xlu1 %v2597_v49 }
0x13ac   : > { %v2534_v52 = vpop.f32.mrf.mxu1 }
0x13ad   : > { %v2540_v54 = vadd.f32 %v2534_v52, %v2379_v50 }
0x13ae   : > { %v3556_v55 = vpop.f32.mrf.mxu1 }
0x13b0   : > { %v2537_v56 = vpop.f32.mrf.mxu1 }
0x13b2   : > { %v3557_v57 = vpop.f32.mrf.mxu1 }
0x1419   : > { %v2599_v58 = vpop.xlane.xlu1 %2598 }
0x141a   : > { %3871 = vrcp.f32 %v2599_v58  ;;  %v3313_v58 = vld [vmem:[#allocation26 + $0x2] ss:$0 sm:$0xff] }
0x1427   : > { %v3872_v59 = vpop.eup %3871 }
0x1428   : > { %v2601_v60 = vmul.f32 %v3872_v59, %v3870_v48 }
0x142a   : > { %v2602_v4 = vpack.c.bf16 %v2601_v60, %v2601_v60  ;;  %v3314_v60 = vld [vmem:[#allocation28 + $0x2] ss:$0 sm:$0xff] }
0x142c   : > { %3567 = vmatmul.mubr.msk.bf16.vlgmr.msra.gmra.mxu1 %vm2120_vm4, %v2602_v4 }
0x142d   : > { %3580 = vmatprep.mubr.msk.bf16.mxu1 %vm4480_vm0, %v4479_v0  ;;  %3577 = vmatpush3.bf16.msra.mxu1 %v3833_v21 }
0x142e   : > { %3578 = vmatprep.subr.bf16.mxu1 %v4479_v0 }
0x1431   : > { %3579 = vmatpush3.bf16.msra.mxu1 %v3834_v22 }
0x14ec   : > { %v2643_v62 = vpop.f32.mrf.mxu1 }
0x14ed   : > { %v2649_v63 = vpack.c.bf16 %v2643_v62, %v2643_v62 }
0x14ee   : > { %v3568_v1 = vpop.f32.mrf.mxu1 }
0x14ef   : > { %3573 = vmatmul.mubr.msk.bf16.vlgmr.msra.gmra.mxu0 %vm1195_vm2, %v2649_v63 }
0x14f0   : > { %v2646_v2 = vpop.f32.mrf.mxu1  ;;  %3592 = vmatprep.mubr.msk.bf16.mxu0 %vm4480_vm0, %v4479_v0 }
0x14f2   : > { %v3569_v5 = vpop.f32.mrf.mxu1 }
0x15af   : > { %v2691_v6 = vpop.f32.mrf.mxu0 }
0x15b0   : > { %v2697_v8 = vadd.f32 %v2691_v6, %v2540_v54 }
0x15b1   : > { %v3574_v10 = vpop.f32.mrf.mxu0 }
0x15b2   : > { %v2705_v36 = vadd.f32 %v3300_v7, %v2697_v8 }
0x15b3   : > { %v2694_v12 = vpop.f32.mrf.mxu0 }
0x15b4   : > { %v2706_v13 = vadd.f32 %v2705_v36, %v5130_v51  ;;  %v3835_v51 = vld [vmem:[%s5411_s9 + $0x18] sm:$0xff]  }
0x15b5   : > { %v3575_v14 = vpop.f32.mrf.mxu0  ;;  %3585 = vmatpush3.bf16.msra.mxu0 %v3835_v51 }
0x15b6   : > { %v2711_v15 = vsel %vm1080_vm1, %v2706_v13, 0.0  ;;  %3586 = vmatprep.subr.bf16.mxu0 %v4479_v0 }
0x15b7   : > { %2712 = vadd.xlane.f32.xlu1 %v2711_v15 }
0x15b9   : > { %3587 = vmatpush3.bf16.msra.mxu0 %v3836_v23 }
0x15ba   : > { %3588 = vmatprep.subr.bf16.mxu0 %v4479_v0 }
0x15bd   : > { %3589 = vmatpush3.bf16.msra.mxu0 %v3837_v33 }
0x15be   : > { %3590 = vmatprep.subr.bf16.mxu0 %v4479_v0  ;;  %v3307_v0 = vld [vmem:[%s5413_s11] ss:$0 sm:$0xff] }
0x15c1   : > { %3591 = vmatpush3.bf16.msra.mxu0 %v3838_v3 }
0x1640   : > { %v2713_v16 = vpop.xlane.xlu1 %2712 }
0x1641   : > { %v2714_v17 = vmul.f32 0.03125, %v2713_v16 }
0x1643   : > { %v2715_v18 = vsub.f32 %v2706_v13, %v2714_v17 }
0x1645   : > { %v2716_v19 = vmul.f32 %v2715_v18, %v2715_v18 }
0x1647   : > { %v2717_v20 = vsel %vm1080_vm1, %v2716_v19, 0.0 }
0x1648   : > { %2718 = vadd.xlane.f32.xlu1 %v2717_v20 }
0x16d1   : > { %v2719_v25 = vpop.xlane.xlu1 %2718 }
0x16d2   : > { %v2720_v26 = vmul.f32 0.03125, %v2719_v25 }
0x16d4   : > { %v2721_v27 = vadd.f32 1e-05, %v2720_v26 }
0x16d6   : > { %3873 = vrsqrt.f32 %v2721_v27 }
0x16e3   : > { %v3874_v28 = vpop.eup %3873 }
0x16e4   : > { %v2723_v29 = vmul.f32 %v3874_v28, %v2715_v18 }
0x16e6   : > { %v2730_v30 = vmul.f32 %v3301_v61, %v2723_v29 }
0x16e8   : > { %v2737_v31 = vadd.f32 %v3302_v9, %v2730_v30 }
0x16ea   : > { %v2738_v32 = vpack.c.bf16 %v2737_v31, %v2737_v31 }
0x16ec   : > { %3581 = vmatmul.mubr.msk.bf16.vlgmr.msra.gmra.mxu1 %vm1080_vm1, %v2738_v32 }
0x17ac   : > { %v2799_v35 = vpop.f32.mrf.mxu1 }
0x17ad   : > { %v2800_v37 = vadd.f32 %v3303_v34, %v2799_v35 }
0x17ae   : > { %v3582_v38 = vpop.f32.mrf.mxu1 }
0x17af   : > { %v2805_v39 = vmax.f32 %v2800_v37, 0.0 }
0x17b0   : > { %v2802_v40 = vpop.f32.mrf.mxu1 }
0x17b1   : > { %v2806_v41 = vpack.c.bf16 %v2805_v39, %v2805_v39 }
0x17b2   : > { %v3583_v42 = vpop.f32.mrf.mxu1 }
0x17b3   : > { %3593 = vmatmul.mubr.msk.bf16.vlgmr.msra.gmra.mxu0 %vm2846_vm5, %v2806_v41 }
0x1873   : > { %v2884_v43 = vpop.f32.mrf.mxu0 }
0x1874   : > { %v2885_v44 = vadd.f32 %v3307_v0, %v2884_v43 }
0x1875   : > { %v3594_v45 = vpop.f32.mrf.mxu0 }
0x1876   : > { %v2890_v11 = vadd.f32 %v2885_v44, %v2737_v31 }
0x1877   : > { %v2887_v46 = vpop.f32.mrf.mxu0 }
0x1878   : > { %v2895_v47 = vsel %vm1080_vm1, %v2890_v11, 0.0 }
0x1879   : > { %2896 = vadd.xlane.f32.xlu1 %v2895_v47  ;;  %v3595_v48 = vpop.f32.mrf.mxu0 }
0x1902   : > { %v2897_v49 = vpop.xlane.xlu1 %2896 }
0x1903   : > { %v2898_v50 = vmul.f32 0.03125, %v2897_v49 }
0x1905   : > { %v2899_v52 = vsub.f32 %v2890_v11, %v2898_v50 }
0x1907   : > { %v2900_v53 = vmul.f32 %v2899_v52, %v2899_v52 }
0x1909   : > { %v2901_v54 = vsel %vm1080_vm1, %v2900_v53, 0.0 }
0x190a   : > { %2902 = vadd.xlane.f32.xlu1 %v2901_v54 }
0x1993   : > { %v2903_v24 = vpop.xlane.xlu1 %2902 }
0x1994   : > { %v2904_v55 = vmul.f32 0.03125, %v2903_v24 }
0x1996   : > { %v2905_v56 = vadd.f32 1e-05, %v2904_v55 }
0x1998   : > { %3875 = vrsqrt.f32 %v2905_v56 }
0x19a5   : > { %v3876_v57 = vpop.eup %3875 }
0x19a6   : > { %v2907_v59 = vmul.f32 %v3876_v57, %v2899_v52 }
0x19a8   : > { %v2914_v4 = vmul.f32 %v3313_v58, %v2907_v59 }
0x19aa   : > { %v2921_v62 = vadd.f32 %v3314_v60, %v2914_v4 }
0x19ac   : > { %2922 = vst.msk [vmem:[%s1038_s14] sm:$0xff] %vm1080_vm1, %v2921_v62 }
0x19ad   : > { %4362 = shalt.err (!%p4359_p9)
}
0x19ae   : > { %s4363_s30 = scalar_lea.hbm %s2935_s6, 128  ;;  %s4367_s15 = scalar_lea.hbm %s5414_s16, 256 }
0x19af   : > { %p4364_p7 = scmp.ne.s32.totalorder %s2935_s6, %s4363_s30  ;;  %p4368_p10 = scmp.lt.s32.totalorder %s2935_s6, %s5414_s16 }
0x19b0   : > { %p4369_p11 = scmp.lt.s32.totalorder %s4367_s15, %s4363_s30 }
0x19b1   : > { %p4365_p4 = pnand %p4364_p7, %p5415_p6 }
0x19b2   : > { %p4370_p12 = por %p4369_p11, %p4368_p10 }
0x19b3   : > { %p4366_p5 = pneg %p4365_p4 }
0x19b5   : > { %p4371_p13 = pnand %p4370_p12, %p4366_p5 }
0x19b7   : > { %4374 = shalt.err (!%p4371_p13)
}
0x19b8   : > { %3664 = dma.vmem_to_hbm [thread:$0]  (%p5415_p6), %s2938_s23, 128, %s2935_s6, %s2924_s13  }
0x19b9 PF: > { %s2949_s10 = sand.u32 1, %s4441_s5   ;;  %p5416_p0 = scmp.ne.s32.totalorder %s5382_s24, 0 }
0x19ba   : > { %p5417_p2 = scmp.ge.s32.totalorder %s4453_s28, 2  ;;  %s2950_s21 = scalar_lea.sflag [#allocation4], %s2949_s10 }
0x19bc   : > { %p3723_p8 = pnand %p5417_p2, %p5416_p0 }
0x19be   : > { %p3724_p1 = pneg %p3723_p8 }
0x19c0   : > { %4436 = dma.done.wait (%p3724_p1), %s2950_s21, 128  }
0x19c1   : > { %4438 = vsyncadd (%p3724_p1), %s2950_s21, 4294967168  ;;  %p48_p3 = scmp.ge.s32.totalorder %s4808_s4, 4   ;;  %s5418_s5 = smov %s4445_s26 }
0x19c2   : > { %s5419_s26 = smov %s4449_s27  ;;  %s5420_s27 = smov %s4819_s0 }
0x19c3   : > { %s5421_s28 = smov %s4808_s4  ;;  %50 = sbr.rel (!%p48_p3) target bundleno = 37 (0x25), region = 248 }
0x19c8   :  { %2955 = vsyncpa [#allocation3], 1 }
0x19c9   :  { %2957 = vsyncpa [#allocation3 + $0x1], 1 }
0x19ca   :  { %2958 = vsyncpa [#allocation6], 1 }
0x19cb   :  { %2960 = vsyncpa [#allocation6 + $0x1], 1 }
0x19cc   :  { %2961 = vsyncpa [#allocation9], 1 }
0x19cd   :  { %2962 = vsyncpa [#allocation12], 1 }
0x19ce   :  { %2963 = vsyncpa [#allocation15], 1 }
0x19cf   :  { %2964 = vsyncpa [#allocation18], 1 }
0x19d0   :  { %2965 = vsyncpa [#allocation21], 1 }
0x19d1   :  { %2966 = vsyncpa [#allocation24], 1 }
0x19d2   :  { %2967 = vsyncpa [#allocation27], 1 }
0x19d3   :  { %2968 = vsyncpa [#allocation30], 1 }
0x19d4   :  { %2969 = vsyncpa [#allocation4], 1 }
0x19d5   :  { %2971 = vsyncpa [#allocation4 + $0x1], 1 }

</bundles_post_ra>
